<compile_context>
chip_gen: v7x
topology: tpu7x:2x2x1
jax: 0.10.0
libtpu: 0.0.40
codegen_flags: <defaults>
</compile_context>

<pallas_src>
import jax
import jax.numpy as jnp
from jax import lax
from jax.experimental import pallas as pl
from jax.experimental.pallas import tpu as pltpu

INPUT_SIZE = 3
HIDDEN = 64
NUM_LAYERS = 2


# ----------------------------------------------------------------------------
# Pallas kernel
# ----------------------------------------------------------------------------
def _bilstm_fused_kernel(x_ref,
                         wihf1_ref, wihb1_ref, whh1_ref, b1_ref,
                         wihf2_ref, wihb2_ref, whh2_ref, b2_ref,
                         wfcf_ref, wfcb_ref, bfc_ref,
                         y_ref):
    f32 = jnp.float32
    B, T, _ = x_ref.shape
    H8 = whh1_ref.shape[-1]      # 8 * hidden
    H2 = H8 // 4                 # 2 * hidden  (= 128 lanes for hidden=64)
    H = H2 // 2                  # hidden

    def bidir_layer(x_tm, wihf, wihb, whh, b_cat):
        """x_tm: (T*B, D_in), rows ordered time-major (row = t*B + b).

        Returns a list hs of length T; hs[s][:, :H] is the forward hidden
        after processing time s, hs[s][:, H:] is the backward hidden after
        processing time T-1-s.
        """
        # Hoisted input projections: one batched matmul per direction, off the
        # serial critical path (combined bias folded into the forward one).
        gxf = jnp.dot(x_tm, wihf, preferred_element_type=f32) + b_cat   # (T*B, 8H)
        gxb = jnp.dot(x_tm, wihb, preferred_element_type=f32)           # (T*B, 8H)

        h = jnp.zeros((B, H2), f32)
        c = jnp.zeros((B, H2), f32)
        hs = []
        for s in range(T):                        # fully unrolled, static T
            gx = gxf[s * B:(s + 1) * B, :] + gxb[(T - 1 - s) * B:(T - s) * B, :]
            gates = gx + jnp.dot(h, whh, preferred_element_type=f32)    # (B, 8H)
            i_g = jax.nn.sigmoid(gates[:, 0 * H2:1 * H2])   # all slices are
            f_g = jax.nn.sigmoid(gates[:, 1 * H2:2 * H2])   # 128-lane aligned
            g_g = jnp.tanh(gates[:, 2 * H2:3 * H2])
            o_g = jax.nn.sigmoid(gates[:, 3 * H2:4 * H2])
            c = f_g * c + i_g * g_g
            h = o_g * jnp.tanh(c)
            hs.append(h)
        return hs

    # ---- layer 1 ---------------------------------------------------------
    x = x_ref[...].astype(f32)                                      # (B, T, D)
    # time-major 2D input (row = t*B + b), built once in-kernel -- no
    # wrapper-side transpose / extra HBM round trip.
    x1_tm = jnp.concatenate([x[:, t, :] for t in range(T)], axis=0)  # (T*B, D)
    hs1 = bidir_layer(x1_tm, wihf1_ref[...], wihb1_ref[...],
                      whh1_ref[...], b1_ref[...])

    # Re-assemble layer-1 output in original time order: forward half of step
    # t, backward half of step T-1-t.  Done with lane masks (pure VPU work,
    # no sub-128-lane slicing), once per layer, outside the recurrence.
    lane = lax.broadcasted_iota(jnp.int32, (B, H2), 1)
    m_f = (lane < H).astype(f32)
    m_b = 1.0 - m_f
    x2_tm = jnp.concatenate(
        [hs1[t] * m_f + hs1[T - 1 - t] * m_b for t in range(T)], axis=0)  # (T*B, 2H)

    # ---- layer 2 ---------------------------------------------------------
    hs2 = bidir_layer(x2_tm, wihf2_ref[...], wihb2_ref[...],
                      whh2_ref[...], b2_ref[...])

    # ---- FC head on out[:, -1, :] -----------------------------------------
    # out[:, -1, :H] = forward hidden after the last step   -> hs2[T-1][:, :H]
    # out[:, -1, H:] = backward hidden after its FIRST step -> hs2[0][:, H:]
    # The zero-padded FC rows select the right halves, so no slicing is
    # needed; the dot product is a VPU multiply + lane reduction.
    contrib = hs2[T - 1] * wfcf_ref[...] + hs2[0] * wfcb_ref[...]        # (B, 2H)
    y_ref[...] = jnp.sum(contrib, axis=-1, keepdims=True) + bfc_ref[...]


# ----------------------------------------------------------------------------
# Wrapper
# ----------------------------------------------------------------------------
@jax.jit
def bilstm_forward(x, fused_params):
    """x: (B, T, INPUT_SIZE) batch-first.  Returns (B,) like BiLSTMModel."""
    (l1, l2), (wfcf, wfcb, bfc) = fused_params
    B = x.shape[0]
    vmem = pl.BlockSpec(memory_space=pltpu.MemorySpace.VMEM)
    y = pl.pallas_call(
        _bilstm_fused_kernel,
        out_shape=jax.ShapeDtypeStruct((B, 1), jnp.float32),
        in_specs=[vmem] * 12,
        out_specs=vmem,
    )(x, *l1, *l2, wfcf, wfcb, bfc)
    return jnp.squeeze(y, axis=-1)


# ----------------------------------------------------------------------------
# Parameter init (PyTorch layout) + packing into the fused kernel layout
# ----------------------------------------------------------------------------
def init_params(key, input_size=INPUT_SIZE, hidden=HIDDEN, num_layers=NUM_LAYERS):
    """Raw PyTorch-style params: per layer, per direction (w_ih, w_hh, b_ih, b_hh)."""
    k = 1.0 / float(jnp.sqrt(jnp.float32(hidden)))
    layers = []
    for layer in range(num_layers):
        in_dim = input_size if layer == 0 else 2 * hidden
        dirs = []
        for _ in range(2):  # forward, backward
            key, k1, k2, k3, k4 = jax.random.split(key, 5)
            w_ih = jax.random.uniform(k1, (4 * hidden, in_dim), jnp.float32, -k, k)
            w_hh = jax.random.uniform(k2, (4 * hidden, hidden), jnp.float32, -k, k)
            b_ih = jax.random.uniform(k3, (4 * hidden,), jnp.float32, -k, k)
            b_hh = jax.random.uniform(k4, (4 * hidden,), jnp.float32, -k, k)
            dirs.append((w_ih, w_hh, b_ih, b_hh))
        layers.append(tuple(dirs))
    key, k1, k2 = jax.random.split(key, 3)
    kf = 1.0 / float(jnp.sqrt(jnp.float32(2 * hidden)))
    w_fc = jax.random.uniform(k1, (1, 2 * hidden), jnp.float32, -kf, kf)
    b_fc = jax.random.uniform(k2, (1,), jnp.float32, -kf, kf)
    return layers, (w_fc, b_fc)


def _fuse_layer(fwd, bwd, hidden):
    """Pack one layer's two directions into the fused kernel layout."""
    w_ih_f, w_hh_f, b_ih_f, b_hh_f = fwd
    w_ih_b, w_hh_b, b_ih_b, b_hh_b = bwd
    d_in = w_ih_f.shape[1]
    H, H2, H8 = hidden, 2 * hidden, 8 * hidden

    wihf_t = w_ih_f.T            # (D_in, 4H), gate cols [i|f|g|o]
    wihb_t = w_ih_b.T
    whhf_t = w_hh_f.T            # (H, 4H)
    whhb_t = w_hh_b.T
    bf = b_ih_f + b_hh_f         # (4H,)
    bb = b_ih_b + b_hh_b

    wihf_pad = jnp.zeros((d_in, H8), jnp.float32)   # fwd weights, bwd cols zero
    wihb_pad = jnp.zeros((d_in, H8), jnp.float32)   # bwd weights, fwd cols zero
    whh_cat = jnp.zeros((H2, H8), jnp.float32)      # block-diagonal recurrent W
    b_cat = jnp.zeros((H8,), jnp.float32)
    for g in range(4):
        src = slice(g * H, (g + 1) * H)
        cf = slice(g * H2, g * H2 + H)              # forward lanes of gate g
        cb = slice(g * H2 + H, (g + 1) * H2)        # backward lanes of gate g
        wihf_pad = wihf_pad.at[:, cf].set(wihf_t[:, src])
        wihb_pad = wihb_pad.at[:, cb].set(wihb_t[:, src])
        whh_cat = whh_cat.at[:H, cf].set(whhf_t[:, src])
        whh_cat = whh_cat.at[H:, cb].set(whhb_t[:, src])
        b_cat = b_cat.at[cf].set(bf[src])
        b_cat = b_cat.at[cb].set(bb[src])
    return wihf_pad, wihb_pad, whh_cat, b_cat.reshape(1, H8)


def prepare_fused_params(raw_params, hidden=HIDDEN):
    layers, (w_fc, b_fc) = raw_params
    assert len(layers) == 2, "fused kernel is specialized to num_layers=2"
    fused_layers = tuple(_fuse_layer(fwd, bwd, hidden) for (fwd, bwd) in layers)
    H = hidden
    zeros = jnp.zeros((H,), jnp.float32)
    wfcf = jnp.concatenate([w_fc[0, :H], zeros]).reshape(1, 2 * H)
    wfcb = jnp.concatenate([zeros, w_fc[0, H:]]).reshape(1, 2 * H)
    bfc = b_fc.reshape(1, 1).astype(jnp.float32)
    return fused_layers, (wfcf, wfcb, bfc)


# ----------------------------------------------------------------------------
# Pure-JAX reference (PyTorch nn.LSTM(bidirectional=True) semantics)
# ----------------------------------------------------------------------------
def _ref_lstm_layer(x_tm, w_ih, w_hh, b_ih, b_hh):
    H = w_hh.shape[1]

    def step(carry, x_t):
        h, c = carry
        gates = x_t @ w_ih.T + h @ w_hh.T + b_ih + b_hh
        i = jax.nn.sigmoid(gates[:, 0 * H:1 * H])
        f = jax.nn.sigmoid(gates[:, 1 * H:2 * H])
        g = jnp.tanh(gates[:, 2 * H:3 * H])
        o = jax.nn.sigmoid(gates[:, 3 * H:4 * H])
        c = f * c + i * g
        h = o * jnp.tanh(c)
        return (h, c), h

    B = x_tm.shape[1]
    init = (jnp.zeros((B, H), jnp.float32), jnp.zeros((B, H), jnp.float32))
    _, hs = lax.scan(step, init, x_tm)
    return hs


def bilstm_forward_ref(x, raw_params):
    layers, (w_fc, b_fc) = raw_params
    h_seq = jnp.transpose(x, (1, 0, 2))                     # (T, B, D)
    for (fwd, bwd) in layers:
        out_f = _ref_lstm_layer(h_seq, *fwd)
        out_b = jnp.flip(_ref_lstm_layer(jnp.flip(h_seq, 0), *bwd), 0)
        h_seq = jnp.concatenate([out_f, out_b], axis=-1)
    last = h_seq[-1]                                        # (B, 2H)
    return jnp.squeeze(last @ w_fc.T + b_fc)


# ----------------------------------------------------------------------------
if __name__ == "__main__":
    key = jax.random.PRNGKey(0)
    key, pkey, xkey = jax.random.split(key, 3)

    B, T = 2, 8
    raw_params = init_params(pkey)
    fused_params = prepare_fused_params(raw_params)
    x = jax.random.normal(xkey, (B, T, INPUT_SIZE), jnp.float32)

    out = bilstm_forward(x, fused_params)
    out = jax.block_until_ready(out)

    ref = bilstm_forward_ref(x, raw_params)
    assert out.shape == (B,), out.shape
    assert jnp.allclose(out, ref, atol=1e-4, rtol=1e-4), (out, ref)

    print("KERNEL_OK")
</pallas_src>

<mosaic_0001>
module attributes {stable_mosaic.version = 11 : i64} {
  func.func @_bilstm_fused_kernel(%arg0: memref<2x8x3xf32, #tpu.memory_space<vmem>>, %arg1: memref<3x512xf32, #tpu.memory_space<vmem>>, %arg2: memref<3x512xf32, #tpu.memory_space<vmem>>, %arg3: memref<128x512xf32, #tpu.memory_space<vmem>>, %arg4: memref<1x512xf32, #tpu.memory_space<vmem>>, %arg5: memref<128x512xf32, #tpu.memory_space<vmem>>, %arg6: memref<128x512xf32, #tpu.memory_space<vmem>>, %arg7: memref<128x512xf32, #tpu.memory_space<vmem>>, %arg8: memref<1x512xf32, #tpu.memory_space<vmem>>, %arg9: memref<1x128xf32, #tpu.memory_space<vmem>>, %arg10: memref<1x128xf32, #tpu.memory_space<vmem>>, %arg11: memref<1x1xf32, #tpu.memory_space<vmem>>, %arg12: memref<2x1xf32, #tpu.memory_space<vmem>>) attributes {dimension_semantics = [], scalar_prefetch = 0 : i64, scratch_operands = 0 : i64, tpu.core_type = #tpu.core_type<tc>} {
    %c0 = arith.constant 0 : index
    %c0_0 = arith.constant 0 : index
    %c0_1 = arith.constant 0 : index
    %0 = vector.load %arg0[%c0, %c0_0, %c0_1] : memref<2x8x3xf32, #tpu.memory_space<vmem>>, vector<2x8x3xf32>
    %1 = vector.extract_strided_slice %0 {offsets = [0, 0, 0], sizes = [2, 1, 3], strides = [1, 1, 1]} : vector<2x8x3xf32> to vector<2x1x3xf32>
    %2 = vector.shape_cast %1 : vector<2x1x3xf32> to vector<2x3xf32>
    %3 = vector.extract_strided_slice %0 {offsets = [0, 1, 0], sizes = [2, 1, 3], strides = [1, 1, 1]} : vector<2x8x3xf32> to vector<2x1x3xf32>
    %4 = vector.shape_cast %3 : vector<2x1x3xf32> to vector<2x3xf32>
    %5 = vector.extract_strided_slice %0 {offsets = [0, 2, 0], sizes = [2, 1, 3], strides = [1, 1, 1]} : vector<2x8x3xf32> to vector<2x1x3xf32>
    %6 = vector.shape_cast %5 : vector<2x1x3xf32> to vector<2x3xf32>
    %7 = vector.extract_strided_slice %0 {offsets = [0, 3, 0], sizes = [2, 1, 3], strides = [1, 1, 1]} : vector<2x8x3xf32> to vector<2x1x3xf32>
    %8 = vector.shape_cast %7 : vector<2x1x3xf32> to vector<2x3xf32>
    %9 = vector.extract_strided_slice %0 {offsets = [0, 4, 0], sizes = [2, 1, 3], strides = [1, 1, 1]} : vector<2x8x3xf32> to vector<2x1x3xf32>
    %10 = vector.shape_cast %9 : vector<2x1x3xf32> to vector<2x3xf32>
    %11 = vector.extract_strided_slice %0 {offsets = [0, 5, 0], sizes = [2, 1, 3], strides = [1, 1, 1]} : vector<2x8x3xf32> to vector<2x1x3xf32>
    %12 = vector.shape_cast %11 : vector<2x1x3xf32> to vector<2x3xf32>
    %13 = vector.extract_strided_slice %0 {offsets = [0, 6, 0], sizes = [2, 1, 3], strides = [1, 1, 1]} : vector<2x8x3xf32> to vector<2x1x3xf32>
    %14 = vector.shape_cast %13 : vector<2x1x3xf32> to vector<2x3xf32>
    %15 = vector.extract_strided_slice %0 {offsets = [0, 7, 0], sizes = [2, 1, 3], strides = [1, 1, 1]} : vector<2x8x3xf32> to vector<2x1x3xf32>
    %16 = vector.shape_cast %15 : vector<2x1x3xf32> to vector<2x3xf32>
    %17 = tpu.concatenate %2, %4, %6, %8, %10, %12, %14, %16 in 0 : vector<2x3xf32>, vector<2x3xf32>, vector<2x3xf32>, vector<2x3xf32>, vector<2x3xf32>, vector<2x3xf32>, vector<2x3xf32>, vector<2x3xf32> -> vector<16x3xf32>
    %c0_2 = arith.constant 0 : index
    %c0_3 = arith.constant 0 : index
    %18 = vector.load %arg1[%c0_2, %c0_3] : memref<3x512xf32, #tpu.memory_space<vmem>>, vector<3x512xf32>
    %c0_4 = arith.constant 0 : index
    %c0_5 = arith.constant 0 : index
    %19 = vector.load %arg2[%c0_4, %c0_5] : memref<3x512xf32, #tpu.memory_space<vmem>>, vector<3x512xf32>
    %c0_6 = arith.constant 0 : index
    %c0_7 = arith.constant 0 : index
    %20 = vector.load %arg3[%c0_6, %c0_7] : memref<128x512xf32, #tpu.memory_space<vmem>>, vector<128x512xf32>
    %c0_8 = arith.constant 0 : index
    %c0_9 = arith.constant 0 : index
    %21 = vector.load %arg4[%c0_8, %c0_9] : memref<1x512xf32, #tpu.memory_space<vmem>>, vector<1x512xf32>
    %cst = arith.constant dense<0.000000e+00> : vector<16x512xf32>
    %22 = tpu.matmul %17, %18, %cst {dimension_numbers = #tpu.dot_dimension_numbers<[1], [0], [0], [1], [0, 0, 1, 1], [], []>} : vector<16x3xf32>, vector<3x512xf32>, vector<16x512xf32> -> vector<16x512xf32>
    %23 = vector.broadcast %21 : vector<1x512xf32> to vector<16x512xf32>
    %24 = arith.addf %22, %23 : vector<16x512xf32>
    %cst_10 = arith.constant dense<0.000000e+00> : vector<16x512xf32>
    %25 = tpu.matmul %17, %19, %cst_10 {dimension_numbers = #tpu.dot_dimension_numbers<[1], [0], [0], [1], [0, 0, 1, 1], [], []>} : vector<16x3xf32>, vector<3x512xf32>, vector<16x512xf32> -> vector<16x512xf32>
    %cst_11 = arith.constant 0.000000e+00 : f32
    %26 = vector.broadcast %cst_11 : f32 to vector<2x128xf32>
    %cst_12 = arith.constant 0.000000e+00 : f32
    %27 = vector.broadcast %cst_12 : f32 to vector<2x128xf32>
    %28 = vector.extract_strided_slice %24 {offsets = [0, 0], sizes = [2, 512], strides = [1, 1]} : vector<16x512xf32> to vector<2x512xf32>
    %29 = vector.extract_strided_slice %25 {offsets = [14, 0], sizes = [2, 512], strides = [1, 1]} : vector<16x512xf32> to vector<2x512xf32>
    %30 = arith.addf %28, %29 : vector<2x512xf32>
    %cst_13 = arith.constant dense<0.000000e+00> : vector<2x512xf32>
    %31 = tpu.matmul %26, %20, %cst_13 {dimension_numbers = #tpu.dot_dimension_numbers<[1], [0], [0], [1], [0, 0, 1, 1], [], []>} : vector<2x128xf32>, vector<128x512xf32>, vector<2x512xf32> -> vector<2x512xf32>
    %32 = arith.addf %30, %31 : vector<2x512xf32>
    %33 = vector.extract_strided_slice %32 {offsets = [0, 0], sizes = [2, 128], strides = [1, 1]} : vector<2x512xf32> to vector<2x128xf32>
    %34 = arith.negf %33 : vector<2x128xf32>
    %35 = math.exp %34 : vector<2x128xf32>
    %cst_14 = arith.constant 1.000000e+00 : f32
    %36 = vector.broadcast %cst_14 : f32 to vector<2x128xf32>
    %37 = arith.addf %36, %35 : vector<2x128xf32>
    %38 = arith.divf %36, %37 : vector<2x128xf32>
    %39 = vector.extract_strided_slice %32 {offsets = [0, 128], sizes = [2, 128], strides = [1, 1]} : vector<2x512xf32> to vector<2x128xf32>
    %40 = arith.negf %39 : vector<2x128xf32>
    %41 = math.exp %40 : vector<2x128xf32>
    %cst_15 = arith.constant 1.000000e+00 : f32
    %42 = vector.broadcast %cst_15 : f32 to vector<2x128xf32>
    %43 = arith.addf %42, %41 : vector<2x128xf32>
    %44 = arith.divf %42, %43 : vector<2x128xf32>
    %45 = vector.extract_strided_slice %32 {offsets = [0, 256], sizes = [2, 128], strides = [1, 1]} : vector<2x512xf32> to vector<2x128xf32>
    %46 = math.tanh %45 : vector<2x128xf32>
    %47 = vector.extract_strided_slice %32 {offsets = [0, 384], sizes = [2, 128], strides = [1, 1]} : vector<2x512xf32> to vector<2x128xf32>
    %48 = arith.negf %47 : vector<2x128xf32>
    %49 = math.exp %48 : vector<2x128xf32>
    %cst_16 = arith.constant 1.000000e+00 : f32
    %50 = vector.broadcast %cst_16 : f32 to vector<2x128xf32>
    %51 = arith.addf %50, %49 : vector<2x128xf32>
    %52 = arith.divf %50, %51 : vector<2x128xf32>
    %53 = arith.mulf %44, %27 : vector<2x128xf32>
    %54 = arith.mulf %38, %46 : vector<2x128xf32>
    %55 = arith.addf %53, %54 : vector<2x128xf32>
    %56 = math.tanh %55 : vector<2x128xf32>
    %57 = arith.mulf %52, %56 : vector<2x128xf32>
    %58 = vector.extract_strided_slice %24 {offsets = [2, 0], sizes = [2, 512], strides = [1, 1]} : vector<16x512xf32> to vector<2x512xf32>
    %59 = vector.extract_strided_slice %25 {offsets = [12, 0], sizes = [2, 512], strides = [1, 1]} : vector<16x512xf32> to vector<2x512xf32>
    %60 = arith.addf %58, %59 : vector<2x512xf32>
    %cst_17 = arith.constant dense<0.000000e+00> : vector<2x512xf32>
    %61 = tpu.matmul %57, %20, %cst_17 {dimension_numbers = #tpu.dot_dimension_numbers<[1], [0], [0], [1], [0, 0, 1, 1], [], []>} : vector<2x128xf32>, vector<128x512xf32>, vector<2x512xf32> -> vector<2x512xf32>
    %62 = arith.addf %60, %61 : vector<2x512xf32>
    %63 = vector.extract_strided_slice %62 {offsets = [0, 0], sizes = [2, 128], strides = [1, 1]} : vector<2x512xf32> to vector<2x128xf32>
    %64 = arith.negf %63 : vector<2x128xf32>
    %65 = math.exp %64 : vector<2x128xf32>
    %cst_18 = arith.constant 1.000000e+00 : f32
    %66 = vector.broadcast %cst_18 : f32 to vector<2x128xf32>
    %67 = arith.addf %66, %65 : vector<2x128xf32>
    %68 = arith.divf %66, %67 : vector<2x128xf32>
    %69 = vector.extract_strided_slice %62 {offsets = [0, 128], sizes = [2, 128], strides = [1, 1]} : vector<2x512xf32> to vector<2x128xf32>
    %70 = arith.negf %69 : vector<2x128xf32>
    %71 = math.exp %70 : vector<2x128xf32>
    %cst_19 = arith.constant 1.000000e+00 : f32
    %72 = vector.broadcast %cst_19 : f32 to vector<2x128xf32>
    %73 = arith.addf %72, %71 : vector<2x128xf32>
    %74 = arith.divf %72, %73 : vector<2x128xf32>
    %75 = vector.extract_strided_slice %62 {offsets = [0, 256], sizes = [2, 128], strides = [1, 1]} : vector<2x512xf32> to vector<2x128xf32>
    %76 = math.tanh %75 : vector<2x128xf32>
    %77 = vector.extract_strided_slice %62 {offsets = [0, 384], sizes = [2, 128], strides = [1, 1]} : vector<2x512xf32> to vector<2x128xf32>
    %78 = arith.negf %77 : vector<2x128xf32>
    %79 = math.exp %78 : vector<2x128xf32>
    %cst_20 = arith.constant 1.000000e+00 : f32
    %80 = vector.broadcast %cst_20 : f32 to vector<2x128xf32>
    %81 = arith.addf %80, %79 : vector<2x128xf32>
    %82 = arith.divf %80, %81 : vector<2x128xf32>
    %83 = arith.mulf %74, %55 : vector<2x128xf32>
    %84 = arith.mulf %68, %76 : vector<2x128xf32>
    %85 = arith.addf %83, %84 : vector<2x128xf32>
    %86 = math.tanh %85 : vector<2x128xf32>
    %87 = arith.mulf %82, %86 : vector<2x128xf32>
    %88 = vector.extract_strided_slice %24 {offsets = [4, 0], sizes = [2, 512], strides = [1, 1]} : vector<16x512xf32> to vector<2x512xf32>
    %89 = vector.extract_strided_slice %25 {offsets = [10, 0], sizes = [2, 512], strides = [1, 1]} : vector<16x512xf32> to vector<2x512xf32>
    %90 = arith.addf %88, %89 : vector<2x512xf32>
    %cst_21 = arith.constant dense<0.000000e+00> : vector<2x512xf32>
    %91 = tpu.matmul %87, %20, %cst_21 {dimension_numbers = #tpu.dot_dimension_numbers<[1], [0], [0], [1], [0, 0, 1, 1], [], []>} : vector<2x128xf32>, vector<128x512xf32>, vector<2x512xf32> -> vector<2x512xf32>
    %92 = arith.addf %90, %91 : vector<2x512xf32>
    %93 = vector.extract_strided_slice %92 {offsets = [0, 0], sizes = [2, 128], strides = [1, 1]} : vector<2x512xf32> to vector<2x128xf32>
    %94 = arith.negf %93 : vector<2x128xf32>
    %95 = math.exp %94 : vector<2x128xf32>
    %cst_22 = arith.constant 1.000000e+00 : f32
    %96 = vector.broadcast %cst_22 : f32 to vector<2x128xf32>
    %97 = arith.addf %96, %95 : vector<2x128xf32>
    %98 = arith.divf %96, %97 : vector<2x128xf32>
    %99 = vector.extract_strided_slice %92 {offsets = [0, 128], sizes = [2, 128], strides = [1, 1]} : vector<2x512xf32> to vector<2x128xf32>
    %100 = arith.negf %99 : vector<2x128xf32>
    %101 = math.exp %100 : vector<2x128xf32>
    %cst_23 = arith.constant 1.000000e+00 : f32
    %102 = vector.broadcast %cst_23 : f32 to vector<2x128xf32>
    %103 = arith.addf %102, %101 : vector<2x128xf32>
    %104 = arith.divf %102, %103 : vector<2x128xf32>
    %105 = vector.extract_strided_slice %92 {offsets = [0, 256], sizes = [2, 128], strides = [1, 1]} : vector<2x512xf32> to vector<2x128xf32>
    %106 = math.tanh %105 : vector<2x128xf32>
    %107 = vector.extract_strided_slice %92 {offsets = [0, 384], sizes = [2, 128], strides = [1, 1]} : vector<2x512xf32> to vector<2x128xf32>
    %108 = arith.negf %107 : vector<2x128xf32>
    %109 = math.exp %108 : vector<2x128xf32>
    %cst_24 = arith.constant 1.000000e+00 : f32
    %110 = vector.broadcast %cst_24 : f32 to vector<2x128xf32>
    %111 = arith.addf %110, %109 : vector<2x128xf32>
    %112 = arith.divf %110, %111 : vector<2x128xf32>
    %113 = arith.mulf %104, %85 : vector<2x128xf32>
    %114 = arith.mulf %98, %106 : vector<2x128xf32>
    %115 = arith.addf %113, %114 : vector<2x128xf32>
    %116 = math.tanh %115 : vector<2x128xf32>
    %117 = arith.mulf %112, %116 : vector<2x128xf32>
    %118 = vector.extract_strided_slice %24 {offsets = [6, 0], sizes = [2, 512], strides = [1, 1]} : vector<16x512xf32> to vector<2x512xf32>
    %119 = vector.extract_strided_slice %25 {offsets = [8, 0], sizes = [2, 512], strides = [1, 1]} : vector<16x512xf32> to vector<2x512xf32>
    %120 = arith.addf %118, %119 : vector<2x512xf32>
    %cst_25 = arith.constant dense<0.000000e+00> : vector<2x512xf32>
    %121 = tpu.matmul %117, %20, %cst_25 {dimension_numbers = #tpu.dot_dimension_numbers<[1], [0], [0], [1], [0, 0, 1, 1], [], []>} : vector<2x128xf32>, vector<128x512xf32>, vector<2x512xf32> -> vector<2x512xf32>
    %122 = arith.addf %120, %121 : vector<2x512xf32>
    %123 = vector.extract_strided_slice %122 {offsets = [0, 0], sizes = [2, 128], strides = [1, 1]} : vector<2x512xf32> to vector<2x128xf32>
    %124 = arith.negf %123 : vector<2x128xf32>
    %125 = math.exp %124 : vector<2x128xf32>
    %cst_26 = arith.constant 1.000000e+00 : f32
    %126 = vector.broadcast %cst_26 : f32 to vector<2x128xf32>
    %127 = arith.addf %126, %125 : vector<2x128xf32>
    %128 = arith.divf %126, %127 : vector<2x128xf32>
    %129 = vector.extract_strided_slice %122 {offsets = [0, 128], sizes = [2, 128], strides = [1, 1]} : vector<2x512xf32> to vector<2x128xf32>
    %130 = arith.negf %129 : vector<2x128xf32>
    %131 = math.exp %130 : vector<2x128xf32>
    %cst_27 = arith.constant 1.000000e+00 : f32
    %132 = vector.broadcast %cst_27 : f32 to vector<2x128xf32>
    %133 = arith.addf %132, %131 : vector<2x128xf32>
    %134 = arith.divf %132, %133 : vector<2x128xf32>
    %135 = vector.extract_strided_slice %122 {offsets = [0, 256], sizes = [2, 128], strides = [1, 1]} : vector<2x512xf32> to vector<2x128xf32>
    %136 = math.tanh %135 : vector<2x128xf32>
    %137 = vector.extract_strided_slice %122 {offsets = [0, 384], sizes = [2, 128], strides = [1, 1]} : vector<2x512xf32> to vector<2x128xf32>
    %138 = arith.negf %137 : vector<2x128xf32>
    %139 = math.exp %138 : vector<2x128xf32>
    %cst_28 = arith.constant 1.000000e+00 : f32
    %140 = vector.broadcast %cst_28 : f32 to vector<2x128xf32>
    %141 = arith.addf %140, %139 : vector<2x128xf32>
    %142 = arith.divf %140, %141 : vector<2x128xf32>
    %143 = arith.mulf %134, %115 : vector<2x128xf32>
    %144 = arith.mulf %128, %136 : vector<2x128xf32>
    %145 = arith.addf %143, %144 : vector<2x128xf32>
    %146 = math.tanh %145 : vector<2x128xf32>
    %147 = arith.mulf %142, %146 : vector<2x128xf32>
    %148 = vector.extract_strided_slice %24 {offsets = [8, 0], sizes = [2, 512], strides = [1, 1]} : vector<16x512xf32> to vector<2x512xf32>
    %149 = vector.extract_strided_slice %25 {offsets = [6, 0], sizes = [2, 512], strides = [1, 1]} : vector<16x512xf32> to vector<2x512xf32>
    %150 = arith.addf %148, %149 : vector<2x512xf32>
    %cst_29 = arith.constant dense<0.000000e+00> : vector<2x512xf32>
    %151 = tpu.matmul %147, %20, %cst_29 {dimension_numbers = #tpu.dot_dimension_numbers<[1], [0], [0], [1], [0, 0, 1, 1], [], []>} : vector<2x128xf32>, vector<128x512xf32>, vector<2x512xf32> -> vector<2x512xf32>
    %152 = arith.addf %150, %151 : vector<2x512xf32>
    %153 = vector.extract_strided_slice %152 {offsets = [0, 0], sizes = [2, 128], strides = [1, 1]} : vector<2x512xf32> to vector<2x128xf32>
    %154 = arith.negf %153 : vector<2x128xf32>
    %155 = math.exp %154 : vector<2x128xf32>
    %cst_30 = arith.constant 1.000000e+00 : f32
    %156 = vector.broadcast %cst_30 : f32 to vector<2x128xf32>
    %157 = arith.addf %156, %155 : vector<2x128xf32>
    %158 = arith.divf %156, %157 : vector<2x128xf32>
    %159 = vector.extract_strided_slice %152 {offsets = [0, 128], sizes = [2, 128], strides = [1, 1]} : vector<2x512xf32> to vector<2x128xf32>
    %160 = arith.negf %159 : vector<2x128xf32>
    %161 = math.exp %160 : vector<2x128xf32>
    %cst_31 = arith.constant 1.000000e+00 : f32
    %162 = vector.broadcast %cst_31 : f32 to vector<2x128xf32>
    %163 = arith.addf %162, %161 : vector<2x128xf32>
    %164 = arith.divf %162, %163 : vector<2x128xf32>
    %165 = vector.extract_strided_slice %152 {offsets = [0, 256], sizes = [2, 128], strides = [1, 1]} : vector<2x512xf32> to vector<2x128xf32>
    %166 = math.tanh %165 : vector<2x128xf32>
    %167 = vector.extract_strided_slice %152 {offsets = [0, 384], sizes = [2, 128], strides = [1, 1]} : vector<2x512xf32> to vector<2x128xf32>
    %168 = arith.negf %167 : vector<2x128xf32>
    %169 = math.exp %168 : vector<2x128xf32>
    %cst_32 = arith.constant 1.000000e+00 : f32
    %170 = vector.broadcast %cst_32 : f32 to vector<2x128xf32>
    %171 = arith.addf %170, %169 : vector<2x128xf32>
    %172 = arith.divf %170, %171 : vector<2x128xf32>
    %173 = arith.mulf %164, %145 : vector<2x128xf32>
    %174 = arith.mulf %158, %166 : vector<2x128xf32>
    %175 = arith.addf %173, %174 : vector<2x128xf32>
    %176 = math.tanh %175 : vector<2x128xf32>
    %177 = arith.mulf %172, %176 : vector<2x128xf32>
    %178 = vector.extract_strided_slice %24 {offsets = [10, 0], sizes = [2, 512], strides = [1, 1]} : vector<16x512xf32> to vector<2x512xf32>
    %179 = vector.extract_strided_slice %25 {offsets = [4, 0], sizes = [2, 512], strides = [1, 1]} : vector<16x512xf32> to vector<2x512xf32>
    %180 = arith.addf %178, %179 : vector<2x512xf32>
    %cst_33 = arith.constant dense<0.000000e+00> : vector<2x512xf32>
    %181 = tpu.matmul %177, %20, %cst_33 {dimension_numbers = #tpu.dot_dimension_numbers<[1], [0], [0], [1], [0, 0, 1, 1], [], []>} : vector<2x128xf32>, vector<128x512xf32>, vector<2x512xf32> -> vector<2x512xf32>
    %182 = arith.addf %180, %181 : vector<2x512xf32>
    %183 = vector.extract_strided_slice %182 {offsets = [0, 0], sizes = [2, 128], strides = [1, 1]} : vector<2x512xf32> to vector<2x128xf32>
    %184 = arith.negf %183 : vector<2x128xf32>
    %185 = math.exp %184 : vector<2x128xf32>
    %cst_34 = arith.constant 1.000000e+00 : f32
    %186 = vector.broadcast %cst_34 : f32 to vector<2x128xf32>
    %187 = arith.addf %186, %185 : vector<2x128xf32>
    %188 = arith.divf %186, %187 : vector<2x128xf32>
    %189 = vector.extract_strided_slice %182 {offsets = [0, 128], sizes = [2, 128], strides = [1, 1]} : vector<2x512xf32> to vector<2x128xf32>
    %190 = arith.negf %189 : vector<2x128xf32>
    %191 = math.exp %190 : vector<2x128xf32>
    %cst_35 = arith.constant 1.000000e+00 : f32
    %192 = vector.broadcast %cst_35 : f32 to vector<2x128xf32>
    %193 = arith.addf %192, %191 : vector<2x128xf32>
    %194 = arith.divf %192, %193 : vector<2x128xf32>
    %195 = vector.extract_strided_slice %182 {offsets = [0, 256], sizes = [2, 128], strides = [1, 1]} : vector<2x512xf32> to vector<2x128xf32>
    %196 = math.tanh %195 : vector<2x128xf32>
    %197 = vector.extract_strided_slice %182 {offsets = [0, 384], sizes = [2, 128], strides = [1, 1]} : vector<2x512xf32> to vector<2x128xf32>
    %198 = arith.negf %197 : vector<2x128xf32>
    %199 = math.exp %198 : vector<2x128xf32>
    %cst_36 = arith.constant 1.000000e+00 : f32
    %200 = vector.broadcast %cst_36 : f32 to vector<2x128xf32>
    %201 = arith.addf %200, %199 : vector<2x128xf32>
    %202 = arith.divf %200, %201 : vector<2x128xf32>
    %203 = arith.mulf %194, %175 : vector<2x128xf32>
    %204 = arith.mulf %188, %196 : vector<2x128xf32>
    %205 = arith.addf %203, %204 : vector<2x128xf32>
    %206 = math.tanh %205 : vector<2x128xf32>
    %207 = arith.mulf %202, %206 : vector<2x128xf32>
    %208 = vector.extract_strided_slice %24 {offsets = [12, 0], sizes = [2, 512], strides = [1, 1]} : vector<16x512xf32> to vector<2x512xf32>
    %209 = vector.extract_strided_slice %25 {offsets = [2, 0], sizes = [2, 512], strides = [1, 1]} : vector<16x512xf32> to vector<2x512xf32>
    %210 = arith.addf %208, %209 : vector<2x512xf32>
    %cst_37 = arith.constant dense<0.000000e+00> : vector<2x512xf32>
    %211 = tpu.matmul %207, %20, %cst_37 {dimension_numbers = #tpu.dot_dimension_numbers<[1], [0], [0], [1], [0, 0, 1, 1], [], []>} : vector<2x128xf32>, vector<128x512xf32>, vector<2x512xf32> -> vector<2x512xf32>
    %212 = arith.addf %210, %211 : vector<2x512xf32>
    %213 = vector.extract_strided_slice %212 {offsets = [0, 0], sizes = [2, 128], strides = [1, 1]} : vector<2x512xf32> to vector<2x128xf32>
    %214 = arith.negf %213 : vector<2x128xf32>
    %215 = math.exp %214 : vector<2x128xf32>
    %cst_38 = arith.constant 1.000000e+00 : f32
    %216 = vector.broadcast %cst_38 : f32 to vector<2x128xf32>
    %217 = arith.addf %216, %215 : vector<2x128xf32>
    %218 = arith.divf %216, %217 : vector<2x128xf32>
    %219 = vector.extract_strided_slice %212 {offsets = [0, 128], sizes = [2, 128], strides = [1, 1]} : vector<2x512xf32> to vector<2x128xf32>
    %220 = arith.negf %219 : vector<2x128xf32>
    %221 = math.exp %220 : vector<2x128xf32>
    %cst_39 = arith.constant 1.000000e+00 : f32
    %222 = vector.broadcast %cst_39 : f32 to vector<2x128xf32>
    %223 = arith.addf %222, %221 : vector<2x128xf32>
    %224 = arith.divf %222, %223 : vector<2x128xf32>
    %225 = vector.extract_strided_slice %212 {offsets = [0, 256], sizes = [2, 128], strides = [1, 1]} : vector<2x512xf32> to vector<2x128xf32>
    %226 = math.tanh %225 : vector<2x128xf32>
    %227 = vector.extract_strided_slice %212 {offsets = [0, 384], sizes = [2, 128], strides = [1, 1]} : vector<2x512xf32> to vector<2x128xf32>
    %228 = arith.negf %227 : vector<2x128xf32>
    %229 = math.exp %228 : vector<2x128xf32>
    %cst_40 = arith.constant 1.000000e+00 : f32
    %230 = vector.broadcast %cst_40 : f32 to vector<2x128xf32>
    %231 = arith.addf %230, %229 : vector<2x128xf32>
    %232 = arith.divf %230, %231 : vector<2x128xf32>
    %233 = arith.mulf %224, %205 : vector<2x128xf32>
    %234 = arith.mulf %218, %226 : vector<2x128xf32>
    %235 = arith.addf %233, %234 : vector<2x128xf32>
    %236 = math.tanh %235 : vector<2x128xf32>
    %237 = arith.mulf %232, %236 : vector<2x128xf32>
    %238 = vector.extract_strided_slice %24 {offsets = [14, 0], sizes = [2, 512], strides = [1, 1]} : vector<16x512xf32> to vector<2x512xf32>
    %239 = vector.extract_strided_slice %25 {offsets = [0, 0], sizes = [2, 512], strides = [1, 1]} : vector<16x512xf32> to vector<2x512xf32>
    %240 = arith.addf %238, %239 : vector<2x512xf32>
    %cst_41 = arith.constant dense<0.000000e+00> : vector<2x512xf32>
    %241 = tpu.matmul %237, %20, %cst_41 {dimension_numbers = #tpu.dot_dimension_numbers<[1], [0], [0], [1], [0, 0, 1, 1], [], []>} : vector<2x128xf32>, vector<128x512xf32>, vector<2x512xf32> -> vector<2x512xf32>
    %242 = arith.addf %240, %241 : vector<2x512xf32>
    %243 = vector.extract_strided_slice %242 {offsets = [0, 0], sizes = [2, 128], strides = [1, 1]} : vector<2x512xf32> to vector<2x128xf32>
    %244 = arith.negf %243 : vector<2x128xf32>
    %245 = math.exp %244 : vector<2x128xf32>
    %cst_42 = arith.constant 1.000000e+00 : f32
    %246 = vector.broadcast %cst_42 : f32 to vector<2x128xf32>
    %247 = arith.addf %246, %245 : vector<2x128xf32>
    %248 = arith.divf %246, %247 : vector<2x128xf32>
    %249 = vector.extract_strided_slice %242 {offsets = [0, 128], sizes = [2, 128], strides = [1, 1]} : vector<2x512xf32> to vector<2x128xf32>
    %250 = arith.negf %249 : vector<2x128xf32>
    %251 = math.exp %250 : vector<2x128xf32>
    %cst_43 = arith.constant 1.000000e+00 : f32
    %252 = vector.broadcast %cst_43 : f32 to vector<2x128xf32>
    %253 = arith.addf %252, %251 : vector<2x128xf32>
    %254 = arith.divf %252, %253 : vector<2x128xf32>
    %255 = vector.extract_strided_slice %242 {offsets = [0, 256], sizes = [2, 128], strides = [1, 1]} : vector<2x512xf32> to vector<2x128xf32>
    %256 = math.tanh %255 : vector<2x128xf32>
    %257 = vector.extract_strided_slice %242 {offsets = [0, 384], sizes = [2, 128], strides = [1, 1]} : vector<2x512xf32> to vector<2x128xf32>
    %258 = arith.negf %257 : vector<2x128xf32>
    %259 = math.exp %258 : vector<2x128xf32>
    %cst_44 = arith.constant 1.000000e+00 : f32
    %260 = vector.broadcast %cst_44 : f32 to vector<2x128xf32>
    %261 = arith.addf %260, %259 : vector<2x128xf32>
    %262 = arith.divf %260, %261 : vector<2x128xf32>
    %263 = arith.mulf %254, %235 : vector<2x128xf32>
    %264 = arith.mulf %248, %256 : vector<2x128xf32>
    %265 = arith.addf %263, %264 : vector<2x128xf32>
    %266 = math.tanh %265 : vector<2x128xf32>
    %267 = arith.mulf %262, %266 : vector<2x128xf32>
    %268 = tpu.iota {dimensions = array<i32: 1>} : vector<2x128xi32>
    %c64_i32 = arith.constant 64 : i32
    %269 = vector.broadcast %c64_i32 : i32 to vector<2x128xi32>
    %270 = arith.cmpi slt, %268, %269 : vector<2x128xi32>
    %271 = arith.extui %270 : vector<2x128xi1> to vector<2x128xi32>
    %272 = arith.sitofp %271 : vector<2x128xi32> to vector<2x128xf32>
    %cst_45 = arith.constant 1.000000e+00 : f32
    %273 = vector.broadcast %cst_45 : f32 to vector<2x128xf32>
    %274 = arith.subf %273, %272 : vector<2x128xf32>
    %275 = arith.mulf %57, %272 : vector<2x128xf32>
    %276 = arith.mulf %267, %274 : vector<2x128xf32>
    %277 = arith.addf %275, %276 : vector<2x128xf32>
    %278 = arith.mulf %87, %272 : vector<2x128xf32>
    %279 = arith.mulf %237, %274 : vector<2x128xf32>
    %280 = arith.addf %278, %279 : vector<2x128xf32>
    %281 = arith.mulf %117, %272 : vector<2x128xf32>
    %282 = arith.mulf %207, %274 : vector<2x128xf32>
    %283 = arith.addf %281, %282 : vector<2x128xf32>
    %284 = arith.mulf %147, %272 : vector<2x128xf32>
    %285 = arith.mulf %177, %274 : vector<2x128xf32>
    %286 = arith.addf %284, %285 : vector<2x128xf32>
    %287 = arith.mulf %177, %272 : vector<2x128xf32>
    %288 = arith.mulf %147, %274 : vector<2x128xf32>
    %289 = arith.addf %287, %288 : vector<2x128xf32>
    %290 = arith.mulf %207, %272 : vector<2x128xf32>
    %291 = arith.mulf %117, %274 : vector<2x128xf32>
    %292 = arith.addf %290, %291 : vector<2x128xf32>
    %293 = arith.mulf %237, %272 : vector<2x128xf32>
    %294 = arith.mulf %87, %274 : vector<2x128xf32>
    %295 = arith.addf %293, %294 : vector<2x128xf32>
    %296 = arith.mulf %267, %272 : vector<2x128xf32>
    %297 = arith.mulf %57, %274 : vector<2x128xf32>
    %298 = arith.addf %296, %297 : vector<2x128xf32>
    %299 = tpu.concatenate %277, %280, %283, %286, %289, %292, %295, %298 in 0 : vector<2x128xf32>, vector<2x128xf32>, vector<2x128xf32>, vector<2x128xf32>, vector<2x128xf32>, vector<2x128xf32>, vector<2x128xf32>, vector<2x128xf32> -> vector<16x128xf32>
    %c0_46 = arith.constant 0 : index
    %c0_47 = arith.constant 0 : index
    %300 = vector.load %arg5[%c0_46, %c0_47] : memref<128x512xf32, #tpu.memory_space<vmem>>, vector<128x512xf32>
    %c0_48 = arith.constant 0 : index
    %c0_49 = arith.constant 0 : index
    %301 = vector.load %arg6[%c0_48, %c0_49] : memref<128x512xf32, #tpu.memory_space<vmem>>, vector<128x512xf32>
    %c0_50 = arith.constant 0 : index
    %c0_51 = arith.constant 0 : index
    %302 = vector.load %arg7[%c0_50, %c0_51] : memref<128x512xf32, #tpu.memory_space<vmem>>, vector<128x512xf32>
    %c0_52 = arith.constant 0 : index
    %c0_53 = arith.constant 0 : index
    %303 = vector.load %arg8[%c0_52, %c0_53] : memref<1x512xf32, #tpu.memory_space<vmem>>, vector<1x512xf32>
    %cst_54 = arith.constant dense<0.000000e+00> : vector<16x512xf32>
    %304 = tpu.matmul %299, %300, %cst_54 {dimension_numbers = #tpu.dot_dimension_numbers<[1], [0], [0], [1], [0, 0, 1, 1], [], []>} : vector<16x128xf32>, vector<128x512xf32>, vector<16x512xf32> -> vector<16x512xf32>
    %305 = vector.broadcast %303 : vector<1x512xf32> to vector<16x512xf32>
    %306 = arith.addf %304, %305 : vector<16x512xf32>
    %cst_55 = arith.constant dense<0.000000e+00> : vector<16x512xf32>
    %307 = tpu.matmul %299, %301, %cst_55 {dimension_numbers = #tpu.dot_dimension_numbers<[1], [0], [0], [1], [0, 0, 1, 1], [], []>} : vector<16x128xf32>, vector<128x512xf32>, vector<16x512xf32> -> vector<16x512xf32>
    %cst_56 = arith.constant 0.000000e+00 : f32
    %308 = vector.broadcast %cst_56 : f32 to vector<2x128xf32>
    %cst_57 = arith.constant 0.000000e+00 : f32
    %309 = vector.broadcast %cst_57 : f32 to vector<2x128xf32>
    %310 = vector.extract_strided_slice %306 {offsets = [0, 0], sizes = [2, 512], strides = [1, 1]} : vector<16x512xf32> to vector<2x512xf32>
    %311 = vector.extract_strided_slice %307 {offsets = [14, 0], sizes = [2, 512], strides = [1, 1]} : vector<16x512xf32> to vector<2x512xf32>
    %312 = arith.addf %310, %311 : vector<2x512xf32>
    %cst_58 = arith.constant dense<0.000000e+00> : vector<2x512xf32>
    %313 = tpu.matmul %308, %302, %cst_58 {dimension_numbers = #tpu.dot_dimension_numbers<[1], [0], [0], [1], [0, 0, 1, 1], [], []>} : vector<2x128xf32>, vector<128x512xf32>, vector<2x512xf32> -> vector<2x512xf32>
    %314 = arith.addf %312, %313 : vector<2x512xf32>
    %315 = vector.extract_strided_slice %314 {offsets = [0, 0], sizes = [2, 128], strides = [1, 1]} : vector<2x512xf32> to vector<2x128xf32>
    %316 = arith.negf %315 : vector<2x128xf32>
    %317 = math.exp %316 : vector<2x128xf32>
    %cst_59 = arith.constant 1.000000e+00 : f32
    %318 = vector.broadcast %cst_59 : f32 to vector<2x128xf32>
    %319 = arith.addf %318, %317 : vector<2x128xf32>
    %320 = arith.divf %318, %319 : vector<2x128xf32>
    %321 = vector.extract_strided_slice %314 {offsets = [0, 128], sizes = [2, 128], strides = [1, 1]} : vector<2x512xf32> to vector<2x128xf32>
    %322 = arith.negf %321 : vector<2x128xf32>
    %323 = math.exp %322 : vector<2x128xf32>
    %cst_60 = arith.constant 1.000000e+00 : f32
    %324 = vector.broadcast %cst_60 : f32 to vector<2x128xf32>
    %325 = arith.addf %324, %323 : vector<2x128xf32>
    %326 = arith.divf %324, %325 : vector<2x128xf32>
    %327 = vector.extract_strided_slice %314 {offsets = [0, 256], sizes = [2, 128], strides = [1, 1]} : vector<2x512xf32> to vector<2x128xf32>
    %328 = math.tanh %327 : vector<2x128xf32>
    %329 = vector.extract_strided_slice %314 {offsets = [0, 384], sizes = [2, 128], strides = [1, 1]} : vector<2x512xf32> to vector<2x128xf32>
    %330 = arith.negf %329 : vector<2x128xf32>
    %331 = math.exp %330 : vector<2x128xf32>
    %cst_61 = arith.constant 1.000000e+00 : f32
    %332 = vector.broadcast %cst_61 : f32 to vector<2x128xf32>
    %333 = arith.addf %332, %331 : vector<2x128xf32>
    %334 = arith.divf %332, %333 : vector<2x128xf32>
    %335 = arith.mulf %326, %309 : vector<2x128xf32>
    %336 = arith.mulf %320, %328 : vector<2x128xf32>
    %337 = arith.addf %335, %336 : vector<2x128xf32>
    %338 = math.tanh %337 : vector<2x128xf32>
    %339 = arith.mulf %334, %338 : vector<2x128xf32>
    %340 = vector.extract_strided_slice %306 {offsets = [2, 0], sizes = [2, 512], strides = [1, 1]} : vector<16x512xf32> to vector<2x512xf32>
    %341 = vector.extract_strided_slice %307 {offsets = [12, 0], sizes = [2, 512], strides = [1, 1]} : vector<16x512xf32> to vector<2x512xf32>
    %342 = arith.addf %340, %341 : vector<2x512xf32>
    %cst_62 = arith.constant dense<0.000000e+00> : vector<2x512xf32>
    %343 = tpu.matmul %339, %302, %cst_62 {dimension_numbers = #tpu.dot_dimension_numbers<[1], [0], [0], [1], [0, 0, 1, 1], [], []>} : vector<2x128xf32>, vector<128x512xf32>, vector<2x512xf32> -> vector<2x512xf32>
    %344 = arith.addf %342, %343 : vector<2x512xf32>
    %345 = vector.extract_strided_slice %344 {offsets = [0, 0], sizes = [2, 128], strides = [1, 1]} : vector<2x512xf32> to vector<2x128xf32>
    %346 = arith.negf %345 : vector<2x128xf32>
    %347 = math.exp %346 : vector<2x128xf32>
    %cst_63 = arith.constant 1.000000e+00 : f32
    %348 = vector.broadcast %cst_63 : f32 to vector<2x128xf32>
    %349 = arith.addf %348, %347 : vector<2x128xf32>
    %350 = arith.divf %348, %349 : vector<2x128xf32>
    %351 = vector.extract_strided_slice %344 {offsets = [0, 128], sizes = [2, 128], strides = [1, 1]} : vector<2x512xf32> to vector<2x128xf32>
    %352 = arith.negf %351 : vector<2x128xf32>
    %353 = math.exp %352 : vector<2x128xf32>
    %cst_64 = arith.constant 1.000000e+00 : f32
    %354 = vector.broadcast %cst_64 : f32 to vector<2x128xf32>
    %355 = arith.addf %354, %353 : vector<2x128xf32>
    %356 = arith.divf %354, %355 : vector<2x128xf32>
    %357 = vector.extract_strided_slice %344 {offsets = [0, 256], sizes = [2, 128], strides = [1, 1]} : vector<2x512xf32> to vector<2x128xf32>
    %358 = math.tanh %357 : vector<2x128xf32>
    %359 = vector.extract_strided_slice %344 {offsets = [0, 384], sizes = [2, 128], strides = [1, 1]} : vector<2x512xf32> to vector<2x128xf32>
    %360 = arith.negf %359 : vector<2x128xf32>
    %361 = math.exp %360 : vector<2x128xf32>
    %cst_65 = arith.constant 1.000000e+00 : f32
    %362 = vector.broadcast %cst_65 : f32 to vector<2x128xf32>
    %363 = arith.addf %362, %361 : vector<2x128xf32>
    %364 = arith.divf %362, %363 : vector<2x128xf32>
    %365 = arith.mulf %356, %337 : vector<2x128xf32>
    %366 = arith.mulf %350, %358 : vector<2x128xf32>
    %367 = arith.addf %365, %366 : vector<2x128xf32>
    %368 = math.tanh %367 : vector<2x128xf32>
    %369 = arith.mulf %364, %368 : vector<2x128xf32>
    %370 = vector.extract_strided_slice %306 {offsets = [4, 0], sizes = [2, 512], strides = [1, 1]} : vector<16x512xf32> to vector<2x512xf32>
    %371 = vector.extract_strided_slice %307 {offsets = [10, 0], sizes = [2, 512], strides = [1, 1]} : vector<16x512xf32> to vector<2x512xf32>
    %372 = arith.addf %370, %371 : vector<2x512xf32>
    %cst_66 = arith.constant dense<0.000000e+00> : vector<2x512xf32>
    %373 = tpu.matmul %369, %302, %cst_66 {dimension_numbers = #tpu.dot_dimension_numbers<[1], [0], [0], [1], [0, 0, 1, 1], [], []>} : vector<2x128xf32>, vector<128x512xf32>, vector<2x512xf32> -> vector<2x512xf32>
    %374 = arith.addf %372, %373 : vector<2x512xf32>
    %375 = vector.extract_strided_slice %374 {offsets = [0, 0], sizes = [2, 128], strides = [1, 1]} : vector<2x512xf32> to vector<2x128xf32>
    %376 = arith.negf %375 : vector<2x128xf32>
    %377 = math.exp %376 : vector<2x128xf32>
    %cst_67 = arith.constant 1.000000e+00 : f32
    %378 = vector.broadcast %cst_67 : f32 to vector<2x128xf32>
    %379 = arith.addf %378, %377 : vector<2x128xf32>
    %380 = arith.divf %378, %379 : vector<2x128xf32>
    %381 = vector.extract_strided_slice %374 {offsets = [0, 128], sizes = [2, 128], strides = [1, 1]} : vector<2x512xf32> to vector<2x128xf32>
    %382 = arith.negf %381 : vector<2x128xf32>
    %383 = math.exp %382 : vector<2x128xf32>
    %cst_68 = arith.constant 1.000000e+00 : f32
    %384 = vector.broadcast %cst_68 : f32 to vector<2x128xf32>
    %385 = arith.addf %384, %383 : vector<2x128xf32>
    %386 = arith.divf %384, %385 : vector<2x128xf32>
    %387 = vector.extract_strided_slice %374 {offsets = [0, 256], sizes = [2, 128], strides = [1, 1]} : vector<2x512xf32> to vector<2x128xf32>
    %388 = math.tanh %387 : vector<2x128xf32>
    %389 = vector.extract_strided_slice %374 {offsets = [0, 384], sizes = [2, 128], strides = [1, 1]} : vector<2x512xf32> to vector<2x128xf32>
    %390 = arith.negf %389 : vector<2x128xf32>
    %391 = math.exp %390 : vector<2x128xf32>
    %cst_69 = arith.constant 1.000000e+00 : f32
    %392 = vector.broadcast %cst_69 : f32 to vector<2x128xf32>
    %393 = arith.addf %392, %391 : vector<2x128xf32>
    %394 = arith.divf %392, %393 : vector<2x128xf32>
    %395 = arith.mulf %386, %367 : vector<2x128xf32>
    %396 = arith.mulf %380, %388 : vector<2x128xf32>
    %397 = arith.addf %395, %396 : vector<2x128xf32>
    %398 = math.tanh %397 : vector<2x128xf32>
    %399 = arith.mulf %394, %398 : vector<2x128xf32>
    %400 = vector.extract_strided_slice %306 {offsets = [6, 0], sizes = [2, 512], strides = [1, 1]} : vector<16x512xf32> to vector<2x512xf32>
    %401 = vector.extract_strided_slice %307 {offsets = [8, 0], sizes = [2, 512], strides = [1, 1]} : vector<16x512xf32> to vector<2x512xf32>
    %402 = arith.addf %400, %401 : vector<2x512xf32>
    %cst_70 = arith.constant dense<0.000000e+00> : vector<2x512xf32>
    %403 = tpu.matmul %399, %302, %cst_70 {dimension_numbers = #tpu.dot_dimension_numbers<[1], [0], [0], [1], [0, 0, 1, 1], [], []>} : vector<2x128xf32>, vector<128x512xf32>, vector<2x512xf32> -> vector<2x512xf32>
    %404 = arith.addf %402, %403 : vector<2x512xf32>
    %405 = vector.extract_strided_slice %404 {offsets = [0, 0], sizes = [2, 128], strides = [1, 1]} : vector<2x512xf32> to vector<2x128xf32>
    %406 = arith.negf %405 : vector<2x128xf32>
    %407 = math.exp %406 : vector<2x128xf32>
    %cst_71 = arith.constant 1.000000e+00 : f32
    %408 = vector.broadcast %cst_71 : f32 to vector<2x128xf32>
    %409 = arith.addf %408, %407 : vector<2x128xf32>
    %410 = arith.divf %408, %409 : vector<2x128xf32>
    %411 = vector.extract_strided_slice %404 {offsets = [0, 128], sizes = [2, 128], strides = [1, 1]} : vector<2x512xf32> to vector<2x128xf32>
    %412 = arith.negf %411 : vector<2x128xf32>
    %413 = math.exp %412 : vector<2x128xf32>
    %cst_72 = arith.constant 1.000000e+00 : f32
    %414 = vector.broadcast %cst_72 : f32 to vector<2x128xf32>
    %415 = arith.addf %414, %413 : vector<2x128xf32>
    %416 = arith.divf %414, %415 : vector<2x128xf32>
    %417 = vector.extract_strided_slice %404 {offsets = [0, 256], sizes = [2, 128], strides = [1, 1]} : vector<2x512xf32> to vector<2x128xf32>
    %418 = math.tanh %417 : vector<2x128xf32>
    %419 = vector.extract_strided_slice %404 {offsets = [0, 384], sizes = [2, 128], strides = [1, 1]} : vector<2x512xf32> to vector<2x128xf32>
    %420 = arith.negf %419 : vector<2x128xf32>
    %421 = math.exp %420 : vector<2x128xf32>
    %cst_73 = arith.constant 1.000000e+00 : f32
    %422 = vector.broadcast %cst_73 : f32 to vector<2x128xf32>
    %423 = arith.addf %422, %421 : vector<2x128xf32>
    %424 = arith.divf %422, %423 : vector<2x128xf32>
    %425 = arith.mulf %416, %397 : vector<2x128xf32>
    %426 = arith.mulf %410, %418 : vector<2x128xf32>
    %427 = arith.addf %425, %426 : vector<2x128xf32>
    %428 = math.tanh %427 : vector<2x128xf32>
    %429 = arith.mulf %424, %428 : vector<2x128xf32>
    %430 = vector.extract_strided_slice %306 {offsets = [8, 0], sizes = [2, 512], strides = [1, 1]} : vector<16x512xf32> to vector<2x512xf32>
    %431 = vector.extract_strided_slice %307 {offsets = [6, 0], sizes = [2, 512], strides = [1, 1]} : vector<16x512xf32> to vector<2x512xf32>
    %432 = arith.addf %430, %431 : vector<2x512xf32>
    %cst_74 = arith.constant dense<0.000000e+00> : vector<2x512xf32>
    %433 = tpu.matmul %429, %302, %cst_74 {dimension_numbers = #tpu.dot_dimension_numbers<[1], [0], [0], [1], [0, 0, 1, 1], [], []>} : vector<2x128xf32>, vector<128x512xf32>, vector<2x512xf32> -> vector<2x512xf32>
    %434 = arith.addf %432, %433 : vector<2x512xf32>
    %435 = vector.extract_strided_slice %434 {offsets = [0, 0], sizes = [2, 128], strides = [1, 1]} : vector<2x512xf32> to vector<2x128xf32>
    %436 = arith.negf %435 : vector<2x128xf32>
    %437 = math.exp %436 : vector<2x128xf32>
    %cst_75 = arith.constant 1.000000e+00 : f32
    %438 = vector.broadcast %cst_75 : f32 to vector<2x128xf32>
    %439 = arith.addf %438, %437 : vector<2x128xf32>
    %440 = arith.divf %438, %439 : vector<2x128xf32>
    %441 = vector.extract_strided_slice %434 {offsets = [0, 128], sizes = [2, 128], strides = [1, 1]} : vector<2x512xf32> to vector<2x128xf32>
    %442 = arith.negf %441 : vector<2x128xf32>
    %443 = math.exp %442 : vector<2x128xf32>
    %cst_76 = arith.constant 1.000000e+00 : f32
    %444 = vector.broadcast %cst_76 : f32 to vector<2x128xf32>
    %445 = arith.addf %444, %443 : vector<2x128xf32>
    %446 = arith.divf %444, %445 : vector<2x128xf32>
    %447 = vector.extract_strided_slice %434 {offsets = [0, 256], sizes = [2, 128], strides = [1, 1]} : vector<2x512xf32> to vector<2x128xf32>
    %448 = math.tanh %447 : vector<2x128xf32>
    %449 = vector.extract_strided_slice %434 {offsets = [0, 384], sizes = [2, 128], strides = [1, 1]} : vector<2x512xf32> to vector<2x128xf32>
    %450 = arith.negf %449 : vector<2x128xf32>
    %451 = math.exp %450 : vector<2x128xf32>
    %cst_77 = arith.constant 1.000000e+00 : f32
    %452 = vector.broadcast %cst_77 : f32 to vector<2x128xf32>
    %453 = arith.addf %452, %451 : vector<2x128xf32>
    %454 = arith.divf %452, %453 : vector<2x128xf32>
    %455 = arith.mulf %446, %427 : vector<2x128xf32>
    %456 = arith.mulf %440, %448 : vector<2x128xf32>
    %457 = arith.addf %455, %456 : vector<2x128xf32>
    %458 = math.tanh %457 : vector<2x128xf32>
    %459 = arith.mulf %454, %458 : vector<2x128xf32>
    %460 = vector.extract_strided_slice %306 {offsets = [10, 0], sizes = [2, 512], strides = [1, 1]} : vector<16x512xf32> to vector<2x512xf32>
    %461 = vector.extract_strided_slice %307 {offsets = [4, 0], sizes = [2, 512], strides = [1, 1]} : vector<16x512xf32> to vector<2x512xf32>
    %462 = arith.addf %460, %461 : vector<2x512xf32>
    %cst_78 = arith.constant dense<0.000000e+00> : vector<2x512xf32>
    %463 = tpu.matmul %459, %302, %cst_78 {dimension_numbers = #tpu.dot_dimension_numbers<[1], [0], [0], [1], [0, 0, 1, 1], [], []>} : vector<2x128xf32>, vector<128x512xf32>, vector<2x512xf32> -> vector<2x512xf32>
    %464 = arith.addf %462, %463 : vector<2x512xf32>
    %465 = vector.extract_strided_slice %464 {offsets = [0, 0], sizes = [2, 128], strides = [1, 1]} : vector<2x512xf32> to vector<2x128xf32>
    %466 = arith.negf %465 : vector<2x128xf32>
    %467 = math.exp %466 : vector<2x128xf32>
    %cst_79 = arith.constant 1.000000e+00 : f32
    %468 = vector.broadcast %cst_79 : f32 to vector<2x128xf32>
    %469 = arith.addf %468, %467 : vector<2x128xf32>
    %470 = arith.divf %468, %469 : vector<2x128xf32>
    %471 = vector.extract_strided_slice %464 {offsets = [0, 128], sizes = [2, 128], strides = [1, 1]} : vector<2x512xf32> to vector<2x128xf32>
    %472 = arith.negf %471 : vector<2x128xf32>
    %473 = math.exp %472 : vector<2x128xf32>
    %cst_80 = arith.constant 1.000000e+00 : f32
    %474 = vector.broadcast %cst_80 : f32 to vector<2x128xf32>
    %475 = arith.addf %474, %473 : vector<2x128xf32>
    %476 = arith.divf %474, %475 : vector<2x128xf32>
    %477 = vector.extract_strided_slice %464 {offsets = [0, 256], sizes = [2, 128], strides = [1, 1]} : vector<2x512xf32> to vector<2x128xf32>
    %478 = math.tanh %477 : vector<2x128xf32>
    %479 = vector.extract_strided_slice %464 {offsets = [0, 384], sizes = [2, 128], strides = [1, 1]} : vector<2x512xf32> to vector<2x128xf32>
    %480 = arith.negf %479 : vector<2x128xf32>
    %481 = math.exp %480 : vector<2x128xf32>
    %cst_81 = arith.constant 1.000000e+00 : f32
    %482 = vector.broadcast %cst_81 : f32 to vector<2x128xf32>
    %483 = arith.addf %482, %481 : vector<2x128xf32>
    %484 = arith.divf %482, %483 : vector<2x128xf32>
    %485 = arith.mulf %476, %457 : vector<2x128xf32>
    %486 = arith.mulf %470, %478 : vector<2x128xf32>
    %487 = arith.addf %485, %486 : vector<2x128xf32>
    %488 = math.tanh %487 : vector<2x128xf32>
    %489 = arith.mulf %484, %488 : vector<2x128xf32>
    %490 = vector.extract_strided_slice %306 {offsets = [12, 0], sizes = [2, 512], strides = [1, 1]} : vector<16x512xf32> to vector<2x512xf32>
    %491 = vector.extract_strided_slice %307 {offsets = [2, 0], sizes = [2, 512], strides = [1, 1]} : vector<16x512xf32> to vector<2x512xf32>
    %492 = arith.addf %490, %491 : vector<2x512xf32>
    %cst_82 = arith.constant dense<0.000000e+00> : vector<2x512xf32>
    %493 = tpu.matmul %489, %302, %cst_82 {dimension_numbers = #tpu.dot_dimension_numbers<[1], [0], [0], [1], [0, 0, 1, 1], [], []>} : vector<2x128xf32>, vector<128x512xf32>, vector<2x512xf32> -> vector<2x512xf32>
    %494 = arith.addf %492, %493 : vector<2x512xf32>
    %495 = vector.extract_strided_slice %494 {offsets = [0, 0], sizes = [2, 128], strides = [1, 1]} : vector<2x512xf32> to vector<2x128xf32>
    %496 = arith.negf %495 : vector<2x128xf32>
    %497 = math.exp %496 : vector<2x128xf32>
    %cst_83 = arith.constant 1.000000e+00 : f32
    %498 = vector.broadcast %cst_83 : f32 to vector<2x128xf32>
    %499 = arith.addf %498, %497 : vector<2x128xf32>
    %500 = arith.divf %498, %499 : vector<2x128xf32>
    %501 = vector.extract_strided_slice %494 {offsets = [0, 128], sizes = [2, 128], strides = [1, 1]} : vector<2x512xf32> to vector<2x128xf32>
    %502 = arith.negf %501 : vector<2x128xf32>
    %503 = math.exp %502 : vector<2x128xf32>
    %cst_84 = arith.constant 1.000000e+00 : f32
    %504 = vector.broadcast %cst_84 : f32 to vector<2x128xf32>
    %505 = arith.addf %504, %503 : vector<2x128xf32>
    %506 = arith.divf %504, %505 : vector<2x128xf32>
    %507 = vector.extract_strided_slice %494 {offsets = [0, 256], sizes = [2, 128], strides = [1, 1]} : vector<2x512xf32> to vector<2x128xf32>
    %508 = math.tanh %507 : vector<2x128xf32>
    %509 = vector.extract_strided_slice %494 {offsets = [0, 384], sizes = [2, 128], strides = [1, 1]} : vector<2x512xf32> to vector<2x128xf32>
    %510 = arith.negf %509 : vector<2x128xf32>
    %511 = math.exp %510 : vector<2x128xf32>
    %cst_85 = arith.constant 1.000000e+00 : f32
    %512 = vector.broadcast %cst_85 : f32 to vector<2x128xf32>
    %513 = arith.addf %512, %511 : vector<2x128xf32>
    %514 = arith.divf %512, %513 : vector<2x128xf32>
    %515 = arith.mulf %506, %487 : vector<2x128xf32>
    %516 = arith.mulf %500, %508 : vector<2x128xf32>
    %517 = arith.addf %515, %516 : vector<2x128xf32>
    %518 = math.tanh %517 : vector<2x128xf32>
    %519 = arith.mulf %514, %518 : vector<2x128xf32>
    %520 = vector.extract_strided_slice %306 {offsets = [14, 0], sizes = [2, 512], strides = [1, 1]} : vector<16x512xf32> to vector<2x512xf32>
    %521 = vector.extract_strided_slice %307 {offsets = [0, 0], sizes = [2, 512], strides = [1, 1]} : vector<16x512xf32> to vector<2x512xf32>
    %522 = arith.addf %520, %521 : vector<2x512xf32>
    %cst_86 = arith.constant dense<0.000000e+00> : vector<2x512xf32>
    %523 = tpu.matmul %519, %302, %cst_86 {dimension_numbers = #tpu.dot_dimension_numbers<[1], [0], [0], [1], [0, 0, 1, 1], [], []>} : vector<2x128xf32>, vector<128x512xf32>, vector<2x512xf32> -> vector<2x512xf32>
    %524 = arith.addf %522, %523 : vector<2x512xf32>
    %525 = vector.extract_strided_slice %524 {offsets = [0, 0], sizes = [2, 128], strides = [1, 1]} : vector<2x512xf32> to vector<2x128xf32>
    %526 = arith.negf %525 : vector<2x128xf32>
    %527 = math.exp %526 : vector<2x128xf32>
    %cst_87 = arith.constant 1.000000e+00 : f32
    %528 = vector.broadcast %cst_87 : f32 to vector<2x128xf32>
    %529 = arith.addf %528, %527 : vector<2x128xf32>
    %530 = arith.divf %528, %529 : vector<2x128xf32>
    %531 = vector.extract_strided_slice %524 {offsets = [0, 128], sizes = [2, 128], strides = [1, 1]} : vector<2x512xf32> to vector<2x128xf32>
    %532 = arith.negf %531 : vector<2x128xf32>
    %533 = math.exp %532 : vector<2x128xf32>
    %cst_88 = arith.constant 1.000000e+00 : f32
    %534 = vector.broadcast %cst_88 : f32 to vector<2x128xf32>
    %535 = arith.addf %534, %533 : vector<2x128xf32>
    %536 = arith.divf %534, %535 : vector<2x128xf32>
    %537 = vector.extract_strided_slice %524 {offsets = [0, 256], sizes = [2, 128], strides = [1, 1]} : vector<2x512xf32> to vector<2x128xf32>
    %538 = math.tanh %537 : vector<2x128xf32>
    %539 = vector.extract_strided_slice %524 {offsets = [0, 384], sizes = [2, 128], strides = [1, 1]} : vector<2x512xf32> to vector<2x128xf32>
    %540 = arith.negf %539 : vector<2x128xf32>
    %541 = math.exp %540 : vector<2x128xf32>
    %cst_89 = arith.constant 1.000000e+00 : f32
    %542 = vector.broadcast %cst_89 : f32 to vector<2x128xf32>
    %543 = arith.addf %542, %541 : vector<2x128xf32>
    %544 = arith.divf %542, %543 : vector<2x128xf32>
    %545 = arith.mulf %536, %517 : vector<2x128xf32>
    %546 = arith.mulf %530, %538 : vector<2x128xf32>
    %547 = arith.addf %545, %546 : vector<2x128xf32>
    %548 = math.tanh %547 : vector<2x128xf32>
    %549 = arith.mulf %544, %548 : vector<2x128xf32>
    %c0_90 = arith.constant 0 : index
    %c0_91 = arith.constant 0 : index
    %550 = vector.load %arg9[%c0_90, %c0_91] : memref<1x128xf32, #tpu.memory_space<vmem>>, vector<1x128xf32>
    %551 = vector.broadcast %550 : vector<1x128xf32> to vector<2x128xf32>
    %552 = arith.mulf %549, %551 : vector<2x128xf32>
    %c0_92 = arith.constant 0 : index
    %c0_93 = arith.constant 0 : index
    %553 = vector.load %arg10[%c0_92, %c0_93] : memref<1x128xf32, #tpu.memory_space<vmem>>, vector<1x128xf32>
    %554 = vector.broadcast %553 : vector<1x128xf32> to vector<2x128xf32>
    %555 = arith.mulf %339, %554 : vector<2x128xf32>
    %556 = arith.addf %552, %555 : vector<2x128xf32>
    %cst_94 = arith.constant dense<0.000000e+00> : vector<2xf32>
    %557 = vector.multi_reduction <add>, %556, %cst_94 [1] : vector<2x128xf32> to vector<2xf32>
    %558 = vector.shape_cast %557 : vector<2xf32> to vector<2x1xf32>
    %c0_95 = arith.constant 0 : index
    %c0_96 = arith.constant 0 : index
    %559 = vector.load %arg11[%c0_95, %c0_96] : memref<1x1xf32, #tpu.memory_space<vmem>>, vector<1x1xf32>
    %560 = vector.broadcast %559 : vector<1x1xf32> to vector<2x1xf32>
    %561 = arith.addf %558, %560 : vector<2x1xf32>
    %c0_97 = arith.constant 0 : index
    %c0_98 = arith.constant 0 : index
    %562 = vector.load %arg12[%c0_97, %c0_98] : memref<2x1xf32, #tpu.memory_space<vmem>>, vector<2x1xf32>
    tpu.vector_store %arg12[%c0_97, %c0_98], %561 {strides = array<i32>} : memref<2x1xf32, #tpu.memory_space<vmem>>, vector<2x1xf32>,
    return
  }
}

</mosaic_0001>

<bundles_post_ra>
// kernel: bilstm_forward.1
= control target key start
LH: loop header
LB: loop body
LE: loop exit
PB: predicated region body
PF: predicated region fallthrough
CT: control target
= control target key end

     0   :  { %s7019_s0 = inlined_call_operand.vmem [shape: f32[2,8,3], index: 0, kind: input, shape index: {}]   ;;  %s7020_s1 = inlined_call_operand.vmem [shape: f32[3,512], index: 1, kind: input, shape index: {}]   ;;  %s7021_s2 = inlined_call_operand.vmem [shape: f32[3,512], index: 2, kind: input, shape index: {}]   ;;  %s7022_s3 = inlined_call_operand.hbm [shape: f32[128,512], index: 3, kind: input, shape index: {}]   ;;  %s7023_s4 = inlined_call_operand.vmem [shape: f32[1,512], index: 4, kind: input, shape index: {}]   ;;  %s7024_s5 = inlined_call_operand.hbm [shape: f32[128,512], index: 5, kind: input, shape index: {}]   ;;  %s7025_s6 = inlined_call_operand.hbm [shape: f32[128,512], index: 6, kind: input, shape index: {}]   ;;  %s7026_s7 = inlined_call_operand.hbm [shape: f32[128,512], index: 7, kind: input, shape index: {}]   ;;  %s7027_s8 = inlined_call_operand.vmem [shape: f32[1,512], index: 8, kind: input, shape index: {}]   ;;  %s7028_s9 = inlined_call_operand.vmem [shape: f32[1,128], index: 9, kind: input, shape index: {}]   ;;  %s7029_s10 = inlined_call_operand.vmem [shape: f32[1,128], index: 10, kind: input, shape index: {}]   ;;  %s7030_s11 = inlined_call_operand.<no memory space> [shape: f32[1,1], index: 11, kind: input, shape index: {}]   ;;  %s7031_s12 = inlined_call_operand.vmem [shape: f32[2,1], index: 12, kind: output, shape index: {}]  }
   0x1   :  { %v17_v0 = vstv %s7030_s11 }
   0x2   :  { %18 = vst [vmem:[#allocation2] sm:$0x1] %v17_v0 }
   0x3   :  { %19 = vsyncpa [#allocation4], 0 }
   0x4   :  { %20 = vsyncpa [#allocation6], 0 }
   0x5   :  { %21 = vsyncpa [#allocation9], 0  ;;  %s5827_s23 = smov [#allocation5]   ;;  %s5828_s25 = smov [#allocation3]  }
   0x6   :  { %s47_s24 = sshll.u32 %s5827_s23, 4  ;;  %s33_s26 = sshll.u32 %s5828_s25, 4  ;;  %s48_s24 = int_to_ptr.vmem [resolvable:$true] %s47_s24  ;;  %s5902_s26 = int_to_ptr.vmem [resolvable:$true] %s33_s26 }
   0x7   :  { %s5733_s29 = scalar_lea.hbm %s7024_s5, 8192 }
   0x8   :  { %p5734_p0 = scmp.ne.s32.totalorder %s7024_s5, %s5733_s29  ;;  %p5737_p1 = scmp.lt.u32.totalorder %s5733_s29, %s7024_s5 }
   0xa   :  { %p5739_p2 = pnand %p5737_p1, %p5734_p0 }
   0xc   :  { %5742 = shalt.err (!%p5739_p2)
}
   0xd   :  { %s5743_s15 = scalar_lea.vmem %s48_s24, 8192  ;;  %p5748_p4 = scmp.lt.s32.totalorder %s48_s24, %s48_s24 }
   0xe   :  { %p5744_p3 = scmp.ne.s32.totalorder %s48_s24, %s5743_s15  ;;  %p5749_p5 = scmp.lt.s32.totalorder %s5743_s15, %s5743_s15 }
  0x10   :  { %p5750_p6 = por %p5749_p5, %p5748_p4 }
  0x12   :  { %p5751_p7 = pnand %p5750_p6, %p5744_p3 }
  0x14   :  { %5754 = shalt.err (!%p5751_p7)
}
  0x15   :  { %s5829_s16 = smov 512   ;;  %s5830_s17 = smov 32  }
  0x16   :  { %53 = dma.hbm_to_vmem [thread:$0]  %s7024_s5, 8192, %s48_s24, [#allocation6], %s5829_s16, %s5829_s16, %s5830_s17  }
  0x17   :  { %s5755_s22 = scalar_lea.hbm %s7022_s3, 8192 }
  0x18   :  { %p5756_p8 = scmp.ne.s32.totalorder %s7022_s3, %s5755_s22  ;;  %p5759_p9 = scmp.lt.u32.totalorder %s5755_s22, %s7022_s3 }
  0x1a   :  { %p5761_p10 = pnand %p5759_p9, %p5756_p8 }
  0x1c   :  { %5764 = shalt.err (!%p5761_p10)
}
  0x1d   :  { %s5765_s29 = scalar_lea.vmem %s5902_s26, 8192  ;;  %p5770_p12 = scmp.lt.s32.totalorder %s5902_s26, %s5902_s26 }
  0x1e   :  { %p5766_p11 = scmp.ne.s32.totalorder %s5902_s26, %s5765_s29  ;;  %p5771_p13 = scmp.lt.s32.totalorder %s5765_s29, %s5765_s29 }
  0x20   :  { %p5772_p0 = por %p5771_p13, %p5770_p12 }
  0x22   :  { %p5773_p1 = pnand %p5772_p0, %p5766_p11 }
  0x24   :  { %5776 = shalt.err (!%p5773_p1)
}
  0x25   :  { %39 = dma.hbm_to_vmem [thread:$0]  %s7022_s3, 8192, %s5902_s26, [#allocation4], %s5829_s16, %s5829_s16, %s5830_s17  }
  0x26   :  { %s5831_s30 = smov [#allocation7]   ;;  %s5832_s11 = smov [#allocation8]  }
  0x27   :  { %s59_s13 = sshll.u32 %s5831_s30, 4  ;;  %s71_s14 = sshll.u32 %s5832_s11, 4  ;;  %s60_s13 = int_to_ptr.vmem [resolvable:$true] %s59_s13  ;;  %s5939_s14 = int_to_ptr.vmem [resolvable:$true] %s71_s14 }
  0x28   :  { %s5777_s19 = scalar_lea.hbm %s7025_s6, 8192 }
  0x29   :  { %p5778_p2 = scmp.ne.s32.totalorder %s7025_s6, %s5777_s19  ;;  %p5781_p3 = scmp.lt.u32.totalorder %s5777_s19, %s7025_s6 }
  0x2b   :  { %p5783_p4 = pnand %p5781_p3, %p5778_p2 }
  0x2d   :  { %5786 = shalt.err (!%p5783_p4)
}
  0x2e   :  { %s5787_s3 = scalar_lea.vmem %s60_s13, 8192  ;;  %p5792_p6 = scmp.lt.s32.totalorder %s60_s13, %s60_s13 }
  0x2f   :  { %p5788_p5 = scmp.ne.s32.totalorder %s60_s13, %s5787_s3  ;;  %p5793_p7 = scmp.lt.s32.totalorder %s5787_s3, %s5787_s3 }
  0x31   :  { %p5794_p8 = por %p5793_p7, %p5792_p6 }
  0x33   :  { %p5795_p9 = pnand %p5794_p8, %p5788_p5 }
  0x35   :  { %5798 = shalt.err (!%p5795_p9)
}
  0x36   :  { %65 = dma.hbm_to_vmem [thread:$0]  %s7025_s6, 8192, %s60_s13, [#allocation6], %s5829_s16, %s5829_s16, %s5830_s17  }
  0x37   :  { %s5799_s29 = scalar_lea.hbm %s7026_s7, 8192 }
  0x38   :  { %p5800_p10 = scmp.ne.s32.totalorder %s7026_s7, %s5799_s29  ;;  %p5803_p11 = scmp.lt.u32.totalorder %s5799_s29, %s7026_s7 }
  0x3a   :  { %p5805_p12 = pnand %p5803_p11, %p5800_p10 }
  0x3c   :  { %5808 = shalt.err (!%p5805_p12)
}
  0x3d   :  { %s5809_s15 = scalar_lea.vmem %s5939_s14, 8192  ;;  %p5814_p0 = scmp.lt.s32.totalorder %s5939_s14, %s5939_s14 }
  0x3e   :  { %p5810_p13 = scmp.ne.s32.totalorder %s5939_s14, %s5809_s15  ;;  %p5815_p1 = scmp.lt.s32.totalorder %s5809_s15, %s5809_s15 }
  0x40   :  { %p5816_p2 = por %p5815_p1, %p5814_p0 }
  0x42   :  { %p5817_p3 = pnand %p5816_p2, %p5810_p13 }
  0x44   :  { %5820 = shalt.err (!%p5817_p3)
}
  0x45   :  { %77 = dma.hbm_to_vmem [thread:$0]  %s7026_s7, 8192, %s5939_s14, [#allocation9], %s5829_s16, %s5829_s16, %s5830_s17  }
  0x46   :  { %5821 = dma.done.wait [#allocation4], 8192  }
  0x47   :  { %5822 = vsyncadd [#allocation4], 4294959104 }
  0x48   :  { %5823 = dma.done.wait [#allocation6], 16384  }
  0x49   :  { %5824 = vsyncadd [#allocation6], 4294950912 }
  0x4a   :  { %5825 = dma.done.wait [#allocation9], 8192  }
  0x4b   :  { %5826 = vsyncadd [#allocation9], 4294959104  ;;  %v7037_v1 = vmov 0.0   ;;  %vm246_vm0 = vcmask 1042432   ;;  %vm103_vm1 = vcmask 1041409   ;;  %vm108_vm2 = vcmask 1043459  }
  0x4c   :  { %319 = vmatprep.mubr.f32.mxu0 %v7037_v1  ;;  %396 = vmatprep.mubr.f32.mxu1 %v7037_v1  ;;  %vm113_vm3 = vcmask 1045509   ;;  %vm118_vm4 = vcmask 1047559   ;;  %vm136_vm5 = vcmask 1041408   ;;  %vm138_vm6 = vcmask 1043456   ;;  %v145_v2 = vld [vmem:[%s7020_s1] sm:$0x77] }
  0x4d   :  { %vm140_vm7 = vcmask 1045504   ;;  %v146_v3 = vld [vmem:[%s7020_s1 + $0x8] sm:$0x77]  ;;  %v147_v4 = vld [vmem:[%s7021_s2] sm:$0x77]  ;;  %v237_v5 = vcombine.high %v145_v2, %v145_v2  ;;  %vm239_vm8 = vcmask 23552  }
  0x4e   :  { %v238_v6 = vcombine.high %v146_v3, %v146_v3  ;;  %v411_v7 = vcombine.high %v147_v4, %v147_v4  ;;  %v98_v8 = vld [vmem:[%s7019_s0] sm:$0xff]  ;;  %v99_v9 = vld [vmem:[%s7019_s0 + $0x8] sm:$0xff]  ;;  %v151_v48 = vld [vmem:[#allocation3 + $0x10] sm:$0xff]  ;;  %vm4225_vm10 = vcmask 1047558   ;;  %vm4237_vm11 = vcmask 7174  }
  0x4f   :  { %v102_v10 = vrot.slane %v99_v9, 7  ;;  %v106_v11 = vrot.slane %v98_v8, 7  ;;  %v107_v12 = vrot.slane %v99_v9, 6  ;;  %v111_v13 = vrot.slane %v98_v8, 6  ;;  %4246 = vmatprep.subr.msk.mxu0 %vm246_vm0, %v237_v5  ;;  %v148_v22 = vld [vmem:[%s7021_s2 + $0x8] sm:$0x77] }
  0x50   :  { %4250 = vmatprep.subr.msk.mxu1 %vm246_vm0, %v238_v6  ;;  %v112_v14 = vrot.slane %v99_v9, 5  ;;  %v116_v15 = vrot.slane %v98_v8, 5  ;;  %v117_v16 = vrot.slane %v99_v9, 4  ;;  %v121_v17 = vrot.slane %v98_v8, 4  ;;  %4247 = vmatpush1.msk.msra.mxu0 %vm246_vm0, %v145_v2  ;;  %v150_v27 = vld [vmem:[#allocation3 + $0x8] sm:$0xff]  ;;  %v152_v37 = vld [vmem:[#allocation3 + $0x18] sm:$0xff] }
  0x51   :  { %4251 = vmatpush1.msk.msra.mxu1 %vm246_vm0, %v146_v3  ;;  %v104_v18 = vsel %vm103_vm1, %v102_v10, %v98_v8  ;;  %v109_v19 = vsel %vm108_vm2, %v107_v12, %v106_v11  ;;  %v122_v20 = vrot.slane %v99_v9, 3  ;;  %v125_v21 = vrot.slane %v98_v8, 3  ;;  %4254 = vmatprep.subr.msk.mxu0 %vm246_vm0, %v411_v7  ;;  %v154_v28 = vld [vmem:[#allocation3 + $0x28] sm:$0xff]  ;;  %v156_v38 = vld [vmem:[#allocation3 + $0x38] sm:$0xff]  ;;  %v149_v44 = vld [vmem:[#allocation3] sm:$0xff] }
  0x52   :  { %v114_v23 = vsel %vm113_vm3, %v112_v14, %v111_v13  ;;  %v119_v24 = vsel %vm118_vm4, %v117_v16, %v116_v15  ;;  %v137_v25 = vsel %vm136_vm5, %v104_v18, %v109_v19  ;;  %v126_v26 = vrot.slane %v99_v9, 2  ;;  %v153_v47 = vld [vmem:[#allocation3 + $0x20] sm:$0xff]  ;;  %v155_v49 = vld [vmem:[#allocation3 + $0x30] sm:$0xff]  ;;  %v158_v50 = vld [vmem:[#allocation3 + $0x48] sm:$0xff] }
  0x53   :  { %v139_v29 = vsel %vm138_vm6, %v137_v25, %v114_v23  ;;  %v123_v30 = vsel %vm103_vm1, %v122_v20, %v121_v17  ;;  %v129_v31 = vrot.slane %v98_v8, 2  ;;  %v130_v32 = vrot.slane %v99_v9, 1  ;;  %v162_v51 = vld [vmem:[#allocation3 + $0x68] sm:$0xff]  ;;  %v160_v52 = vld [vmem:[#allocation3 + $0x58] sm:$0xff]  ;;  %v157_v56 = vld [vmem:[#allocation3 + $0x40] sm:$0xff] }
  0x54   :  { %v141_v33 = vsel %vm140_vm7, %v139_v29, %v119_v24  ;;  %v127_v34 = vsel %vm108_vm2, %v126_v26, %v125_v21  ;;  %v133_v35 = vrot.slane %v98_v8, 1  ;;  %v412_v36 = vcombine.high %v148_v22, %v148_v22  ;;  %v164_v53 = vld [vmem:[#allocation3 + $0x78] sm:$0xff]  ;;  %v161_v57 = vld [vmem:[#allocation3 + $0x60] sm:$0xff]  ;;  %v159_v59 = vld [vmem:[#allocation3 + $0x50] sm:$0xff] }
  0x55   :  { %4248 = vmatmul.mubr.msk.f32.vlgmr.msra.gmra.mrb[0].mxu0 %vm239_vm8, %v141_v33  ;;  %4252 = vmatmul.mubr.msk.f32.vlgmr.msra.gmra.mrb[0].mxu1 %vm239_vm8, %v141_v33  ;;  %v131_v39 = vsel %vm113_vm3, %v130_v32, %v129_v31  ;;  %v142_v40 = vsel %vm136_vm5, %v123_v30, %v127_v34  ;;  %v6014_v41 = vpack.c.bf16 %v154_v28, %v150_v27  ;;  %v163_v60 = vld [vmem:[#allocation3 + $0x70] sm:$0xff]  ;;  %v166_v61 = vld [vmem:[#allocation3 + $0x88] sm:$0xff]  ;;  %v168_v0 = vld [vmem:[#allocation3 + $0x98] sm:$0xff] }
  0x56   :  { %4255 = vmatpush1.msk.msra.mxu0 %vm246_vm0, %v147_v4  ;;  %325 = vmatprep.mubr.f32.mxu0 %v7037_v1  ;;  %v134_v42 = vsel %vm118_vm4, %v99_v9, %v133_v35  ;;  %v143_v43 = vsel %vm138_vm6, %v142_v40, %v131_v39  ;;  %v6023_v46 = vpack.c.bf16 %v156_v38, %v152_v37  ;;  %v170_v63 = vld [vmem:[#allocation3 + $0xa8] sm:$0xff]  ;;  %v172_v2 = vld [vmem:[#allocation3 + $0xb8] sm:$0xff]  ;;  %v165_v5 = vld [vmem:[#allocation3 + $0x80] sm:$0xff] }
  0x57   :  { %402 = vmatprep.mubr.f32.mxu1 %v7037_v1  ;;  %v144_v45 = vsel %vm140_vm7, %v143_v43, %v134_v42  ;;  %4258 = vmatprep.subr.msk.mxu1 %vm246_vm0, %v412_v36  ;;  %v6031_v54 = vpack.c.bf16 %v153_v47, %v149_v44  ;;  %v6033_v55 = vpack.c.bf16 %v155_v49, %v151_v48  ;;  %v169_v6 = vld [vmem:[#allocation3 + $0xa0] sm:$0xff]  ;;  %v167_v9 = vld [vmem:[#allocation3 + $0x90] sm:$0xff]  ;;  %v174_v11 = vld [vmem:[#allocation3 + $0xc8] sm:$0xff] }
  0x58   :  { %4259 = vmatpush1.msk.msra.mxu1 %vm246_vm0, %v148_v22  ;;  %4315 = vmatprep.subr.bf16.mxu0 %v6014_v41  ;;  %v6036_v58 = vpack.c.bf16 %v162_v51, %v158_v50  ;;  %v6038_v62 = vpack.c.bf16 %v164_v53, %v160_v52  ;;  %v6044_v3 = vpack.c.bf16 %v161_v57, %v157_v56  ;;  %v171_v10 = vld [vmem:[#allocation3 + $0xb0] sm:$0xff]  ;;  %v178_v12 = vld [vmem:[#allocation3 + $0xe8] sm:$0xff]  ;;  %v176_v13 = vld [vmem:[#allocation3 + $0xd8] sm:$0xff] }
  0x59   :  { %4249 = vmatmul.mubr.msk.f32.gmra.mrb[2].mxu0 %vm239_vm8, %v144_v45  ;;  %4253 = vmatmul.mubr.msk.f32.gmra.mrb[2].mxu1 %vm239_vm8, %v144_v45  ;;  %v6046_v4 = vpack.c.bf16 %v163_v60, %v159_v59  ;;  %v6050_v7 = vpack.c.bf16 %v170_v63, %v166_v61  ;;  %v6052_v8 = vpack.c.bf16 %v172_v2, %v168_v0  ;;  %v180_v14 = vld [vmem:[#allocation3 + $0xf8] sm:$0xff]  ;;  %v173_v17 = vld [vmem:[#allocation3 + $0xc0] sm:$0xff]  ;;  %v175_v21 = vld [vmem:[#allocation3 + $0xd0] sm:$0xff] }
  0x5a   :  { %485 = vmatprep.mubr.f32.mxu0 %v7037_v1  ;;  %562 = vmatprep.mubr.f32.mxu1 %v7037_v1  ;;  %v6060_v15 = vpack.c.bf16 %v169_v6, %v165_v5  ;;  %v6062_v16 = vpack.c.bf16 %v171_v10, %v167_v9  ;;  %v177_v18 = vld [vmem:[#allocation3 + $0xe0] sm:$0xff]  ;;  %v6066_v19 = vpack.c.bf16 %v178_v12, %v174_v11  ;;  %v179_v22 = vld [vmem:[#allocation3 + $0xf0] sm:$0xff]  ;;  %v182_v23 = vld [vmem:[#allocation3 + $0x108] sm:$0xff] }
  0x5b   :  { %4347 = vmatprep.subr.bf16.mxu1 %v6023_v46  ;;  %v6068_v20 = vpack.c.bf16 %v180_v14, %v176_v13  ;;  %v186_v24 = vld [vmem:[#allocation3 + $0x128] sm:$0xff]  ;;  %v184_v25 = vld [vmem:[#allocation3 + $0x118] sm:$0xff]  ;;  %v6074_v27 = vpack.c.bf16 %v177_v18, %v173_v17  ;;  %v6076_v28 = vpack.c.bf16 %v179_v22, %v175_v21  ;;  %v181_v29 = vld [vmem:[#allocation3 + $0x100] sm:$0xff] }
  0x5c   :  { %v188_v26 = vld [vmem:[#allocation3 + $0x138] sm:$0xff]  ;;  %v185_v30 = vld [vmem:[#allocation3 + $0x120] sm:$0xff]  ;;  %v6080_v31 = vpack.c.bf16 %v186_v24, %v182_v23  ;;  %v187_v34 = vld [vmem:[#allocation3 + $0x130] sm:$0xff]  ;;  %v7035_v24 = vlaneseq }
  0x5d   :  { %4256 = vmatmul.mubr.msk.f32.vlgmr.msra.gmra.mrb[4].mxu0 %vm239_vm8, %v141_v33  ;;  %4260 = vmatmul.mubr.msk.f32.vlgmr.msra.gmra.mrb[4].mxu1 %vm239_vm8, %v141_v33  ;;  %v6082_v32 = vpack.c.bf16 %v188_v26, %v184_v25  ;;  %v183_v33 = vld [vmem:[#allocation3 + $0x110] sm:$0xff]  ;;  %v190_v35 = vld [vmem:[#allocation3 + $0x148] sm:$0xff]  ;;  %v192_v37 = vld [vmem:[#allocation3 + $0x158] sm:$0xff]  ;;  %v6086_v39 = vpack.c.bf16 %v185_v30, %v181_v29 }
  0x5e   :  { %4317 = vmatpush1.bf16.msra.mxu0 %v6031_v54  ;;  %4349 = vmatpush1.bf16.msra.mxu1 %v6033_v55  ;;  %v194_v36 = vld [vmem:[#allocation3 + $0x168] sm:$0xff]  ;;  %v196_v38 = vld [vmem:[#allocation3 + $0x178] sm:$0xff]  ;;  %v6088_v40 = vpack.c.bf16 %v187_v34, %v183_v33  ;;  %v189_v42 = vld [vmem:[#allocation3 + $0x140] sm:$0xff]  ;;  %v6169_v25 = vshrl.u32 %v7035_v24, 7 }
  0x5f   :  { %491 = vmatprep.mubr.f32.mxu0 %v7037_v1  ;;  %4319 = vmatprep.subr.bf16.mxu0 %v6036_v58  ;;  %v193_v43 = vld [vmem:[#allocation3 + $0x160] sm:$0xff]  ;;  %v6092_v44 = vpack.c.bf16 %v194_v36, %v190_v35  ;;  %v191_v47 = vld [vmem:[#allocation3 + $0x150] sm:$0xff]  ;;  %v198_v49 = vld [vmem:[#allocation3 + $0x188] sm:$0xff] }
  0x60   :  { %4351 = vmatprep.subr.bf16.mxu1 %v6038_v62  ;;  %568 = vmatprep.mubr.f32.mxu1 %v7037_v1  ;;  %v195_v48 = vld [vmem:[#allocation3 + $0x170] sm:$0xff]  ;;  %v202_v50 = vld [vmem:[#allocation3 + $0x1a8] sm:$0xff]  ;;  %v200_v51 = vld [vmem:[#allocation3 + $0x198] sm:$0xff]  ;;  %v6098_v53 = vpack.c.bf16 %v193_v43, %v189_v42  ;;  %7052 = vst [vmem:[#allocation13_spill] sm:$0xff] %v6169_v25  ;;  %v7034_v26 = vsub.s32 0, %v6169_v25  ;;  %v7033_v29 = vsub.s32 2, %v6169_v25 }
  0x61   :  { %4257 = vmatmul.mubr.msk.f32.gmra.mrb[6].mxu0 %vm239_vm8, %v144_v45  ;;  %4261 = vmatmul.mubr.msk.f32.gmra.mrb[6].mxu1 %vm239_vm8, %v144_v45  ;;  %v6094_v45 = vpack.c.bf16 %v196_v38, %v192_v37  ;;  %v204_v52 = vld [vmem:[#allocation3 + $0x1b8] sm:$0xff]  ;;  %v6100_v56 = vpack.c.bf16 %v195_v48, %v191_v47  ;;  %v197_v57 = vld [vmem:[#allocation3 + $0x180] sm:$0xff]  ;;  %v6104_v60 = vpack.c.bf16 %v202_v50, %v198_v49  ;;  %v199_v63 = vld [vmem:[#allocation3 + $0x190] sm:$0xff]  ;;  %v7032_v34 = vsub.s32 1, %v6169_v25 }
  0x62   :  { %4321 = vmatpush1.bf16.msra.mxu0 %v6044_v3  ;;  %4353 = vmatpush1.bf16.msra.mxu1 %v6046_v4  ;;  %v201_v59 = vld [vmem:[#allocation3 + $0x1a0] sm:$0xff]  ;;  %v6106_v61 = vpack.c.bf16 %v204_v52, %v200_v51  ;;  %v203_v0 = vld [vmem:[#allocation3 + $0x1b0] sm:$0xff]  ;;  %v206_v2 = vld [vmem:[#allocation3 + $0x1c8] sm:$0xff]  ;;  %v7036_v36 = vsub.s32 3, %v6169_v25 }
  0x63   :  { %4323 = vmatprep.subr.bf16.mxu0 %v6050_v7  ;;  %4355 = vmatprep.subr.bf16.mxu1 %v6052_v8  ;;  %v210_v5 = vld [vmem:[#allocation3 + $0x1e8] sm:$0xff]  ;;  %v208_v6 = vld [vmem:[#allocation3 + $0x1d8] sm:$0xff]  ;;  %v6110_v10 = vpack.c.bf16 %v201_v59, %v197_v57  ;;  %v6112_v11 = vpack.c.bf16 %v203_v0, %v199_v63  ;;  %v205_v12 = vld [vmem:[#allocation3 + $0x1c0] sm:$0xff] }
  0x64   :  { %655 = vmatprep.mubr.f32.mxu0 %v7037_v1  ;;  %726 = vmatprep.mubr.f32.mxu1 %v7037_v1  ;;  %v212_v9 = vld [vmem:[#allocation3 + $0x1f8] sm:$0xff]  ;;  %v6116_v13 = vpack.c.bf16 %v210_v5, %v206_v2  ;;  %v209_v17 = vld [vmem:[#allocation3 + $0x1e0] sm:$0xff]  ;;  %v207_v18 = vld [vmem:[#allocation3 + $0x1d0] sm:$0xff] }
  0x65   :  { %v6118_v14 = vpack.c.bf16 %v212_v9, %v208_v6  ;;  %v211_v21 = vld [vmem:[#allocation3 + $0x1f0] sm:$0xff]  ;;  %v6122_v22 = vpack.c.bf16 %v209_v17, %v205_v12  ;;  %v213_v30 = vld [vmem:[%s7023_s4] sm:$0xf] }
  0x66   :  { %4325 = vmatpush1.bf16.msra.mxu0 %v6060_v15  ;;  %4357 = vmatpush1.bf16.msra.mxu1 %v6062_v16  ;;  %v6124_v23 = vpack.c.bf16 %v211_v21, %v207_v18  ;;  %v218_v42 = vrot.slane %v213_v30, %v7034_v26  ;;  %v226_v43 = vrot.slane %v213_v30, %v7033_v29 }
  0x67   :  { %4327 = vmatprep.subr.bf16.mxu0 %v6066_v19  ;;  %4359 = vmatprep.subr.bf16.mxu1 %v6068_v20  ;;  %v222_v47 = vrot.slane %v213_v30, %v7032_v34  ;;  %v230_v49 = vrot.slane %v213_v30, %v7036_v36 }
  0x6a   :  { %4329 = vmatpush1.bf16.msra.mxu0 %v6074_v27  ;;  %4361 = vmatpush1.bf16.msra.mxu1 %v6076_v28 }
  0x6b   :  { %4331 = vmatprep.subr.bf16.mxu0 %v6080_v31  ;;  %4363 = vmatprep.subr.bf16.mxu1 %v6082_v32 }
  0x6e   :  { %4333 = vmatpush1.bf16.msra.mxu0 %v6086_v39  ;;  %4365 = vmatpush1.bf16.msra.mxu1 %v6088_v40 }
  0x6f   :  { %4335 = vmatprep.subr.bf16.mxu0 %v6092_v44  ;;  %4367 = vmatprep.subr.bf16.mxu1 %v6094_v45 }
  0x72   :  { %4337 = vmatpush1.bf16.msra.mxu0 %v6098_v53  ;;  %4369 = vmatpush1.bf16.msra.mxu1 %v6100_v56 }
  0x73   :  { %4339 = vmatprep.subr.bf16.mxu0 %v6104_v60  ;;  %4371 = vmatprep.subr.bf16.mxu1 %v6106_v61 }
  0x76   :  { %4341 = vmatpush1.bf16.msra.mxu0 %v6110_v10  ;;  %4373 = vmatpush1.bf16.msra.mxu1 %v6112_v11 }
  0x77   :  { %4343 = vmatprep.subr.bf16.mxu0 %v6116_v13  ;;  %4375 = vmatprep.subr.bf16.mxu1 %v6118_v14 }
  0x7a   :  { %4345 = vmatpush1.bf16.msra.mxu0 %v6122_v22  ;;  %4377 = vmatpush1.bf16.msra.mxu1 %v6124_v23 }
  0x7b   :  { %4379 = vmatprep.subr.bf16.mxu0 %v6014_v41  ;;  %4411 = vmatprep.subr.bf16.mxu1 %v6023_v46 }
  0x7d   :  { %656 = vmatmul.mubr.f32.vlgmr.msra.gmra.mrb[8].mxu0 %v7037_v1  ;;  %727 = vmatmul.mubr.f32.vlgmr.msra.gmra.mrb[8].mxu1 %v7037_v1 }
  0x7e   :  { %4381 = vmatpush1.bf16.msra.mxu0 %v6031_v54  ;;  %4413 = vmatpush1.bf16.msra.mxu1 %v6033_v55 }
  0x7f   :  { %4383 = vmatprep.subr.bf16.mxu0 %v6036_v58  ;;  %4415 = vmatprep.subr.bf16.mxu1 %v6038_v62 }
  0x80   :  { %837 = vmatprep.mubr.f32.mxu0 %v7037_v1  ;;  %908 = vmatprep.mubr.f32.mxu1 %v7037_v1 }
  0x82   :  { %4385 = vmatpush1.bf16.msra.mxu0 %v6044_v3  ;;  %4417 = vmatpush1.bf16.msra.mxu1 %v6046_v4 }
  0x83   :  { %4387 = vmatprep.subr.bf16.mxu0 %v6050_v7  ;;  %4419 = vmatprep.subr.bf16.mxu1 %v6052_v8 }
  0x86   :  { %4389 = vmatpush1.bf16.msra.mxu0 %v6060_v15  ;;  %4421 = vmatpush1.bf16.msra.mxu1 %v6062_v16 }
  0x87   :  { %4391 = vmatprep.subr.bf16.mxu0 %v6066_v19  ;;  %4423 = vmatprep.subr.bf16.mxu1 %v6068_v20 }
  0x8a   :  { %4393 = vmatpush1.bf16.msra.mxu0 %v6074_v27  ;;  %4425 = vmatpush1.bf16.msra.mxu1 %v6076_v28 }
  0x8b   :  { %4395 = vmatprep.subr.bf16.mxu0 %v6080_v31  ;;  %4427 = vmatprep.subr.bf16.mxu1 %v6082_v32 }
  0x8e   :  { %4397 = vmatpush1.bf16.msra.mxu0 %v6086_v39  ;;  %4429 = vmatpush1.bf16.msra.mxu1 %v6088_v40 }
  0x8f   :  { %4399 = vmatprep.subr.bf16.mxu0 %v6092_v44  ;;  %4431 = vmatprep.subr.bf16.mxu1 %v6094_v45 }
  0x92   :  { %4401 = vmatpush1.bf16.msra.mxu0 %v6098_v53  ;;  %4433 = vmatpush1.bf16.msra.mxu1 %v6100_v56 }
  0x93   :  { %4403 = vmatprep.subr.bf16.mxu0 %v6104_v60  ;;  %4435 = vmatprep.subr.bf16.mxu1 %v6106_v61 }
  0x96   :  { %4405 = vmatpush1.bf16.msra.mxu0 %v6110_v10  ;;  %4437 = vmatpush1.bf16.msra.mxu1 %v6112_v11 }
  0x97   :  { %4407 = vmatprep.subr.bf16.mxu0 %v6116_v13  ;;  %4439 = vmatprep.subr.bf16.mxu1 %v6118_v14 }
  0x9a   :  { %4409 = vmatpush1.bf16.msra.mxu0 %v6122_v22  ;;  %4441 = vmatpush1.bf16.msra.mxu1 %v6124_v23 }
  0x9b   :  { %4443 = vmatprep.subr.bf16.mxu0 %v6014_v41  ;;  %4475 = vmatprep.subr.bf16.mxu1 %v6023_v46 }
 0x128   :  { %v321_v33 = vpop.f32.mrb[0].mxu0  ;;  %v398_v35 = vpop.f32.mrb[0].mxu1 }
 0x129   :  { %v323_v37 = vpop.f32.mrb[1].mxu0  ;;  %v400_v38 = vpop.f32.mrb[1].mxu1  ;;  %v322_v2 = vadd.f32 %v321_v33, %v218_v42  ;;  %v399_v6 = vadd.f32 %v398_v35, %v226_v43 }
 0x12a   :  { %v324_v5 = vadd.f32 %v323_v37, %v222_v47  ;;  %v401_v12 = vadd.f32 %v400_v38, %v230_v49 }
 0x12c   :  { %v327_v48 = vpop.f32.mrb[2].mxu0  ;;  %v404_v50 = vpop.f32.mrb[2].mxu1 }
 0x12d   :  { %v328_v51 = vadd.f32 %v327_v48, %v218_v42  ;;  %v329_v52 = vpop.f32.mrb[3].mxu0  ;;  %v405_v57 = vadd.f32 %v404_v50, %v226_v43  ;;  %v406_v59 = vpop.f32.mrb[3].mxu1 }
 0x12e   :  { %v330_v63 = vadd.f32 %v329_v52, %v222_v47  ;;  %v407_v0 = vadd.f32 %v406_v59, %v230_v49 }
 0x130   :  { %v487_v9 = vpop.f32.mrb[4].mxu0  ;;  %v564_v17 = vpop.f32.mrb[4].mxu1 }
 0x131   :  { %v1338_v18 = vrot.slane %v487_v9, 6  ;;  %v1526_v21 = vrot.slane %v487_v9, 2  ;;  %v489_v34 = vpop.f32.mrb[5].mxu0  ;;  %v1340_v29 = vrot.slane %v564_v17, 6  ;;  %v1528_v26 = vrot.slane %v564_v17, 2  ;;  %v566_v24 = vpop.f32.mrb[5].mxu1 }
 0x132   :  { %v1339_v30 = vrot.slane %v489_v34, 6  ;;  %v1527_v36 = vrot.slane %v489_v34, 2  ;;  %v1341_v48 = vrot.slane %v566_v24, 6  ;;  %v1529_v1 = vrot.slane %v566_v24, 2 }
 0x133   :  { %v6186_v50 = vadd.f32 %v1526_v21, %v328_v51  ;;  %v6188_v52 = vadd.f32 %v1528_v26, %v405_v57  ;;  %v6190_v33 = vadd.f32 %v1338_v18, %v328_v51  ;;  %v6192_v35 = vadd.f32 %v1340_v29, %v405_v57 }
 0x134   :  { %v6194_v37 = vadd.f32 %v1527_v36, %v330_v63  ;;  %v493_v38 = vpop.f32.mrb[6].mxu0  ;;  %v6196_v42 = vadd.f32 %v1529_v1, %v407_v0  ;;  %v570_v43 = vpop.f32.mrb[6].mxu1  ;;  %v6198_v47 = vadd.f32 %v1339_v30, %v330_v63  ;;  %v6200_v49 = vadd.f32 %v1341_v48, %v407_v0 }
 0x135   :  { %7053 = vst [vmem:[#allocation14_spill] sm:$0xff] %v6188_v52  ;;  %v579_v34 = vrot.slane %v493_v38, 6  ;;  %v761_v24 = vrot.slane %v493_v38, 2  ;;  %v495_v59 = vpop.f32.mrb[7].mxu0  ;;  %v581_v9 = vrot.slane %v570_v43, 6  ;;  %v763_v26 = vrot.slane %v570_v43, 2 }
 0x136   :  { %7054 = vst [vmem:[#allocation15_spill] sm:$0xff] %v6194_v37  ;;  %7055 = vst [vmem:[#allocation16_spill] sm:$0xff] %v6196_v42  ;;  %v572_v17 = vpop.f32.mrb[7].mxu1  ;;  %v580_v51 = vrot.slane %v495_v59, 6  ;;  %v762_v18 = vrot.slane %v495_v59, 2 }
 0x137   :  { %v582_v29 = vrot.slane %v572_v17, 6  ;;  %v764_v57 = vrot.slane %v572_v17, 2  ;;  %v6202_v36 = vadd.f32 %v761_v24, %v322_v2  ;;  %v6204_v21 = vadd.f32 %v763_v26, %v399_v6 }
 0x138   :  { %v6206_v1 = vadd.f32 %v579_v34, %v322_v2  ;;  %v6208_v63 = vadd.f32 %v581_v9, %v399_v6  ;;  %v6210_v0 = vadd.f32 %v762_v18, %v324_v5  ;;  %v6214_v48 = vadd.f32 %v580_v51, %v324_v5 }
 0x139   :  { %v6212_v30 = vadd.f32 %v764_v57, %v401_v12  ;;  %v6216_v38 = vadd.f32 %v582_v29, %v401_v12 }
 0x150   :  { %v657_v43 = vpop.f32.mrb[8].mxu0  ;;  %v728_v59 = vpop.f32.mrb[8].mxu1 }
 0x151   :  { %v733_v17 = vadd.f32 %v657_v43, %v6206_v1  ;;  %v659_v24 = vpop.f32.mrb[9].mxu0  ;;  %v730_v25 = vpop.f32.mrb[9].mxu1  ;;  %v735_v5 = vadd.f32 %v728_v59, %v6208_v63 }
 0x152   :  { %v734_v26 = vadd.f32 %v659_v24, %v6214_v48  ;;  %v736_v6 = vadd.f32 %v730_v25, %v6216_v38 }
 0x153   :  { %v4262_v2 = vmul.f32 -1.442695, %v733_v17 }
 0x154   :  { %v4263_v34 = vmul.f32 -1.442695, %v734_v26  ;;  %v4264_v9 = vmul.f32 -1.442695, %v736_v6 }
 0x155   :  { %5477 = vpow2.f32 %v4262_v2 }
 0x156   :  { %5479 = vpow2.f32 %v4263_v34 }
 0x157   :  { %5481 = vpow2.f32 %v4264_v9  ;;  %v7057_v9 = vmov 0.0  }
 0x158   :  { %5483 = vtanh.f32 %v735_v5 }
 0x15f   :  { %v5478_v51 = vpop.eup %5477 }
 0x160   :  { %v5480_v12 = vpop.eup %5479  ;;  %v740_v18 = vadd.f32 1.0, %v5478_v51 }
 0x161   :  { %v746_v29 = vadd.f32 1.0, %v5480_v12  ;;  %v5482_v57 = vpop.eup %5481 }
 0x162   :  { %5485 = vrcp.f32 %v740_v18  ;;  %v5484_v43 = vpop.eup %5483  ;;  %v753_v2 = vadd.f32 1.0, %v5482_v57 }
 0x163   :  { %5487 = vrcp.f32 %v746_v29 }
 0x164   :  { %5489 = vrcp.f32 %v753_v2 }
 0x16c   :  { %v5486_v24 = vpop.eup %5485 }
 0x16d   :  { %v5488_v17 = vpop.eup %5487  ;;  %v757_v26 = vmul.f32 %v5486_v24, %v5484_v43 }
 0x16e   :  { %v756_v34 = vmul.f32 0.0, %v5488_v17  ;;  %v5490_v25 = vpop.eup %5489 }
 0x170   :  { %v6222_v52 = vadd.f32 %v757_v26, %v756_v34 }
 0x172   :  { %5491 = vtanh.f32 %v6222_v52 }
 0x17c   :  { %v5492_v59 = vpop.eup %5491 }
 0x17d   :  { %v6225_v6 = vmul.f32 %v5492_v59, %v5490_v25 }
 0x17f   :  { %7056 = vst [vmem:[#allocation17_spill] sm:$0xff] %v6225_v6  ;;  %838 = vmatmul.mubr.f32.vlgmr.msra.gmra.mrb[10].mxu0 %v6225_v6  ;;  %909 = vmatmul.mubr.f32.vlgmr.msra.gmra.mrb[10].mxu1 %v6225_v6 }
 0x180   :  { %4445 = vmatpush1.bf16.msra.mxu0 %v6031_v54  ;;  %4477 = vmatpush1.bf16.msra.mxu1 %v6033_v55 }
 0x181   :  { %4447 = vmatprep.subr.bf16.mxu0 %v6036_v58  ;;  %4479 = vmatprep.subr.bf16.mxu1 %v6038_v62 }
 0x182   :  { %1025 = vmatprep.mubr.f32.mxu0 %v7057_v9  ;;  %1096 = vmatprep.mubr.f32.mxu1 %v7057_v9 }
 0x184   :  { %4449 = vmatpush1.bf16.msra.mxu0 %v6044_v3  ;;  %4481 = vmatpush1.bf16.msra.mxu1 %v6046_v4 }
 0x185   :  { %4451 = vmatprep.subr.bf16.mxu0 %v6050_v7  ;;  %4483 = vmatprep.subr.bf16.mxu1 %v6052_v8 }
 0x188   :  { %4453 = vmatpush1.bf16.msra.mxu0 %v6060_v15  ;;  %4485 = vmatpush1.bf16.msra.mxu1 %v6062_v16 }
 0x189   :  { %4455 = vmatprep.subr.bf16.mxu0 %v6066_v19  ;;  %4487 = vmatprep.subr.bf16.mxu1 %v6068_v20 }
 0x18c   :  { %4457 = vmatpush1.bf16.msra.mxu0 %v6074_v27  ;;  %4489 = vmatpush1.bf16.msra.mxu1 %v6076_v28 }
 0x18d   :  { %4459 = vmatprep.subr.bf16.mxu0 %v6080_v31  ;;  %4491 = vmatprep.subr.bf16.mxu1 %v6082_v32 }
 0x190   :  { %4461 = vmatpush1.bf16.msra.mxu0 %v6086_v39  ;;  %4493 = vmatpush1.bf16.msra.mxu1 %v6088_v40 }
 0x191   :  { %4463 = vmatprep.subr.bf16.mxu0 %v6092_v44  ;;  %4495 = vmatprep.subr.bf16.mxu1 %v6094_v45 }
 0x194   :  { %4465 = vmatpush1.bf16.msra.mxu0 %v6098_v53  ;;  %4497 = vmatpush1.bf16.msra.mxu1 %v6100_v56 }
 0x195   :  { %4467 = vmatprep.subr.bf16.mxu0 %v6104_v60  ;;  %4499 = vmatprep.subr.bf16.mxu1 %v6106_v61 }
 0x198   :  { %4469 = vmatpush1.bf16.msra.mxu0 %v6110_v10  ;;  %4501 = vmatpush1.bf16.msra.mxu1 %v6112_v11 }
 0x199   :  { %4471 = vmatprep.subr.bf16.mxu0 %v6116_v13  ;;  %4503 = vmatprep.subr.bf16.mxu1 %v6118_v14 }
 0x19c   :  { %4473 = vmatpush1.bf16.msra.mxu0 %v6122_v22  ;;  %4505 = vmatpush1.bf16.msra.mxu1 %v6124_v23 }
 0x19d   :  { %4507 = vmatprep.subr.bf16.mxu0 %v6014_v41  ;;  %4539 = vmatprep.subr.bf16.mxu1 %v6023_v46 }
 0x252   :  { %v839_v5 = vpop.f32.mrb[10].mxu0  ;;  %v910_v51 = vpop.f32.mrb[10].mxu1 }
 0x253   :  { %v919_v12 = vrot.slane %v839_v5, 6  ;;  %v841_v18 = vpop.f32.mrb[11].mxu0  ;;  %v912_v29 = vpop.f32.mrb[11].mxu1  ;;  %v921_v25 = vrot.slane %v910_v51, 6 }
 0x254   :  { %v920_v57 = vrot.slane %v841_v18, 6  ;;  %v922_v2 = vrot.slane %v912_v29, 6  ;;  %v951_v29 = vrot.slane %v6222_v52, 6 }
 0x255   :  { %v927_v43 = vadd.f32 %v919_v12, %v6202_v36  ;;  %v929_v6 = vadd.f32 %v921_v25, %v6204_v21 }
 0x256   :  { %v928_v24 = vadd.f32 %v920_v57, %v6210_v0  ;;  %v930_v34 = vadd.f32 %v922_v2, %v6212_v30 }
 0x257   :  { %v4265_v17 = vmul.f32 -1.442695, %v927_v43 }
 0x258   :  { %v4266_v26 = vmul.f32 -1.442695, %v928_v24  ;;  %v4267_v59 = vmul.f32 -1.442695, %v930_v34 }
 0x259   :  { %5493 = vpow2.f32 %v4265_v17 }
 0x25a   :  { %5495 = vpow2.f32 %v4266_v26 }
 0x25b   :  { %5497 = vpow2.f32 %v4267_v59 }
 0x25c   :  { %5499 = vtanh.f32 %v929_v6 }
 0x263   :  { %v5494_v42 = vpop.eup %5493 }
 0x264   :  { %v5496_v5 = vpop.eup %5495  ;;  %v934_v37 = vadd.f32 1.0, %v5494_v42 }
 0x265   :  { %v940_v18 = vadd.f32 1.0, %v5496_v5  ;;  %v5498_v12 = vpop.eup %5497 }
 0x266   :  { %5501 = vrcp.f32 %v934_v37  ;;  %v5500_v57 = vpop.eup %5499  ;;  %v947_v26 = vadd.f32 1.0, %v5498_v12 }
 0x267   :  { %5503 = vrcp.f32 %v940_v18 }
 0x268   :  { %5505 = vrcp.f32 %v947_v26 }
 0x270   :  { %v5502_v43 = vpop.eup %5501 }
 0x271   :  { %v5504_v24 = vpop.eup %5503  ;;  %v954_v17 = vmul.f32 %v5502_v43, %v5500_v57 }
 0x272   :  { %v953_v51 = vmul.f32 %v5504_v24, %v951_v29  ;;  %v5506_v42 = vpop.eup %5505 }
 0x274   :  { %v6268_v2 = vadd.f32 %v954_v17, %v953_v51 }
 0x276   :  { %5507 = vtanh.f32 %v6268_v2 }
 0x280   :  { %v5508_v34 = vpop.eup %5507 }
 0x281   :  { %v6271_v6 = vmul.f32 %v5508_v34, %v5506_v42 }
 0x283   :  { %7058 = vst [vmem:[#allocation18_spill] sm:$0xff] %v6271_v6  ;;  %v959_v37 = vrot.slane %v6271_v6, 2 }
 0x285   :  { %1026 = vmatmul.mubr.f32.vlgmr.msra.gmra.mrb[12].mxu0 %v959_v37  ;;  %1097 = vmatmul.mubr.f32.vlgmr.msra.gmra.mrb[12].mxu1 %v959_v37 }
 0x286   :  { %4509 = vmatpush1.bf16.msra.mxu0 %v6031_v54  ;;  %4541 = vmatpush1.bf16.msra.mxu1 %v6033_v55 }
 0x287   :  { %4511 = vmatprep.subr.bf16.mxu0 %v6036_v58  ;;  %4543 = vmatprep.subr.bf16.mxu1 %v6038_v62 }
 0x288   :  { %1213 = vmatprep.mubr.f32.mxu0 %v7057_v9  ;;  %1284 = vmatprep.mubr.f32.mxu1 %v7057_v9 }
 0x28a   :  { %4513 = vmatpush1.bf16.msra.mxu0 %v6044_v3  ;;  %4545 = vmatpush1.bf16.msra.mxu1 %v6046_v4 }
 0x28b   :  { %4515 = vmatprep.subr.bf16.mxu0 %v6050_v7  ;;  %4547 = vmatprep.subr.bf16.mxu1 %v6052_v8 }
 0x28e   :  { %4517 = vmatpush1.bf16.msra.mxu0 %v6060_v15  ;;  %4549 = vmatpush1.bf16.msra.mxu1 %v6062_v16 }
 0x28f   :  { %4519 = vmatprep.subr.bf16.mxu0 %v6066_v19  ;;  %4551 = vmatprep.subr.bf16.mxu1 %v6068_v20 }
 0x292   :  { %4521 = vmatpush1.bf16.msra.mxu0 %v6074_v27  ;;  %4553 = vmatpush1.bf16.msra.mxu1 %v6076_v28 }
 0x293   :  { %4523 = vmatprep.subr.bf16.mxu0 %v6080_v31  ;;  %4555 = vmatprep.subr.bf16.mxu1 %v6082_v32 }
 0x296   :  { %4525 = vmatpush1.bf16.msra.mxu0 %v6086_v39  ;;  %4557 = vmatpush1.bf16.msra.mxu1 %v6088_v40 }
 0x297   :  { %4527 = vmatprep.subr.bf16.mxu0 %v6092_v44  ;;  %4559 = vmatprep.subr.bf16.mxu1 %v6094_v45 }
 0x29a   :  { %4529 = vmatpush1.bf16.msra.mxu0 %v6098_v53  ;;  %4561 = vmatpush1.bf16.msra.mxu1 %v6100_v56 }
 0x29b   :  { %4531 = vmatprep.subr.bf16.mxu0 %v6104_v60  ;;  %4563 = vmatprep.subr.bf16.mxu1 %v6106_v61 }
 0x29e   :  { %4533 = vmatpush1.bf16.msra.mxu0 %v6110_v10  ;;  %4565 = vmatpush1.bf16.msra.mxu1 %v6112_v11 }
 0x29f   :  { %4535 = vmatprep.subr.bf16.mxu0 %v6116_v13  ;;  %4567 = vmatprep.subr.bf16.mxu1 %v6118_v14 }
 0x2a2   :  { %4537 = vmatpush1.bf16.msra.mxu0 %v6122_v22  ;;  %4569 = vmatpush1.bf16.msra.mxu1 %v6124_v23 }
 0x2a3   :  { %4571 = vmatprep.subr.bf16.mxu0 %v6014_v41  ;;  %4603 = vmatprep.subr.bf16.mxu1 %v6023_v46 }
 0x358   :  { %v1027_v52 = vpop.f32.mrb[12].mxu0  ;;  %v1098_v25 = vpop.f32.mrb[12].mxu1 }
 0x359   :  { %v1107_v59 = vrot.slane %v1027_v52, 4  ;;  %v1029_v5 = vpop.f32.mrb[13].mxu0  ;;  %v1100_v18 = vpop.f32.mrb[13].mxu1  ;;  %v1109_v51 = vrot.slane %v1098_v25, 4 }
 0x35a   :  { %v1108_v12 = vrot.slane %v1029_v5, 4  ;;  %v1110_v17 = vrot.slane %v1100_v18, 4  ;;  %v1139_v18 = vrot.slane %v6268_v2, 6 }
 0x35b   :  { %v1115_v57 = vadd.f32 %v1107_v59, %v6206_v1  ;;  %v1117_v34 = vadd.f32 %v1109_v51, %v6208_v63 }
 0x35c   :  { %v1116_v43 = vadd.f32 %v1108_v12, %v6214_v48  ;;  %v1118_v26 = vadd.f32 %v1110_v17, %v6216_v38 }
 0x35d   :  { %v4268_v29 = vmul.f32 -1.442695, %v1115_v57 }
 0x35e   :  { %v4269_v24 = vmul.f32 -1.442695, %v1116_v43  ;;  %v4270_v42 = vmul.f32 -1.442695, %v1118_v26 }
 0x35f   :  { %5509 = vpow2.f32 %v4268_v29 }
 0x360   :  { %5511 = vpow2.f32 %v4269_v24 }
 0x361   :  { %5513 = vpow2.f32 %v4270_v42 }
 0x362   :  { %5515 = vtanh.f32 %v1117_v34 }
 0x369   :  { %v5510_v37 = vpop.eup %5509 }
 0x36a   :  { %v5512_v52 = vpop.eup %5511  ;;  %v1122_v6 = vadd.f32 1.0, %v5510_v37 }
 0x36b   :  { %v1128_v5 = vadd.f32 1.0, %v5512_v52  ;;  %v5514_v1 = vpop.eup %5513 }
 0x36c   :  { %5517 = vrcp.f32 %v1122_v6  ;;  %v5516_v48 = vpop.eup %5515  ;;  %v1135_v38 = vadd.f32 1.0, %v5514_v1 }
 0x36d   :  { %5519 = vrcp.f32 %v1128_v5 }
 0x36e   :  { %5521 = vrcp.f32 %v1135_v38 }
 0x376   :  { %v5518_v59 = vpop.eup %5517 }
 0x377   :  { %v5520_v12 = vpop.eup %5519  ;;  %v1142_v57 = vmul.f32 %v5518_v59, %v5516_v48 }
 0x378   :  { %v1141_v25 = vmul.f32 %v5520_v12, %v1139_v18  ;;  %v5522_v63 = vpop.eup %5521 }
 0x37a   :  { %v6313_v43 = vadd.f32 %v1142_v57, %v1141_v25 }
 0x37c   :  { %5523 = vtanh.f32 %v6313_v43 }
 0x386   :  { %v5524_v29 = vpop.eup %5523 }
 0x387   :  { %v6316_v24 = vmul.f32 %v5524_v29, %v5522_v63 }
 0x389   :  { %v1147_v6 = vrot.slane %v6316_v24, 4 }
 0x38b   :  { %1214 = vmatmul.mubr.f32.vlgmr.msra.gmra.mrb[14].mxu0 %v1147_v6  ;;  %1285 = vmatmul.mubr.f32.vlgmr.msra.gmra.mrb[14].mxu1 %v1147_v6 }
 0x38c   :  { %4573 = vmatpush1.bf16.msra.mxu0 %v6031_v54  ;;  %4605 = vmatpush1.bf16.msra.mxu1 %v6033_v55 }
 0x38d   :  { %4575 = vmatprep.subr.bf16.mxu0 %v6036_v58  ;;  %4607 = vmatprep.subr.bf16.mxu1 %v6038_v62 }
 0x38e   :  { %1417 = vmatprep.mubr.f32.mxu0 %v7057_v9  ;;  %1488 = vmatprep.mubr.f32.mxu1 %v7057_v9 }
 0x390   :  { %4577 = vmatpush1.bf16.msra.mxu0 %v6044_v3  ;;  %4609 = vmatpush1.bf16.msra.mxu1 %v6046_v4 }
 0x391   :  { %4579 = vmatprep.subr.bf16.mxu0 %v6050_v7  ;;  %4611 = vmatprep.subr.bf16.mxu1 %v6052_v8 }
 0x394   :  { %4581 = vmatpush1.bf16.msra.mxu0 %v6060_v15  ;;  %4613 = vmatpush1.bf16.msra.mxu1 %v6062_v16 }
 0x395   :  { %4583 = vmatprep.subr.bf16.mxu0 %v6066_v19  ;;  %4615 = vmatprep.subr.bf16.mxu1 %v6068_v20 }
 0x398   :  { %4585 = vmatpush1.bf16.msra.mxu0 %v6074_v27  ;;  %4617 = vmatpush1.bf16.msra.mxu1 %v6076_v28 }
 0x399   :  { %4587 = vmatprep.subr.bf16.mxu0 %v6080_v31  ;;  %4619 = vmatprep.subr.bf16.mxu1 %v6082_v32 }
 0x39c   :  { %4589 = vmatpush1.bf16.msra.mxu0 %v6086_v39  ;;  %4621 = vmatpush1.bf16.msra.mxu1 %v6088_v40 }
 0x39d   :  { %4591 = vmatprep.subr.bf16.mxu0 %v6092_v44  ;;  %4623 = vmatprep.subr.bf16.mxu1 %v6094_v45 }
 0x3a0   :  { %4593 = vmatpush1.bf16.msra.mxu0 %v6098_v53  ;;  %4625 = vmatpush1.bf16.msra.mxu1 %v6100_v56 }
 0x3a1   :  { %4595 = vmatprep.subr.bf16.mxu0 %v6104_v60  ;;  %4627 = vmatprep.subr.bf16.mxu1 %v6106_v61 }
 0x3a4   :  { %4597 = vmatpush1.bf16.msra.mxu0 %v6110_v10  ;;  %4629 = vmatpush1.bf16.msra.mxu1 %v6112_v11 }
 0x3a5   :  { %4599 = vmatprep.subr.bf16.mxu0 %v6116_v13  ;;  %4631 = vmatprep.subr.bf16.mxu1 %v6118_v14 }
 0x3a8   :  { %4601 = vmatpush1.bf16.msra.mxu0 %v6122_v22  ;;  %4633 = vmatpush1.bf16.msra.mxu1 %v6124_v23 }
 0x3a9   :  { %4635 = vmatprep.subr.bf16.mxu0 %v6014_v41  ;;  %4667 = vmatprep.subr.bf16.mxu1 %v6023_v46 }
 0x45e   :  { %v1215_v2 = vpop.f32.mrb[14].mxu0  ;;  %v1286_v17 = vpop.f32.mrb[14].mxu1 }
 0x45f   :  { %v1295_v26 = vrot.slane %v1215_v2, 2  ;;  %v1217_v51 = vpop.f32.mrb[15].mxu0  ;;  %v1288_v42 = vpop.f32.mrb[15].mxu1  ;;  %v1297_v18 = vrot.slane %v1286_v17, 2  ;;  %v1327_v2 = vrot.slane %v6313_v43, 6 }
 0x460   :  { %v1296_v34 = vrot.slane %v1217_v51, 2  ;;  %v1298_v48 = vrot.slane %v1288_v42, 2 }
 0x461   :  { %v1303_v37 = vadd.f32 %v1295_v26, %v6202_v36  ;;  %v1305_v57 = vadd.f32 %v1297_v18, %v6204_v21 }
 0x462   :  { %v1304_v52 = vadd.f32 %v1296_v34, %v6210_v0  ;;  %v1306_v59 = vadd.f32 %v1298_v48, %v6212_v30 }
 0x463   :  { %v4271_v5 = vmul.f32 -1.442695, %v1303_v37 }
 0x464   :  { %v4272_v1 = vmul.f32 -1.442695, %v1304_v52  ;;  %v4273_v12 = vmul.f32 -1.442695, %v1306_v59 }
 0x465   :  { %5525 = vpow2.f32 %v4271_v5 }
 0x466   :  { %5527 = vpow2.f32 %v4272_v1 }
 0x467   :  { %5529 = vpow2.f32 %v4273_v12 }
 0x468   :  { %5531 = vtanh.f32 %v1305_v57 }
 0x46f   :  { %v5526_v38 = vpop.eup %5525 }
 0x470   :  { %v5528_v25 = vpop.eup %5527  ;;  %v1310_v63 = vadd.f32 1.0, %v5526_v38 }
 0x471   :  { %v1316_v29 = vadd.f32 1.0, %v5528_v25  ;;  %v5530_v36 = vpop.eup %5529 }
 0x472   :  { %5533 = vrcp.f32 %v1310_v63  ;;  %v5532_v0 = vpop.eup %5531  ;;  %v1323_v30 = vadd.f32 1.0, %v5530_v36 }
 0x473   :  { %5535 = vrcp.f32 %v1316_v29 }
 0x474   :  { %5537 = vrcp.f32 %v1323_v30 }
 0x47c   :  { %v5534_v6 = vpop.eup %5533 }
 0x47d   :  { %v5536_v26 = vpop.eup %5535  ;;  %v1330_v51 = vmul.f32 %v5534_v6, %v5532_v0 }
 0x47e   :  { %v1329_v17 = vmul.f32 %v5536_v26, %v1327_v2  ;;  %v5538_v21 = vpop.eup %5537 }
 0x480   :  { %v6358_v42 = vadd.f32 %v1330_v51, %v1329_v17 }
 0x482   :  { %5539 = vtanh.f32 %v6358_v42  ;;  %v1519_v30 = vrot.slane %v6358_v42, 6 }
 0x48c   :  { %v5540_v34 = vpop.eup %5539 }
 0x48d   :  { %v6361_v37 = vmul.f32 %v5540_v34, %v5538_v21 }
 0x48f   :  { %v1351_v52 = vrot.slane %v6361_v37, 6 }
 0x491   :  { %1418 = vmatmul.mubr.f32.vlgmr.msra.gmra.mrb[16].mxu0 %v1351_v52  ;;  %1489 = vmatmul.mubr.f32.vlgmr.msra.gmra.mrb[16].mxu1 %v1351_v52 }
 0x492   :  { %4637 = vmatpush1.bf16.msra.mxu0 %v6031_v54  ;;  %4669 = vmatpush1.bf16.msra.mxu1 %v6033_v55 }
 0x493   :  { %4639 = vmatprep.subr.bf16.mxu0 %v6036_v58  ;;  %4671 = vmatprep.subr.bf16.mxu1 %v6038_v62 }
 0x494   :  { %1602 = vmatprep.mubr.f32.mxu0 %v7057_v9  ;;  %1673 = vmatprep.mubr.f32.mxu1 %v7057_v9 }
 0x496   :  { %4641 = vmatpush1.bf16.msra.mxu0 %v6044_v3  ;;  %4673 = vmatpush1.bf16.msra.mxu1 %v6046_v4 }
 0x497   :  { %4643 = vmatprep.subr.bf16.mxu0 %v6050_v7  ;;  %4675 = vmatprep.subr.bf16.mxu1 %v6052_v8 }
 0x49a   :  { %4645 = vmatpush1.bf16.msra.mxu0 %v6060_v15  ;;  %4677 = vmatpush1.bf16.msra.mxu1 %v6062_v16 }
 0x49b   :  { %4647 = vmatprep.subr.bf16.mxu0 %v6066_v19  ;;  %4679 = vmatprep.subr.bf16.mxu1 %v6068_v20 }
 0x49e   :  { %4649 = vmatpush1.bf16.msra.mxu0 %v6074_v27  ;;  %4681 = vmatpush1.bf16.msra.mxu1 %v6076_v28 }
 0x49f   :  { %4651 = vmatprep.subr.bf16.mxu0 %v6080_v31  ;;  %4683 = vmatprep.subr.bf16.mxu1 %v6082_v32 }
 0x4a2   :  { %4653 = vmatpush1.bf16.msra.mxu0 %v6086_v39  ;;  %4685 = vmatpush1.bf16.msra.mxu1 %v6088_v40 }
 0x4a3   :  { %4655 = vmatprep.subr.bf16.mxu0 %v6092_v44  ;;  %4687 = vmatprep.subr.bf16.mxu1 %v6094_v45 }
 0x4a6   :  { %4657 = vmatpush1.bf16.msra.mxu0 %v6098_v53  ;;  %4689 = vmatpush1.bf16.msra.mxu1 %v6100_v56 }
 0x4a7   :  { %4659 = vmatprep.subr.bf16.mxu0 %v6104_v60  ;;  %4691 = vmatprep.subr.bf16.mxu1 %v6106_v61 }
 0x4aa   :  { %4661 = vmatpush1.bf16.msra.mxu0 %v6110_v10  ;;  %4693 = vmatpush1.bf16.msra.mxu1 %v6112_v11 }
 0x4ab   :  { %4663 = vmatprep.subr.bf16.mxu0 %v6116_v13  ;;  %4695 = vmatprep.subr.bf16.mxu1 %v6118_v14 }
 0x4ae   :  { %4665 = vmatpush1.bf16.msra.mxu0 %v6122_v22  ;;  %4697 = vmatpush1.bf16.msra.mxu1 %v6124_v23 }
 0x4af   :  { %4699 = vmatprep.subr.bf16.mxu0 %v6014_v41  ;;  %4731 = vmatprep.subr.bf16.mxu1 %v6023_v46 }
 0x564   :  { %v1419_v43 = vpop.f32.mrb[16].mxu0  ;;  %v1490_v5 = vpop.f32.mrb[16].mxu1 }
 0x565   :  { %v1495_v1 = vadd.f32 %v1419_v43, %v6190_v33  ;;  %v1421_v48 = vpop.f32.mrb[17].mxu0  ;;  %v1492_v59 = vpop.f32.mrb[17].mxu1  ;;  %v1497_v63 = vadd.f32 %v1490_v5, %v6192_v35  ;;  %v7059_v43 = vlaneseq }
 0x566   :  { %v1496_v18 = vadd.f32 %v1421_v48, %v6198_v47  ;;  %v1498_v38 = vadd.f32 %v1492_v59, %v6200_v49 }
 0x567   :  { %v4274_v12 = vmul.f32 -1.442695, %v1495_v1  ;;  %v2100_v1 = vand.u32 127, %v7059_v43 }
 0x568   :  { %v4275_v57 = vmul.f32 -1.442695, %v1496_v18  ;;  %v4276_v25 = vmul.f32 -1.442695, %v1498_v38 }
 0x569   :  { %5541 = vpow2.f32 %v4274_v12  ;;  %vm2101_vm9 = vcmp.lt.s32.totalorder %v2100_v1, 64 }
 0x56a   :  { %5543 = vpow2.f32 %v4275_v57  ;;  %v6408_v48 = vsel %vm2101_vm9, 1.0, %v7057_v9 }
 0x56b   :  { %5545 = vpow2.f32 %v4276_v25  ;;  %v6411_v59 = vsub.f32 1.0, %v6408_v48 }
 0x56c   :  { %5547 = vtanh.f32 %v1497_v63 }
 0x56d   :  { %v2130_v42 = vmul.f32 %v6411_v59, %v6361_v37 }
 0x56f   :  { %v2132_v63 = vrot.slane %v2130_v42, 6  ;;  %v7061_v42 = vld [vmem:[#allocation16_spill] sm:$0xff] }
 0x573   :  { %v5542_v29 = vpop.eup %5541 }
 0x574   :  { %v5544_v36 = vpop.eup %5543  ;;  %v1502_v0 = vadd.f32 1.0, %v5542_v29  ;;  %v2123_v29 = vmul.f32 %v6408_v48, %v6361_v37 }
 0x575   :  { %v1508_v6 = vadd.f32 1.0, %v5544_v36  ;;  %v5546_v2 = vpop.eup %5545 }
 0x576   :  { %5549 = vrcp.f32 %v1502_v0  ;;  %v5548_v26 = vpop.eup %5547  ;;  %v1515_v34 = vadd.f32 1.0, %v5546_v2 }
 0x577   :  { %5551 = vrcp.f32 %v1508_v6 }
 0x578   :  { %5553 = vrcp.f32 %v1515_v34  ;;  %v7060_v34 = vld [vmem:[#allocation15_spill] sm:$0xff] }
 0x580   :  { %v5550_v51 = vpop.eup %5549 }
 0x581   :  { %v5552_v17 = vpop.eup %5551  ;;  %v1522_v21 = vmul.f32 %v5550_v51, %v5548_v26 }
 0x582   :  { %v1521_v52 = vmul.f32 %v5552_v17, %v1519_v30  ;;  %v5554_v18 = vpop.eup %5553 }
 0x584   :  { %v6404_v5 = vadd.f32 %v1522_v21, %v1521_v52 }
 0x586   :  { %5555 = vtanh.f32 %v6404_v5 }
 0x590   :  { %v5556_v12 = vpop.eup %5555 }
 0x591   :  { %v1525_v57 = vmul.f32 %v5556_v12, %v5554_v18 }
 0x593   :  { %1603 = vmatmul.mubr.f32.vlgmr.msra.gmra.mrb[18].mxu0 %v1525_v57  ;;  %1674 = vmatmul.mubr.f32.vlgmr.msra.gmra.mrb[18].mxu1 %v1525_v57  ;;  %v2124_v38 = vmul.f32 %v6411_v59, %v1525_v57  ;;  %v2129_v25 = vmul.f32 %v6408_v48, %v1525_v57 }
 0x594   :  { %4701 = vmatpush1.bf16.msra.mxu0 %v6031_v54  ;;  %4733 = vmatpush1.bf16.msra.mxu1 %v6033_v55 }
 0x595   :  { %4703 = vmatprep.subr.bf16.mxu0 %v6036_v58  ;;  %4735 = vmatprep.subr.bf16.mxu1 %v6038_v62  ;;  %v2126_v36 = vrot.slane %v2124_v38, 2  ;;  %v6423_v0 = vadd.f32 %v2132_v63, %v2129_v25 }
 0x596   :  { %1790 = vmatprep.mubr.f32.mxu0 %v7057_v9  ;;  %1861 = vmatprep.mubr.f32.mxu1 %v7057_v9 }
 0x597   :  { %v6427_v6 = vadd.f32 %v2126_v36, %v2123_v29 }
 0x598   :  { %4705 = vmatpush1.bf16.msra.mxu0 %v6044_v3  ;;  %4737 = vmatpush1.bf16.msra.mxu1 %v6046_v4 }
 0x599   :  { %4707 = vmatprep.subr.bf16.mxu0 %v6050_v7  ;;  %4739 = vmatprep.subr.bf16.mxu1 %v6052_v8 }
 0x59c   :  { %4709 = vmatpush1.bf16.msra.mxu0 %v6060_v15  ;;  %4741 = vmatpush1.bf16.msra.mxu1 %v6062_v16 }
 0x59d   :  { %4711 = vmatprep.subr.bf16.mxu0 %v6066_v19  ;;  %4743 = vmatprep.subr.bf16.mxu1 %v6068_v20 }
 0x5a0   :  { %4713 = vmatpush1.bf16.msra.mxu0 %v6074_v27  ;;  %4745 = vmatpush1.bf16.msra.mxu1 %v6076_v28 }
 0x5a1   :  { %4715 = vmatprep.subr.bf16.mxu0 %v6080_v31  ;;  %4747 = vmatprep.subr.bf16.mxu1 %v6082_v32 }
 0x5a4   :  { %4717 = vmatpush1.bf16.msra.mxu0 %v6086_v39  ;;  %4749 = vmatpush1.bf16.msra.mxu1 %v6088_v40 }
 0x5a5   :  { %4719 = vmatprep.subr.bf16.mxu0 %v6092_v44  ;;  %4751 = vmatprep.subr.bf16.mxu1 %v6094_v45 }
 0x5a8   :  { %4721 = vmatpush1.bf16.msra.mxu0 %v6098_v53  ;;  %4753 = vmatpush1.bf16.msra.mxu1 %v6100_v56 }
 0x5a9   :  { %4723 = vmatprep.subr.bf16.mxu0 %v6104_v60  ;;  %4755 = vmatprep.subr.bf16.mxu1 %v6106_v61 }
 0x5ac   :  { %4725 = vmatpush1.bf16.msra.mxu0 %v6110_v10  ;;  %4757 = vmatpush1.bf16.msra.mxu1 %v6112_v11 }
 0x5ad   :  { %4727 = vmatprep.subr.bf16.mxu0 %v6116_v13  ;;  %4759 = vmatprep.subr.bf16.mxu1 %v6118_v14 }
 0x5b0   :  { %4729 = vmatpush1.bf16.msra.mxu0 %v6122_v22  ;;  %4761 = vmatpush1.bf16.msra.mxu1 %v6124_v23 }
 0x5b1   :  { %4763 = vmatprep.subr.bf16.mxu0 %v6014_v41  ;;  %4795 = vmatprep.subr.bf16.mxu1 %v6023_v46  ;;  %v7062_v46 = vld [vmem:[#allocation14_spill] sm:$0xff] }
 0x666   :  { %v1604_v37 = vpop.f32.mrb[18].mxu0  ;;  %v1675_v2 = vpop.f32.mrb[18].mxu1 }
 0x667   :  { %v1684_v26 = vrot.slane %v1604_v37, 6  ;;  %v1606_v51 = vpop.f32.mrb[19].mxu0  ;;  %v1677_v30 = vpop.f32.mrb[19].mxu1  ;;  %v1686_v41 = vrot.slane %v1675_v2, 6 }
 0x668   :  { %v1685_v17 = vrot.slane %v1606_v51, 6  ;;  %v1687_v18 = vrot.slane %v1677_v30, 6  ;;  %v1716_v30 = vrot.slane %v6404_v5, 6 }
 0x669   :  { %v1692_v21 = vadd.f32 %v1684_v26, %v6186_v50  ;;  %v1694_v38 = vadd.f32 %v1686_v41, %v7062_v46 }
 0x66a   :  { %v1693_v52 = vadd.f32 %v1685_v17, %v7060_v34  ;;  %v1695_v12 = vadd.f32 %v1687_v18, %v7061_v42  ;;  %v2136_v18 = vmul.f32 %v6411_v59, %v6316_v24 }
 0x66b   :  { %v4277_v43 = vmul.f32 -1.442695, %v1692_v21 }
 0x66c   :  { %v4278_v1 = vmul.f32 -1.442695, %v1693_v52  ;;  %v4279_v57 = vmul.f32 -1.442695, %v1695_v12 }
 0x66d   :  { %5557 = vpow2.f32 %v4277_v43 }
 0x66e   :  { %5559 = vpow2.f32 %v4278_v1 }
 0x66f   :  { %5561 = vpow2.f32 %v4279_v57 }
 0x670   :  { %5563 = vtanh.f32 %v1694_v38 }
 0x677   :  { %v5558_v25 = vpop.eup %5557 }
 0x678   :  { %v5560_v63 = vpop.eup %5559  ;;  %v1699_v29 = vadd.f32 1.0, %v5558_v25  ;;  %v2138_v25 = vrot.slane %v2136_v18, 2  ;;  %v2162_v18 = vld [vmem:[#allocation5 + $0x18] sm:$0xff] }
 0x679   :  { %v1705_v36 = vadd.f32 1.0, %v5560_v63  ;;  %v5562_v37 = vpop.eup %5561  ;;  %v2117_v63 = vmul.f32 %v6408_v48, %v6316_v24 }
 0x67a   :  { %5565 = vrcp.f32 %v1699_v29  ;;  %v5564_v26 = vpop.eup %5563  ;;  %v1712_v52 = vadd.f32 1.0, %v5562_v37 }
 0x67b   :  { %5567 = vrcp.f32 %v1705_v36 }
 0x67c   :  { %5569 = vrcp.f32 %v1712_v52 }
 0x684   :  { %v5566_v51 = vpop.eup %5565 }
 0x685   :  { %v5568_v17 = vpop.eup %5567  ;;  %v1719_v21 = vmul.f32 %v5566_v51, %v5564_v26 }
 0x686   :  { %v1718_v2 = vmul.f32 %v5568_v17, %v1716_v30  ;;  %v5570_v1 = vpop.eup %5569 }
 0x688   :  { %v6462_v43 = vadd.f32 %v1719_v21, %v1718_v2 }
 0x68a   :  { %5571 = vtanh.f32 %v6462_v43 }
 0x694   :  { %v5572_v12 = vpop.eup %5571 }
 0x695   :  { %v1722_v41 = vmul.f32 %v5572_v12, %v5570_v1  ;;  %v2164_v1 = vld [vmem:[#allocation5 + $0x28] sm:$0xff] }
 0x697   :  { %v1724_v57 = vrot.slane %v1722_v41, 2  ;;  %v2118_v38 = vmul.f32 %v6411_v59, %v1722_v41  ;;  %v2135_v5 = vmul.f32 %v6408_v48, %v1722_v41  ;;  %v2166_v41 = vld [vmem:[#allocation5 + $0x38] sm:$0xff] }
 0x699   :  { %1791 = vmatmul.mubr.f32.vlgmr.msra.gmra.mrb[20].mxu0 %v1724_v57  ;;  %1862 = vmatmul.mubr.f32.vlgmr.msra.gmra.mrb[20].mxu1 %v1724_v57  ;;  %v2120_v29 = vrot.slane %v2118_v38, 6  ;;  %v2140_v36 = vadd.f32 %v2138_v25, %v2135_v5  ;;  %v2159_v57 = vld [vmem:[#allocation5] sm:$0xff]  ;;  %v4858_v5 = vpack.c.bf16 %v2166_v41, %v2162_v18  ;;  %v2193_v41 = vld [vmem:[#allocation5 + $0x110] sm:$0xff] }
 0x69a   :  { %4765 = vmatpush1.bf16.msra.mxu0 %v6031_v54  ;;  %4797 = vmatpush1.bf16.msra.mxu1 %v6033_v55  ;;  %v2163_v38 = vld [vmem:[#allocation5 + $0x20] sm:$0xff] }
 0x69b   :  { %4767 = vmatprep.subr.bf16.mxu0 %v6036_v58  ;;  %4799 = vmatprep.subr.bf16.mxu1 %v6038_v62  ;;  %v6475_v37 = vadd.f32 %v2120_v29, %v2117_v63  ;;  %v6479_v26 = vsel %vm136_vm5, %v6423_v0, %v2140_v36  ;;  %v4828_v25 = vpack.c.bf16 %v2163_v38, %v2159_v57  ;;  %v2161_v63 = vld [vmem:[#allocation5 + $0x10] sm:$0xff]  ;;  %v2191_v18 = vld [vmem:[#allocation5 + $0x100] sm:$0xff] }
 0x69c   :  { %1978 = vmatprep.mubr.f32.mxu0 %v7057_v9  ;;  %2049 = vmatprep.mubr.f32.mxu1 %v7057_v9  ;;  %v2165_v29 = vld [vmem:[#allocation5 + $0x30] sm:$0xff] }
 0x69d   :  { %v4860_v36 = vpack.c.bf16 %v2165_v29, %v2161_v63  ;;  %v2197_v38 = vld [vmem:[#allocation5 + $0x130] sm:$0xff] }
 0x69e   :  { %4769 = vmatpush1.bf16.msra.mxu0 %v6044_v3  ;;  %4801 = vmatpush1.bf16.msra.mxu1 %v6046_v4  ;;  %v4876_v63 = vpack.c.bf16 %v2197_v38, %v2193_v41 }
 0x69f   :  { %4771 = vmatprep.subr.bf16.mxu0 %v6050_v7  ;;  %4803 = vmatprep.subr.bf16.mxu1 %v6052_v8 }
 0x6a2   :  { %4773 = vmatpush1.bf16.msra.mxu0 %v6060_v15  ;;  %4805 = vmatpush1.bf16.msra.mxu1 %v6062_v16 }
 0x6a3   :  { %4775 = vmatprep.subr.bf16.mxu0 %v6066_v19  ;;  %4807 = vmatprep.subr.bf16.mxu1 %v6068_v20 }
 0x6a6   :  { %4777 = vmatpush1.bf16.msra.mxu0 %v6074_v27  ;;  %4809 = vmatpush1.bf16.msra.mxu1 %v6076_v28 }
 0x6a7   :  { %4779 = vmatprep.subr.bf16.mxu0 %v6080_v31  ;;  %4811 = vmatprep.subr.bf16.mxu1 %v6082_v32 }
 0x6aa   :  { %4781 = vmatpush1.bf16.msra.mxu0 %v6086_v39  ;;  %4813 = vmatpush1.bf16.msra.mxu1 %v6088_v40 }
 0x6ab   :  { %4783 = vmatprep.subr.bf16.mxu0 %v6092_v44  ;;  %4815 = vmatprep.subr.bf16.mxu1 %v6094_v45 }
 0x6ae   :  { %4785 = vmatpush1.bf16.msra.mxu0 %v6098_v53  ;;  %4817 = vmatpush1.bf16.msra.mxu1 %v6100_v56 }
 0x6af   :  { %4787 = vmatprep.subr.bf16.mxu0 %v6104_v60  ;;  %4819 = vmatprep.subr.bf16.mxu1 %v6106_v61  ;;  %v1904_v60 = vrot.slane %v6462_v43, 6  ;;  %v2160_v43 = vld [vmem:[#allocation5 + $0x8] sm:$0xff] }
 0x6b0   :  { %v4826_v12 = vpack.c.bf16 %v2164_v1, %v2160_v43 }
 0x6b2   :  { %4789 = vmatpush1.bf16.msra.mxu0 %v6110_v10  ;;  %4821 = vmatpush1.bf16.msra.mxu1 %v6112_v11 }
 0x6b3   :  { %4791 = vmatprep.subr.bf16.mxu0 %v6116_v13  ;;  %4823 = vmatprep.subr.bf16.mxu1 %v6118_v14 }
 0x6b6   :  { %4793 = vmatpush1.bf16.msra.mxu0 %v6122_v22  ;;  %4825 = vmatpush1.bf16.msra.mxu1 %v6124_v23  ;;  %v7063_v23 = vld [vmem:[#allocation18_spill] sm:$0xff] }
 0x6b7   :  { %v2111_v30 = vmul.f32 %v6408_v48, %v7063_v23  ;;  %4827 = vmatprep.subr.bf16.mxu0 %v4826_v12  ;;  %4859 = vmatprep.subr.bf16.mxu1 %v4858_v5  ;;  %v2195_v12 = vld [vmem:[#allocation5 + $0x120] sm:$0xff]  ;;  %v2200_v5 = vld [vmem:[#allocation5 + $0x148] sm:$0xff] }
 0x6b8   :  { %v4844_v57 = vpack.c.bf16 %v2195_v12, %v2191_v18 }
 0x76c   :  { %v1792_v54 = vpop.f32.mrb[20].mxu0  ;;  %v1863_v55 = vpop.f32.mrb[20].mxu1 }
 0x76d   :  { %v1872_v58 = vrot.slane %v1792_v54, 4  ;;  %v1794_v62 = vpop.f32.mrb[21].mxu0  ;;  %v1865_v3 = vpop.f32.mrb[21].mxu1  ;;  %v1874_v27 = vrot.slane %v1863_v55, 4  ;;  %v2168_v54 = vld [vmem:[#allocation5 + $0x48] sm:$0xff] }
 0x76e   :  { %v1873_v4 = vrot.slane %v1794_v62, 4  ;;  %v1875_v19 = vrot.slane %v1865_v3, 4  ;;  %v2172_v55 = vld [vmem:[#allocation5 + $0x68] sm:$0xff]  ;;  %v2174_v62 = vld [vmem:[#allocation5 + $0x78] sm:$0xff]  ;;  %v2167_v3 = vld [vmem:[#allocation5 + $0x40] sm:$0xff] }
 0x76f   :  { %v1880_v7 = vadd.f32 %v1872_v58, %v6190_v33  ;;  %v1882_v31 = vadd.f32 %v1874_v27, %v6192_v35  ;;  %v2142_v33 = vmul.f32 %v6411_v59, %v7063_v23  ;;  %v2170_v58 = vld [vmem:[#allocation5 + $0x58] sm:$0xff]  ;;  %v2180_v27 = vld [vmem:[#allocation5 + $0xa8] sm:$0xff]  ;;  %v2183_v23 = vld [vmem:[#allocation5 + $0xc0] sm:$0xff] }
 0x770   :  { %v1881_v8 = vadd.f32 %v1873_v4, %v6198_v47  ;;  %v1883_v20 = vadd.f32 %v1875_v19, %v6200_v49  ;;  %v2171_v4 = vld [vmem:[#allocation5 + $0x60] sm:$0xff] }
 0x771   :  { %v4280_v15 = vmul.f32 -1.442695, %v1880_v7  ;;  %v2144_v51 = vrot.slane %v2142_v33, 6  ;;  %v4862_v7 = vpack.c.bf16 %v2174_v62, %v2170_v58  ;;  %v2187_v33 = vld [vmem:[#allocation5 + $0xe0] sm:$0xff]  ;;  %v2201_v62 = vld [vmem:[#allocation5 + $0x150] sm:$0xff] }
 0x772   :  { %v4281_v16 = vmul.f32 -1.442695, %v1881_v8  ;;  %v4282_v28 = vmul.f32 -1.442695, %v1883_v20  ;;  %v4832_v8 = vpack.c.bf16 %v2171_v4, %v2167_v3  ;;  %v2176_v20 = vld [vmem:[#allocation5 + $0x88] sm:$0xff]  ;;  %v2205_v3 = vld [vmem:[#allocation5 + $0x170] sm:$0xff] }
 0x773   :  { %5573 = vpow2.f32 %v4280_v15  ;;  %v2169_v15 = vld [vmem:[#allocation5 + $0x50] sm:$0xff] }
 0x774   :  { %5575 = vpow2.f32 %v4281_v16  ;;  %v2173_v16 = vld [vmem:[#allocation5 + $0x70] sm:$0xff] }
 0x775   :  { %5577 = vpow2.f32 %v4282_v28  ;;  %v4864_v19 = vpack.c.bf16 %v2173_v16, %v2169_v15  ;;  %v2178_v28 = vld [vmem:[#allocation5 + $0x98] sm:$0xff]  ;;  %v4880_v16 = vpack.c.bf16 %v2205_v3, %v2201_v62 }
 0x776   :  { %5579 = vtanh.f32 %v1882_v31  ;;  %v4834_v31 = vpack.c.bf16 %v2180_v27, %v2176_v20  ;;  %v2210_v15 = vld [vmem:[#allocation5 + $0x198] sm:$0xff]  ;;  %v2207_v27 = vld [vmem:[#allocation5 + $0x180] sm:$0xff] }
 0x777   :  { %v2214_v20 = vld [vmem:[#allocation5 + $0x1b8] sm:$0xff] }
 0x77d   :  { %v5574_v32 = vpop.eup %5573 }
 0x77e   :  { %v5576_v39 = vpop.eup %5575  ;;  %v1887_v40 = vadd.f32 1.0, %v5574_v32  ;;  %v2182_v32 = vld [vmem:[#allocation5 + $0xb8] sm:$0xff] }
 0x77f   :  { %v1893_v44 = vadd.f32 1.0, %v5576_v39  ;;  %v5578_v45 = vpop.eup %5577  ;;  %v2175_v39 = vld [vmem:[#allocation5 + $0x80] sm:$0xff] }
 0x780   :  { %5581 = vrcp.f32 %v1887_v40  ;;  %v5580_v53 = vpop.eup %5579  ;;  %v1900_v11 = vadd.f32 1.0, %v5578_v45  ;;  %v2179_v40 = vld [vmem:[#allocation5 + $0xa0] sm:$0xff] }
 0x781   :  { %5583 = vrcp.f32 %v1893_v44  ;;  %v4866_v44 = vpack.c.bf16 %v2182_v32, %v2178_v28  ;;  %v4836_v45 = vpack.c.bf16 %v2179_v40, %v2175_v39  ;;  %v2211_v28 = vld [vmem:[#allocation5 + $0x1a0] sm:$0xff]  ;;  %v2209_v32 = vld [vmem:[#allocation5 + $0x190] sm:$0xff]  ;;  %v2216_v40 = vld [vmem:[#allocation5 + $0x1c8] sm:$0xff] }
 0x782   :  { %5585 = vrcp.f32 %v1900_v11  ;;  %v2186_v11 = vld [vmem:[#allocation5 + $0xd8] sm:$0xff]  ;;  %v2213_v39 = vld [vmem:[#allocation5 + $0x1b0] sm:$0xff] }
 0x78a   :  { %v5582_v56 = vpop.eup %5581 }
 0x78b   :  { %v5584_v61 = vpop.eup %5583  ;;  %v1907_v10 = vmul.f32 %v5582_v56, %v5580_v53  ;;  %v2177_v53 = vld [vmem:[#allocation5 + $0x90] sm:$0xff] }
 0x78c   :  { %v1906_v13 = vmul.f32 %v5584_v61, %v1904_v60  ;;  %v5586_v22 = vpop.eup %5585  ;;  %v2181_v56 = vld [vmem:[#allocation5 + $0xb0] sm:$0xff]  ;;  %v2184_v61 = vld [vmem:[#allocation5 + $0xc8] sm:$0xff] }
 0x78d   :  { %v4868_v60 = vpack.c.bf16 %v2181_v56, %v2177_v53  ;;  %v2222_v53 = vld [vmem:[#allocation5 + $0x1f8] sm:$0xff]  ;;  %v4852_v56 = vpack.c.bf16 %v2211_v28, %v2207_v27 }
 0x78e   :  { %v6514_v14 = vadd.f32 %v1907_v10, %v1906_v13  ;;  %v2188_v10 = vld [vmem:[#allocation5 + $0xe8] sm:$0xff] }
 0x78f   :  { %v4838_v13 = vpack.c.bf16 %v2188_v10, %v2184_v61  ;;  %v2215_v10 = vld [vmem:[#allocation5 + $0x1c0] sm:$0xff] }
 0x790   :  { %5587 = vtanh.f32 %v6514_v14 }
 0x79a   :  { %v5588_v35 = vpop.eup %5587 }
 0x79b   :  { %v1910_v47 = vmul.f32 %v5588_v35, %v5586_v22  ;;  %v2190_v22 = vld [vmem:[#allocation5 + $0xf8] sm:$0xff] }
 0x79c   :  { %v4870_v35 = vpack.c.bf16 %v2190_v22, %v2186_v11  ;;  %v2219_v11 = vld [vmem:[#allocation5 + $0x1e0] sm:$0xff] }
 0x79d   :  { %v1912_v49 = vrot.slane %v1910_v47, 4  ;;  %v2112_v24 = vmul.f32 %v6411_v59, %v1910_v47  ;;  %v2141_v0 = vmul.f32 %v6408_v48, %v1910_v47  ;;  %v4840_v47 = vpack.c.bf16 %v2187_v33, %v2183_v23  ;;  %v2221_v23 = vld [vmem:[#allocation5 + $0x1f0] sm:$0xff]  ;;  %v2224_v33 = vld [vmem:[#allocation7 + $0x8] sm:$0xff] }
 0x79f   :  { %1979 = vmatmul.mubr.f32.vlgmr.msra.gmra.mrb[22].mxu0 %v1912_v49  ;;  %2050 = vmatmul.mubr.f32.vlgmr.msra.gmra.mrb[22].mxu1 %v1912_v49  ;;  %v2114_v17 = vrot.slane %v2112_v24, 2  ;;  %v2146_v21 = vadd.f32 %v2144_v51, %v2141_v0  ;;  %v2185_v49 = vld [vmem:[#allocation5 + $0xd0] sm:$0xff]  ;;  %v2192_v0 = vld [vmem:[#allocation5 + $0x108] sm:$0xff] }
 0x7a0   :  { %2437 = vmatprep.mubr.f32.mxu0 %v7057_v9  ;;  %2514 = vmatprep.mubr.f32.mxu1 %v7057_v9  ;;  %v2189_v24 = vld [vmem:[#allocation5 + $0xf0] sm:$0xff] }
 0x7a1   :  { %v6525_v52 = vadd.f32 %v2114_v17, %v2111_v30  ;;  %v6529_v2 = vsel %vm138_vm6, %v6479_v26, %v2146_v21  ;;  %4829 = vmatpush1.bf16.msra.mxu0 %v4828_v25  ;;  %4861 = vmatpush1.bf16.msra.mxu1 %v4860_v36  ;;  %v4830_v26 = vpack.c.bf16 %v2172_v55, %v2168_v54  ;;  %v2196_v30 = vld [vmem:[#allocation5 + $0x128] sm:$0xff]  ;;  %v2194_v17 = vld [vmem:[#allocation5 + $0x118] sm:$0xff]  ;;  %v2199_v55 = vld [vmem:[#allocation5 + $0x140] sm:$0xff] }
 0x7a2   :  { %4863 = vmatprep.subr.bf16.mxu1 %v4862_v7  ;;  %v4872_v51 = vpack.c.bf16 %v2189_v24, %v2185_v49  ;;  %v2198_v21 = vld [vmem:[#allocation5 + $0x138] sm:$0xff]  ;;  %v4842_v43 = vpack.c.bf16 %v2196_v30, %v2192_v0  ;;  %v2204_v25 = vld [vmem:[#allocation5 + $0x168] sm:$0xff]  ;;  %v4856_v24 = vpack.c.bf16 %v2219_v11, %v2215_v10 }
 0x7a3   :  { %4831 = vmatprep.subr.bf16.mxu0 %v4830_v26  ;;  %v4874_v1 = vpack.c.bf16 %v2198_v21, %v2194_v17  ;;  %v4846_v29 = vpack.c.bf16 %v2204_v25, %v2200_v5  ;;  %v2202_v36 = vld [vmem:[#allocation5 + $0x158] sm:$0xff]  ;;  %v2203_v26 = vld [vmem:[#allocation5 + $0x160] sm:$0xff]  ;;  %v2208_v7 = vld [vmem:[#allocation5 + $0x188] sm:$0xff] }
 0x7a4   :  { %v2206_v54 = vld [vmem:[#allocation5 + $0x178] sm:$0xff]  ;;  %v4848_v4 = vpack.c.bf16 %v2203_v26, %v2199_v55  ;;  %v2232_v10 = vld [vmem:[#allocation7 + $0x48] sm:$0xff] }
 0x7a5   :  { %4833 = vmatpush1.bf16.msra.mxu0 %v4832_v8  ;;  %4865 = vmatpush1.bf16.msra.mxu1 %v4864_v19  ;;  %v4878_v58 = vpack.c.bf16 %v2206_v54, %v2202_v36  ;;  %v2212_v8 = vld [vmem:[#allocation5 + $0x1a8] sm:$0xff]  ;;  %v2230_v49 = vld [vmem:[#allocation7 + $0x38] sm:$0xff] }
 0x7a6   :  { %4835 = vmatprep.subr.bf16.mxu0 %v4834_v31  ;;  %4867 = vmatprep.subr.bf16.mxu1 %v4866_v44  ;;  %v4850_v19 = vpack.c.bf16 %v2212_v8, %v2208_v7  ;;  %v4882_v31 = vpack.c.bf16 %v2214_v20, %v2210_v15  ;;  %v2220_v44 = vld [vmem:[#allocation5 + $0x1e8] sm:$0xff] }
 0x7a7   :  { %v4854_v61 = vpack.c.bf16 %v2220_v44, %v2216_v40  ;;  %v2223_v44 = vld [vmem:[#allocation7] sm:$0xff] }
 0x7a9   :  { %4837 = vmatpush1.bf16.msra.mxu0 %v4836_v45  ;;  %4869 = vmatpush1.bf16.msra.mxu1 %v4868_v60  ;;  %v2218_v45 = vld [vmem:[#allocation5 + $0x1d8] sm:$0xff]  ;;  %v4884_v60 = vpack.c.bf16 %v2213_v39, %v2209_v32 }
 0x7aa   :  { %4839 = vmatprep.subr.bf16.mxu0 %v4838_v13  ;;  %4871 = vmatprep.subr.bf16.mxu1 %v4870_v35  ;;  %v2217_v13 = vld [vmem:[#allocation5 + $0x1d0] sm:$0xff]  ;;  %v4886_v22 = vpack.c.bf16 %v2222_v53, %v2218_v45  ;;  %v2228_v35 = vld [vmem:[#allocation7 + $0x28] sm:$0xff]  ;;  %v2227_v53 = vld [vmem:[#allocation7 + $0x20] sm:$0xff] }
 0x7ab   :  { %v4888_v0 = vpack.c.bf16 %v2221_v23, %v2217_v13  ;;  %v2236_v13 = vld [vmem:[#allocation7 + $0x68] sm:$0xff] }
 0x7ad   :  { %4841 = vmatpush1.bf16.msra.mxu0 %v4840_v47  ;;  %4873 = vmatpush1.bf16.msra.mxu1 %v4872_v51  ;;  %v2226_v47 = vld [vmem:[#allocation7 + $0x18] sm:$0xff]  ;;  %v4890_v51 = vpack.c.bf16 %v2228_v35, %v2224_v33  ;;  %v4892_v33 = vpack.c.bf16 %v2227_v53, %v2223_v44  ;;  %v2231_v35 = vld [vmem:[#allocation7 + $0x40] sm:$0xff] }
 0x7ae   :  { %4843 = vmatprep.subr.bf16.mxu0 %v4842_v43  ;;  %4875 = vmatprep.subr.bf16.mxu1 %v4874_v1  ;;  %v4922_v30 = vpack.c.bf16 %v2230_v49, %v2226_v47  ;;  %v2235_v47 = vld [vmem:[#allocation7 + $0x60] sm:$0xff] }
 0x7af   :  { %v2267_v53 = vld [vmem:[#allocation7 + $0x160] sm:$0xff] }
 0x7b1   :  { %4845 = vmatpush1.bf16.msra.mxu0 %v4844_v57  ;;  %4877 = vmatpush1.bf16.msra.mxu1 %v4876_v63 }
 0x7b2   :  { %4847 = vmatprep.subr.bf16.mxu0 %v4846_v29  ;;  %4879 = vmatprep.subr.bf16.mxu1 %v4878_v58 }
 0x7b5   :  { %4849 = vmatpush1.bf16.msra.mxu0 %v4848_v4  ;;  %4881 = vmatpush1.bf16.msra.mxu1 %v4880_v16  ;;  %v2092_v4 = vrot.slane %v6514_v14, 6 }
 0x7b6   :  { %4851 = vmatprep.subr.bf16.mxu0 %v4850_v19  ;;  %4883 = vmatprep.subr.bf16.mxu1 %v4882_v31  ;;  %v7064_v19 = vld [vmem:[#allocation17_spill] sm:$0xff] }
 0x7b7   :  { %v2148_v20 = vmul.f32 %v6411_v59, %v7064_v19  ;;  %v2105_v14 = vmul.f32 %v6408_v48, %v7064_v19 }
 0x7b9   :  { %4853 = vmatpush1.bf16.msra.mxu0 %v4852_v56  ;;  %4885 = vmatpush1.bf16.msra.mxu1 %v4884_v60  ;;  %v2150_v39 = vrot.slane %v2148_v20, 2  ;;  %v2225_v56 = vld [vmem:[#allocation7 + $0x10] sm:$0xff] }
 0x7ba   :  { %4855 = vmatprep.subr.bf16.mxu0 %v4854_v61  ;;  %4887 = vmatprep.subr.bf16.mxu1 %v4886_v22  ;;  %v2229_v60 = vld [vmem:[#allocation7 + $0x30] sm:$0xff]  ;;  %v2238_v22 = vld [vmem:[#allocation7 + $0x78] sm:$0xff] }
 0x7bd   :  { %4857 = vmatpush1.bf16.msra.mxu0 %v4856_v24  ;;  %4889 = vmatpush1.bf16.msra.mxu1 %v4888_v0  ;;  %v2233_v24 = vld [vmem:[#allocation7 + $0x50] sm:$0xff] }
 0x7be   :  { %4891 = vmatprep.subr.bf16.mxu0 %v4890_v51  ;;  %4923 = vmatprep.subr.bf16.mxu1 %v4922_v30  ;;  %v2237_v0 = vld [vmem:[#allocation7 + $0x70] sm:$0xff]  ;;  %v2240_v51 = vld [vmem:[#allocation7 + $0x88] sm:$0xff]  ;;  %v4894_v30 = vpack.c.bf16 %v2236_v13, %v2232_v10 }
 0x7bf   :  { %v2269_v10 = vld [vmem:[#allocation7 + $0x170] sm:$0xff]  ;;  %v2272_v13 = vld [vmem:[#allocation7 + $0x188] sm:$0xff] }
 0x872   :  { %v1980_v17 = vpop.f32.mrb[22].mxu0  ;;  %v2051_v21 = vpop.f32.mrb[22].mxu1 }
 0x873   :  { %v2060_v43 = vrot.slane %v1980_v17, 2  ;;  %v1982_v1 = vpop.f32.mrb[23].mxu0  ;;  %v2053_v18 = vpop.f32.mrb[23].mxu1  ;;  %v2062_v29 = vrot.slane %v2051_v21, 2  ;;  %v2244_v21 = vld [vmem:[#allocation7 + $0xa8] sm:$0xff] }
 0x874   :  { %v2061_v12 = vrot.slane %v1982_v1, 2  ;;  %v2063_v25 = vrot.slane %v2053_v18, 2  ;;  %v2246_v1 = vld [vmem:[#allocation7 + $0xb8] sm:$0xff]  ;;  %v2239_v18 = vld [vmem:[#allocation7 + $0x80] sm:$0xff] }
 0x875   :  { %v2068_v41 = vadd.f32 %v2060_v43, %v6186_v50  ;;  %v2070_v54 = vadd.f32 %v2062_v29, %v7062_v46  ;;  %v2242_v43 = vld [vmem:[#allocation7 + $0x98] sm:$0xff] }
 0x876   :  { %v2069_v57 = vadd.f32 %v2061_v12, %v7060_v34  ;;  %v2071_v63 = vadd.f32 %v2063_v25, %v7061_v42  ;;  %v2243_v12 = vld [vmem:[#allocation7 + $0xa0] sm:$0xff]  ;;  %v2252_v25 = vld [vmem:[#allocation7 + $0xe8] sm:$0xff]  ;;  %v2254_v29 = vld [vmem:[#allocation7 + $0xf8] sm:$0xff] }
 0x877   :  { %v4283_v38 = vmul.f32 -1.442695, %v2068_v41  ;;  %v4930_v41 = vpack.c.bf16 %v2246_v1, %v2242_v43  ;;  %v2286_v43 = vld [vmem:[#allocation7 + $0x1f8] sm:$0xff] }
 0x878   :  { %v4284_v5 = vmul.f32 -1.442695, %v2069_v57  ;;  %v4285_v36 = vmul.f32 -1.442695, %v2071_v63  ;;  %v2241_v57 = vld [vmem:[#allocation7 + $0x90] sm:$0xff]  ;;  %v2250_v63 = vld [vmem:[#allocation7 + $0xd8] sm:$0xff] }
 0x879   :  { %5589 = vpow2.f32 %v4283_v38  ;;  %v2245_v38 = vld [vmem:[#allocation7 + $0xb0] sm:$0xff] }
 0x87a   :  { %5591 = vpow2.f32 %v4284_v5  ;;  %v2248_v5 = vld [vmem:[#allocation7 + $0xc8] sm:$0xff] }
 0x87b   :  { %5593 = vpow2.f32 %v4285_v36  ;;  %v4900_v36 = vpack.c.bf16 %v2243_v12, %v2239_v18  ;;  %v2283_v18 = vld [vmem:[#allocation7 + $0x1e0] sm:$0xff] }
 0x87c   :  { %5595 = vtanh.f32 %v2070_v54  ;;  %v4932_v54 = vpack.c.bf16 %v2245_v38, %v2241_v57  ;;  %v2285_v57 = vld [vmem:[#allocation7 + $0x1f0] sm:$0xff]  ;;  %v2288_v38 = vld [vmem:[#allocation8 + $0x8] sm:$0xff] }
 0x883   :  { %v5590_v55 = vpop.eup %5589 }
 0x884   :  { %v5592_v58 = vpop.eup %5591  ;;  %v2075_v26 = vadd.f32 1.0, %v5590_v55  ;;  %v2247_v55 = vld [vmem:[#allocation7 + $0xc0] sm:$0xff] }
 0x885   :  { %v2081_v62 = vadd.f32 1.0, %v5592_v58  ;;  %v5594_v50 = vpop.eup %5593  ;;  %v2251_v58 = vld [vmem:[#allocation7 + $0xe0] sm:$0xff] }
 0x886   :  { %5597 = vrcp.f32 %v2075_v26  ;;  %v5596_v34 = vpop.eup %5595  ;;  %v2088_v42 = vadd.f32 1.0, %v5594_v50  ;;  %v4902_v26 = vpack.c.bf16 %v2252_v25, %v2248_v5  ;;  %v2249_v50 = vld [vmem:[#allocation7 + $0xd0] sm:$0xff]  ;;  %v2292_v5 = vld [vmem:[#allocation8 + $0x28] sm:$0xff]  ;;  %v2290_v25 = vld [vmem:[#allocation8 + $0x18] sm:$0xff] }
 0x887   :  { %5599 = vrcp.f32 %v2081_v62  ;;  %v4934_v62 = vpack.c.bf16 %v2254_v29, %v2250_v63  ;;  %v2294_v63 = vld [vmem:[#allocation8 + $0x38] sm:$0xff] }
 0x888   :  { %5601 = vrcp.f32 %v2088_v42  ;;  %v4904_v42 = vpack.c.bf16 %v2251_v58, %v2247_v55  ;;  %v6562_v55 = vpack.c.bf16 %v2292_v5, %v2288_v38  ;;  %v6564_v58 = vpack.c.bf16 %v2294_v63, %v2290_v25  ;;  %v2334_v38 = vld [vmem:[#allocation8 + $0x178] sm:$0xff]  ;;  %v2327_v63 = vld [vmem:[#allocation8 + $0x140] sm:$0xff] }
 0x890   :  { %v5598_v3 = vpop.eup %5597 }
 0x891   :  { %v5600_v7 = vpop.eup %5599  ;;  %v2095_v8 = vmul.f32 %v5598_v3, %v5596_v34  ;;  %v2253_v34 = vld [vmem:[#allocation7 + $0xf0] sm:$0xff]  ;;  %v2256_v3 = vld [vmem:[#allocation7 + $0x108] sm:$0xff] }
 0x892   :  { %v2094_v15 = vmul.f32 %v5600_v7, %v2092_v4  ;;  %v5602_v46 = vpop.eup %5601  ;;  %v2260_v4 = vld [vmem:[#allocation7 + $0x128] sm:$0xff]  ;;  %v2258_v7 = vld [vmem:[#allocation7 + $0x118] sm:$0xff] }
 0x893   :  { %v4906_v19 = vpack.c.bf16 %v2260_v4, %v2256_v3  ;;  %v2300_v3 = vld [vmem:[#allocation8 + $0x68] sm:$0xff]  ;;  %v2298_v4 = vld [vmem:[#allocation8 + $0x58] sm:$0xff] }
 0x894   :  { %v2096_v16 = vadd.f32 %v2095_v8, %v2094_v15  ;;  %v2262_v8 = vld [vmem:[#allocation7 + $0x138] sm:$0xff]  ;;  %v4936_v15 = vpack.c.bf16 %v2253_v34, %v2249_v50  ;;  %v2293_v50 = vld [vmem:[#allocation8 + $0x30] sm:$0xff]  ;;  %v2296_v34 = vld [vmem:[#allocation8 + $0x48] sm:$0xff] }
 0x895   :  { %v4938_v20 = vpack.c.bf16 %v2262_v8, %v2258_v7  ;;  %v2302_v7 = vld [vmem:[#allocation8 + $0x78] sm:$0xff] }
 0x896   :  { %5603 = vtanh.f32 %v2096_v16  ;;  %v2255_v16 = vld [vmem:[#allocation7 + $0x100] sm:$0xff] }
 0x8a0   :  { %v5604_v27 = vpop.eup %5603 }
 0x8a1   :  { %v2098_v28 = vmul.f32 %v5604_v27, %v5602_v46  ;;  %v2259_v46 = vld [vmem:[#allocation7 + $0x120] sm:$0xff]  ;;  %v2257_v27 = vld [vmem:[#allocation7 + $0x110] sm:$0xff] }
 0x8a3   :  { %v2106_v31 = vmul.f32 %v6411_v59, %v2098_v28  ;;  %v2147_v32 = vmul.f32 %v6408_v48, %v2098_v28  ;;  %v2234_v59 = vld [vmem:[#allocation7 + $0x58] sm:$0xff]  ;;  %v4924_v48 = vpack.c.bf16 %v2229_v60, %v2225_v56  ;;  %v2261_v28 = vld [vmem:[#allocation7 + $0x130] sm:$0xff] }
 0x8a4   :  { %v4926_v17 = vpack.c.bf16 %v2238_v22, %v2234_v59  ;;  %v4940_v44 = vpack.c.bf16 %v2261_v28, %v2257_v27  ;;  %v2276_v59 = vld [vmem:[#allocation7 + $0x1a8] sm:$0xff]  ;;  %v2274_v22 = vld [vmem:[#allocation7 + $0x198] sm:$0xff]  ;;  %v6572_v27 = vpack.c.bf16 %v2300_v3, %v2296_v34  ;;  %v6574_v28 = vpack.c.bf16 %v2302_v7, %v2298_v4 }
 0x8a5   :  { %v2108_v40 = vrot.slane %v2106_v31, 6  ;;  %v2152_v45 = vadd.f32 %v2150_v39, %v2147_v32  ;;  %v2264_v31 = vld [vmem:[#allocation7 + $0x148] sm:$0xff]  ;;  %v2266_v39 = vld [vmem:[#allocation7 + $0x158] sm:$0xff] }
 0x8a6   :  { %v2268_v32 = vld [vmem:[#allocation7 + $0x168] sm:$0xff]  ;;  %v2338_v3 = vld [vmem:[#allocation8 + $0x198] sm:$0xff] }
 0x8a7   :  { %v2110_v61 = vadd.f32 %v2108_v40, %v2105_v14  ;;  %v6544_v11 = vsel %vm140_vm7, %v6529_v2, %v2152_v45  ;;  %v2270_v14 = vld [vmem:[#allocation7 + $0x178] sm:$0xff]  ;;  %v4908_v40 = vpack.c.bf16 %v2259_v46, %v2255_v16  ;;  %v2263_v45 = vld [vmem:[#allocation7 + $0x140] sm:$0xff]  ;;  %v4910_v56 = vpack.c.bf16 %v2268_v32, %v2264_v31  ;;  %v2297_v46 = vld [vmem:[#allocation8 + $0x50] sm:$0xff] }
 0x8a8   :  { %v4942_v60 = vpack.c.bf16 %v2270_v14, %v2266_v39  ;;  %v2299_v16 = vld [vmem:[#allocation8 + $0x60] sm:$0xff]  ;;  %v2308_v31 = vld [vmem:[#allocation8 + $0xa8] sm:$0xff]  ;;  %v2306_v32 = vld [vmem:[#allocation8 + $0x98] sm:$0xff] }
 0x8a9   :  { %v2153_v23 = vsel %vm136_vm5, %v2110_v61, %v6525_v52  ;;  %v4896_v52 = vpack.c.bf16 %v2235_v47, %v2231_v35  ;;  %v2265_v61 = vld [vmem:[#allocation7 + $0x150] sm:$0xff]  ;;  %v2271_v35 = vld [vmem:[#allocation7 + $0x180] sm:$0xff]  ;;  %v2310_v39 = vld [vmem:[#allocation8 + $0xb8] sm:$0xff] }
 0x8aa   :  { %v2154_v49 = vsel %vm138_vm6, %v2153_v23, %v6475_v37  ;;  %v4928_v37 = vpack.c.bf16 %v2237_v0, %v2233_v24  ;;  %v2278_v23 = vld [vmem:[#allocation7 + $0x1b8] sm:$0xff]  ;;  %v2275_v47 = vld [vmem:[#allocation7 + $0x1a0] sm:$0xff]  ;;  %v2273_v0 = vld [vmem:[#allocation7 + $0x190] sm:$0xff] }
 0x8ab   :  { %v6552_v2 = vsel %vm140_vm7, %v2154_v49, %v6427_v6  ;;  %v4898_v6 = vpack.c.bf16 %v2244_v21, %v2240_v51  ;;  %v4914_v49 = vpack.c.bf16 %v2276_v59, %v2272_v13  ;;  %v4946_v24 = vpack.c.bf16 %v2278_v23, %v2274_v22  ;;  %v2277_v51 = vld [vmem:[#allocation7 + $0x1b0] sm:$0xff]  ;;  %v2282_v21 = vld [vmem:[#allocation7 + $0x1d8] sm:$0xff]  ;;  %v2340_v34 = vld [vmem:[#allocation8 + $0x1a8] sm:$0xff] }
 0x8ac   :  { %2438 = vmatmul.mubr.f32.vlgmr.msra.gmra.mrb[24].mxu0 %v6552_v2  ;;  %2515 = vmatmul.mubr.f32.vlgmr.msra.gmra.mrb[24].mxu1 %v6552_v2  ;;  %v4916_v1 = vpack.c.bf16 %v2275_v47, %v2271_v35  ;;  %v2314_v13 = vld [vmem:[#allocation8 + $0xd8] sm:$0xff] }
 0x8ad   :  { %4893 = vmatpush1.bf16.msra.mxu0 %v4892_v33  ;;  %4925 = vmatpush1.bf16.msra.mxu1 %v4924_v48  ;;  %v4912_v33 = vpack.c.bf16 %v2267_v53, %v2263_v45  ;;  %v4944_v48 = vpack.c.bf16 %v2269_v10, %v2265_v61  ;;  %v2307_v45 = vld [vmem:[#allocation8 + $0xa0] sm:$0xff]  ;;  %v2312_v61 = vld [vmem:[#allocation8 + $0xc8] sm:$0xff]  ;;  %v2318_v59 = vld [vmem:[#allocation8 + $0xf8] sm:$0xff] }
 0x8ae   :  { %2443 = vmatprep.mubr.f32.mxu0 %v7057_v9  ;;  %2520 = vmatprep.mubr.f32.mxu1 %v7057_v9  ;;  %v2316_v10 = vld [vmem:[#allocation8 + $0xe8] sm:$0xff]  ;;  %v6604_v47 = vpack.c.bf16 %v2318_v59, %v2314_v13  ;;  %v2342_v4 = vld [vmem:[#allocation8 + $0x1b8] sm:$0xff] }
 0x8af   :  { %4895 = vmatprep.subr.bf16.mxu0 %v4894_v30  ;;  %4927 = vmatprep.subr.bf16.mxu1 %v4926_v17  ;;  %v2280_v30 = vld [vmem:[#allocation7 + $0x1c8] sm:$0xff]  ;;  %v6602_v35 = vpack.c.bf16 %v2316_v10, %v2312_v61  ;;  %v2343_v10 = vld [vmem:[#allocation8 + $0x1c0] sm:$0xff] }
 0x8b0   :  { %2444 = vmatmul.mubr.f32.gmra.mrb[26].mxu0 %v6544_v11  ;;  %2521 = vmatmul.mubr.f32.gmra.mrb[26].mxu1 %v6544_v11  ;;  %v2284_v17 = vld [vmem:[#allocation7 + $0x1e8] sm:$0xff] }
 0x8b1   :  { %4897 = vmatpush1.bf16.msra.mxu0 %v4896_v52  ;;  %4929 = vmatpush1.bf16.msra.mxu1 %v4928_v37  ;;  %v4948_v52 = vpack.c.bf16 %v2277_v51, %v2273_v0  ;;  %v2279_v37 = vld [vmem:[#allocation7 + $0x1c0] sm:$0xff]  ;;  %v4918_v12 = vpack.c.bf16 %v2284_v17, %v2280_v30  ;;  %v2324_v0 = vld [vmem:[#allocation8 + $0x128] sm:$0xff]  ;;  %v2322_v51 = vld [vmem:[#allocation8 + $0x118] sm:$0xff] }
 0x8b2   :  { %4899 = vmatprep.subr.bf16.mxu0 %v4898_v6  ;;  %4931 = vmatprep.subr.bf16.mxu1 %v4930_v41  ;;  %v4950_v6 = vpack.c.bf16 %v2286_v43, %v2282_v21  ;;  %v2281_v41 = vld [vmem:[#allocation7 + $0x1d0] sm:$0xff]  ;;  %v4920_v29 = vpack.c.bf16 %v2283_v18, %v2279_v37  ;;  %v2326_v30 = vld [vmem:[#allocation8 + $0x138] sm:$0xff]  ;;  %v2319_v43 = vld [vmem:[#allocation8 + $0x100] sm:$0xff] }
 0x8b3   :  { %2591 = vmatprep.mubr.f32.mxu0 %v7057_v9  ;;  %2668 = vmatprep.mubr.f32.mxu1 %v7057_v9  ;;  %v6618_v37 = vpack.c.bf16 %v2326_v30, %v2322_v51  ;;  %v2321_v18 = vld [vmem:[#allocation8 + $0x110] sm:$0xff] }
 0x8b5   :  { %4901 = vmatpush1.bf16.msra.mxu0 %v4900_v36  ;;  %4933 = vmatpush1.bf16.msra.mxu1 %v4932_v54  ;;  %v4952_v36 = vpack.c.bf16 %v2285_v57, %v2281_v41  ;;  %v2287_v54 = vld [vmem:[#allocation8] sm:$0xff]  ;;  %v2332_v41 = vld [vmem:[#allocation8 + $0x168] sm:$0xff]  ;;  %v2330_v57 = vld [vmem:[#allocation8 + $0x158] sm:$0xff] }
 0x8b6   :  { %4903 = vmatprep.subr.bf16.mxu0 %v4902_v26  ;;  %4935 = vmatprep.subr.bf16.mxu1 %v4934_v62  ;;  %v2291_v26 = vld [vmem:[#allocation8 + $0x20] sm:$0xff]  ;;  %v2289_v62 = vld [vmem:[#allocation8 + $0x10] sm:$0xff] }
 0x8b7   :  { %v6566_v8 = vpack.c.bf16 %v2291_v26, %v2287_v54  ;;  %v6630_v54 = vpack.c.bf16 %v2334_v38, %v2330_v57  ;;  %v2329_v26 = vld [vmem:[#allocation8 + $0x150] sm:$0xff] }
 0x8b9   :  { %4905 = vmatpush1.bf16.msra.mxu0 %v4904_v42  ;;  %4937 = vmatpush1.bf16.msra.mxu1 %v4936_v15  ;;  %v6568_v42 = vpack.c.bf16 %v2293_v50, %v2289_v62  ;;  %v2295_v15 = vld [vmem:[#allocation8 + $0x40] sm:$0xff]  ;;  %v2333_v62 = vld [vmem:[#allocation8 + $0x170] sm:$0xff]  ;;  %v2336_v50 = vld [vmem:[#allocation8 + $0x188] sm:$0xff] }
 0x8ba   :  { %4907 = vmatprep.subr.bf16.mxu0 %v4906_v19  ;;  %4939 = vmatprep.subr.bf16.mxu1 %v4938_v20  ;;  %v2301_v19 = vld [vmem:[#allocation8 + $0x70] sm:$0xff]  ;;  %v2304_v20 = vld [vmem:[#allocation8 + $0x88] sm:$0xff]  ;;  %v6580_v14 = vpack.c.bf16 %v2299_v16, %v2295_v15  ;;  %v6636_v15 = vpack.c.bf16 %v2333_v62, %v2329_v26  ;;  %v2335_v16 = vld [vmem:[#allocation8 + $0x180] sm:$0xff] }
 0x8bb   :  { %v6586_v53 = vpack.c.bf16 %v2308_v31, %v2304_v20  ;;  %v6642_v20 = vpack.c.bf16 %v2342_v4, %v2338_v3  ;;  %v2337_v31 = vld [vmem:[#allocation8 + $0x190] sm:$0xff] }
 0x8bd   :  { %4909 = vmatpush1.bf16.msra.mxu0 %v4908_v40  ;;  %4941 = vmatpush1.bf16.msra.mxu1 %v4940_v44  ;;  %v6582_v40 = vpack.c.bf16 %v2301_v19, %v2297_v46  ;;  %v2303_v44 = vld [vmem:[#allocation8 + $0x80] sm:$0xff]  ;;  %v6640_v19 = vpack.c.bf16 %v2340_v34, %v2336_v50 }
 0x8be   :  { %4911 = vmatprep.subr.bf16.mxu0 %v4910_v56  ;;  %4943 = vmatprep.subr.bf16.mxu1 %v4942_v60  ;;  %v6588_v56 = vpack.c.bf16 %v2310_v39, %v2306_v32  ;;  %v2305_v60 = vld [vmem:[#allocation8 + $0x90] sm:$0xff]  ;;  %v6596_v22 = vpack.c.bf16 %v2307_v45, %v2303_v44  ;;  %v2339_v46 = vld [vmem:[#allocation8 + $0x1a0] sm:$0xff]  ;;  %v2344_v39 = vld [vmem:[#allocation8 + $0x1c8] sm:$0xff] }
 0x8bf   :  { %v2341_v32 = vld [vmem:[#allocation8 + $0x1b0] sm:$0xff]  ;;  %v2348_v44 = vld [vmem:[#allocation8 + $0x1e8] sm:$0xff]  ;;  %v2346_v45 = vld [vmem:[#allocation8 + $0x1d8] sm:$0xff] }
 0x8c0   :  { %v6648_v61 = vpack.c.bf16 %v2341_v32, %v2337_v31  ;;  %v6652_v13 = vpack.c.bf16 %v2348_v44, %v2344_v39 }
 0x8c1   :  { %4913 = vmatpush1.bf16.msra.mxu0 %v4912_v33  ;;  %4945 = vmatpush1.bf16.msra.mxu1 %v4944_v48  ;;  %v2311_v33 = vld [vmem:[#allocation8 + $0xc0] sm:$0xff] }
 0x8c2   :  { %4915 = vmatprep.subr.bf16.mxu0 %v4914_v49  ;;  %4947 = vmatprep.subr.bf16.mxu1 %v4946_v24  ;;  %v2315_v48 = vld [vmem:[#allocation8 + $0xe0] sm:$0xff]  ;;  %v2313_v49 = vld [vmem:[#allocation8 + $0xd0] sm:$0xff]  ;;  %v2320_v24 = vld [vmem:[#allocation8 + $0x108] sm:$0xff] }
 0x8c3   :  { %v6610_v17 = vpack.c.bf16 %v2315_v48, %v2311_v33  ;;  %v2347_v33 = vld [vmem:[#allocation8 + $0x1e0] sm:$0xff]  ;;  %v2345_v48 = vld [vmem:[#allocation8 + $0x1d0] sm:$0xff] }
 0x8c5   :  { %4917 = vmatpush1.bf16.msra.mxu0 %v4916_v1  ;;  %4949 = vmatpush1.bf16.msra.mxu1 %v4948_v52  ;;  %v2323_v1 = vld [vmem:[#allocation8 + $0x120] sm:$0xff]  ;;  %v6616_v52 = vpack.c.bf16 %v2324_v0, %v2320_v24 }
 0x8c6   :  { %4919 = vmatprep.subr.bf16.mxu0 %v4918_v12  ;;  %4951 = vmatprep.subr.bf16.mxu1 %v4950_v6  ;;  %v2325_v12 = vld [vmem:[#allocation8 + $0x130] sm:$0xff]  ;;  %v2328_v6 = vld [vmem:[#allocation8 + $0x148] sm:$0xff]  ;;  %v6622_v5 = vpack.c.bf16 %v2323_v1, %v2319_v43  ;;  %v2351_v0 = vld [vmem:[%s7027_s8] sm:$0xf] }
 0x8c7   :  { %v6624_v25 = vpack.c.bf16 %v2325_v12, %v2321_v18  ;;  %v7065_v18 = vld [vmem:[#allocation13_spill] sm:$0xff] }
 0x8c8   :  { %v7066_v12 = vsub.s32 0, %v7065_v18  ;;  %v7068_v38 = vsub.s32 1, %v7065_v18 }
 0x8c9   :  { %4921 = vmatpush1.bf16.msra.mxu0 %v4920_v29  ;;  %4953 = vmatpush1.bf16.msra.mxu1 %v4952_v36  ;;  %v2331_v29 = vld [vmem:[#allocation8 + $0x160] sm:$0xff]  ;;  %v6628_v36 = vpack.c.bf16 %v2332_v41, %v2328_v6  ;;  %v7067_v41 = vsub.s32 2, %v7065_v18 }
 0x8ca   :  { %4955 = vmatprep.subr.bf16.mxu0 %v6562_v55  ;;  %4987 = vmatprep.subr.bf16.mxu1 %v6564_v58  ;;  %v6634_v7 = vpack.c.bf16 %v2331_v29, %v2327_v63  ;;  %v2356_v6 = vrot.slane %v2351_v0, %v7066_v12  ;;  %v2360_v63 = vrot.slane %v2351_v0, %v7068_v38  ;;  %v7069_v29 = vsub.s32 3, %v7065_v18 }
 0x8cb   :  { %v2364_v57 = vrot.slane %v2351_v0, %v7067_v41 }
 0x8cc   :  { %2592 = vmatmul.mubr.f32.vlgmr.msra.gmra.mrb[28].mxu0 %v6552_v2  ;;  %2669 = vmatmul.mubr.f32.vlgmr.msra.gmra.mrb[28].mxu1 %v6552_v2  ;;  %v2309_v2 = vld [vmem:[#allocation8 + $0xb0] sm:$0xff]  ;;  %v2368_v26 = vrot.slane %v2351_v0, %v7069_v29 }
 0x8cd   :  { %4957 = vmatpush1.bf16.msra.mxu0 %v6566_v8  ;;  %4989 = vmatpush1.bf16.msra.mxu1 %v6568_v42  ;;  %v6598_v23 = vpack.c.bf16 %v2309_v2, %v2305_v60  ;;  %v2350_v60 = vld [vmem:[#allocation8 + $0x1f8] sm:$0xff]  ;;  %v6646_v2 = vpack.c.bf16 %v2339_v46, %v2335_v16 }
 0x8ce   :  { %2597 = vmatprep.mubr.f32.mxu0 %v7057_v9  ;;  %2674 = vmatprep.mubr.f32.mxu1 %v7057_v9  ;;  %v6654_v59 = vpack.c.bf16 %v2350_v60, %v2346_v45 }
 0x8cf   :  { %4959 = vmatprep.subr.bf16.mxu0 %v6572_v27  ;;  %4991 = vmatprep.subr.bf16.mxu1 %v6574_v28 }
 0x8d0   :  { %2598 = vmatmul.mubr.f32.gmra.mrb[30].mxu0 %v6544_v11  ;;  %2675 = vmatmul.mubr.f32.gmra.mrb[30].mxu1 %v6544_v11  ;;  %v2317_v11 = vld [vmem:[#allocation8 + $0xf0] sm:$0xff] }
 0x8d1   :  { %4961 = vmatpush1.bf16.msra.mxu0 %v6580_v14  ;;  %4993 = vmatpush1.bf16.msra.mxu1 %v6582_v40  ;;  %v6612_v21 = vpack.c.bf16 %v2317_v11, %v2313_v49  ;;  %v2349_v49 = vld [vmem:[#allocation8 + $0x1f0] sm:$0xff]  ;;  %v6658_v11 = vpack.c.bf16 %v2347_v33, %v2343_v10 }
 0x8d2   :  { %4963 = vmatprep.subr.bf16.mxu0 %v6586_v53  ;;  %4995 = vmatprep.subr.bf16.mxu1 %v6588_v56  ;;  %v6660_v24 = vpack.c.bf16 %v2349_v49, %v2345_v48 }
 0x8d3   :  { %2761 = vmatprep.mubr.f32.mxu0 %v7057_v9  ;;  %2832 = vmatprep.mubr.f32.mxu1 %v7057_v9 }
 0x8d5   :  { %4965 = vmatpush1.bf16.msra.mxu0 %v6596_v22  ;;  %4997 = vmatpush1.bf16.msra.mxu1 %v6598_v23 }
 0x8d6   :  { %4967 = vmatprep.subr.bf16.mxu0 %v6602_v35  ;;  %4999 = vmatprep.subr.bf16.mxu1 %v6604_v47 }
 0x8d9   :  { %4969 = vmatpush1.bf16.msra.mxu0 %v6610_v17  ;;  %5001 = vmatpush1.bf16.msra.mxu1 %v6612_v21 }
 0x8da   :  { %4971 = vmatprep.subr.bf16.mxu0 %v6616_v52  ;;  %5003 = vmatprep.subr.bf16.mxu1 %v6618_v37 }
 0x8dd   :  { %4973 = vmatpush1.bf16.msra.mxu0 %v6622_v5  ;;  %5005 = vmatpush1.bf16.msra.mxu1 %v6624_v25 }
 0x8de   :  { %4975 = vmatprep.subr.bf16.mxu0 %v6628_v36  ;;  %5007 = vmatprep.subr.bf16.mxu1 %v6630_v54 }
 0x8e1   :  { %4977 = vmatpush1.bf16.msra.mxu0 %v6634_v7  ;;  %5009 = vmatpush1.bf16.msra.mxu1 %v6636_v15 }
 0x8e2   :  { %4979 = vmatprep.subr.bf16.mxu0 %v6640_v19  ;;  %5011 = vmatprep.subr.bf16.mxu1 %v6642_v20 }
 0x8e5   :  { %4981 = vmatpush1.bf16.msra.mxu0 %v6646_v2  ;;  %5013 = vmatpush1.bf16.msra.mxu1 %v6648_v61 }
 0x8e6   :  { %4983 = vmatprep.subr.bf16.mxu0 %v6652_v13  ;;  %5015 = vmatprep.subr.bf16.mxu1 %v6654_v59 }
 0x8e9   :  { %4985 = vmatpush1.bf16.msra.mxu0 %v6658_v11  ;;  %5017 = vmatpush1.bf16.msra.mxu1 %v6660_v24 }
 0x8ea   :  { %5019 = vmatprep.subr.bf16.mxu0 %v6562_v55  ;;  %5051 = vmatprep.subr.bf16.mxu1 %v6564_v58 }
 0x8ec   :  { %2762 = vmatmul.mubr.f32.vlgmr.msra.gmra.mrb[32].mxu0 %v7057_v9  ;;  %2833 = vmatmul.mubr.f32.vlgmr.msra.gmra.mrb[32].mxu1 %v7057_v9 }
 0x8ed   :  { %5021 = vmatpush1.bf16.msra.mxu0 %v6566_v8  ;;  %5053 = vmatpush1.bf16.msra.mxu1 %v6568_v42 }
 0x8ee   :  { %5023 = vmatprep.subr.bf16.mxu0 %v6572_v27  ;;  %5055 = vmatprep.subr.bf16.mxu1 %v6574_v28 }
 0x8ef   :  { %2943 = vmatprep.mubr.f32.mxu0 %v7057_v9  ;;  %3014 = vmatprep.mubr.f32.mxu1 %v7057_v9 }
 0x8f1   :  { %5025 = vmatpush1.bf16.msra.mxu0 %v6580_v14  ;;  %5057 = vmatpush1.bf16.msra.mxu1 %v6582_v40 }
 0x8f2   :  { %5027 = vmatprep.subr.bf16.mxu0 %v6586_v53  ;;  %5059 = vmatprep.subr.bf16.mxu1 %v6588_v56 }
 0x8f5   :  { %5029 = vmatpush1.bf16.msra.mxu0 %v6596_v22  ;;  %5061 = vmatpush1.bf16.msra.mxu1 %v6598_v23 }
 0x8f6   :  { %5031 = vmatprep.subr.bf16.mxu0 %v6602_v35  ;;  %5063 = vmatprep.subr.bf16.mxu1 %v6604_v47 }
 0x8f9   :  { %5033 = vmatpush1.bf16.msra.mxu0 %v6610_v17  ;;  %5065 = vmatpush1.bf16.msra.mxu1 %v6612_v21 }
 0x8fa   :  { %5035 = vmatprep.subr.bf16.mxu0 %v6616_v52  ;;  %5067 = vmatprep.subr.bf16.mxu1 %v6618_v37 }
 0x8fd   :  { %5037 = vmatpush1.bf16.msra.mxu0 %v6622_v5  ;;  %5069 = vmatpush1.bf16.msra.mxu1 %v6624_v25 }
 0x8fe   :  { %5039 = vmatprep.subr.bf16.mxu0 %v6628_v36  ;;  %5071 = vmatprep.subr.bf16.mxu1 %v6630_v54 }
 0x901   :  { %5041 = vmatpush1.bf16.msra.mxu0 %v6634_v7  ;;  %5073 = vmatpush1.bf16.msra.mxu1 %v6636_v15 }
 0x902   :  { %5043 = vmatprep.subr.bf16.mxu0 %v6640_v19  ;;  %5075 = vmatprep.subr.bf16.mxu1 %v6642_v20 }
 0x905   :  { %5045 = vmatpush1.bf16.msra.mxu0 %v6646_v2  ;;  %5077 = vmatpush1.bf16.msra.mxu1 %v6648_v61 }
 0x906   :  { %5047 = vmatprep.subr.bf16.mxu0 %v6652_v13  ;;  %5079 = vmatprep.subr.bf16.mxu1 %v6654_v59 }
 0x909   :  { %5049 = vmatpush1.bf16.msra.mxu0 %v6658_v11  ;;  %5081 = vmatpush1.bf16.msra.mxu1 %v6660_v24 }
 0x90a   :  { %5083 = vmatprep.subr.bf16.mxu0 %v6562_v55  ;;  %5115 = vmatprep.subr.bf16.mxu1 %v6564_v58 }
 0x97f   :  { %v2439_v51 = vpop.f32.mrb[24].mxu0  ;;  %v2516_v30 = vpop.f32.mrb[24].mxu1 }
 0x980   :  { %v2441_v43 = vpop.f32.mrb[25].mxu0  ;;  %v2518_v1 = vpop.f32.mrb[25].mxu1  ;;  %v2440_v32 = vadd.f32 %v2439_v51, %v2356_v6  ;;  %v2517_v39 = vadd.f32 %v2516_v30, %v2364_v57 }
 0x981   :  { %v2442_v44 = vadd.f32 %v2441_v43, %v2360_v63  ;;  %v2519_v45 = vadd.f32 %v2518_v1, %v2368_v26 }
 0x983   :  { %v2445_v62 = vpop.f32.mrb[26].mxu0  ;;  %v2522_v50 = vpop.f32.mrb[26].mxu1 }
 0x984   :  { %v2446_v34 = vadd.f32 %v2445_v62, %v2356_v6  ;;  %v2523_v3 = vadd.f32 %v2522_v50, %v2364_v57  ;;  %v2447_v4 = vpop.f32.mrb[27].mxu0  ;;  %v2524_v16 = vpop.f32.mrb[27].mxu1 }
 0x985   :  { %v2448_v46 = vadd.f32 %v2447_v4, %v2360_v63  ;;  %v2525_v31 = vadd.f32 %v2524_v16, %v2368_v26 }
 0x99f   :  { %v2593_v60 = vpop.f32.mrb[28].mxu0  ;;  %v2670_v10 = vpop.f32.mrb[28].mxu1 }
 0x9a0   :  { %v3444_v33 = vrot.slane %v2593_v60, 6  ;;  %v3632_v48 = vrot.slane %v2593_v60, 2  ;;  %v3446_v49 = vrot.slane %v2670_v10, 6  ;;  %v3634_v12 = vrot.slane %v2670_v10, 2  ;;  %v2595_v18 = vpop.f32.mrb[29].mxu0  ;;  %v2672_v0 = vpop.f32.mrb[29].mxu1 }
 0x9a1   :  { %v3445_v41 = vrot.slane %v2595_v18, 6  ;;  %v3633_v38 = vrot.slane %v2595_v18, 2  ;;  %v3447_v29 = vrot.slane %v2672_v0, 6  ;;  %v3635_v62 = vrot.slane %v2672_v0, 2 }
 0x9a2   :  { %v6715_v50 = vadd.f32 %v3632_v48, %v2446_v34  ;;  %v6717_v4 = vadd.f32 %v3634_v12, %v2523_v3  ;;  %v6719_v51 = vadd.f32 %v3444_v33, %v2446_v34  ;;  %v6721_v30 = vadd.f32 %v3446_v49, %v2523_v3 }
 0x9a3   :  { %v6723_v43 = vadd.f32 %v3633_v38, %v2448_v46  ;;  %v6725_v1 = vadd.f32 %v3635_v62, %v2525_v31  ;;  %v2599_v6 = vpop.f32.mrb[30].mxu0  ;;  %v2676_v57 = vpop.f32.mrb[30].mxu1  ;;  %v6727_v63 = vadd.f32 %v3445_v41, %v2448_v46  ;;  %v6729_v26 = vadd.f32 %v3447_v29, %v2525_v31 }
 0x9a4   :  { %7070 = vst [vmem:[#allocation15_spill] sm:$0xff] %v6717_v4  ;;  %v2685_v16 = vrot.slane %v2599_v6, 6  ;;  %v2867_v60 = vrot.slane %v2599_v6, 2  ;;  %v2687_v10 = vrot.slane %v2676_v57, 6  ;;  %v2869_v48 = vrot.slane %v2676_v57, 2  ;;  %v2601_v12 = vpop.f32.mrb[31].mxu0 }
 0x9a5   :  { %7071 = vst [vmem:[#allocation16_spill] sm:$0xff] %v6723_v43  ;;  %7072 = vst [vmem:[#allocation14_spill] sm:$0xff] %v6725_v1  ;;  %v2678_v18 = vpop.f32.mrb[31].mxu1  ;;  %v2686_v34 = vrot.slane %v2601_v12, 6  ;;  %v2868_v33 = vrot.slane %v2601_v12, 2 }
 0x9a6   :  { %v2688_v3 = vrot.slane %v2678_v18, 6  ;;  %v2870_v49 = vrot.slane %v2678_v18, 2  ;;  %v6731_v0 = vadd.f32 %v2867_v60, %v2440_v32  ;;  %v6733_v38 = vadd.f32 %v2869_v48, %v2517_v39 }
 0x9a7   :  { %v6735_v62 = vadd.f32 %v2685_v16, %v2440_v32  ;;  %v6737_v46 = vadd.f32 %v2687_v10, %v2517_v39  ;;  %v6739_v31 = vadd.f32 %v2868_v33, %v2442_v44  ;;  %v6743_v29 = vadd.f32 %v2686_v34, %v2442_v44 }
 0x9a8   :  { %v6741_v41 = vadd.f32 %v2870_v49, %v2519_v45  ;;  %v6745_v6 = vadd.f32 %v2688_v3, %v2519_v45 }
 0x9bf   :  { %v2763_v57 = vpop.f32.mrb[32].mxu0  ;;  %v2834_v12 = vpop.f32.mrb[32].mxu1 }
 0x9c0   :  { %v2839_v18 = vadd.f32 %v2763_v57, %v6735_v62  ;;  %v2765_v60 = vpop.f32.mrb[33].mxu0  ;;  %v2836_v4 = vpop.f32.mrb[33].mxu1  ;;  %v2841_v44 = vadd.f32 %v2834_v12, %v6737_v46 }
 0x9c1   :  { %v2840_v48 = vadd.f32 %v2765_v60, %v6743_v29  ;;  %v2842_v39 = vadd.f32 %v2836_v4, %v6745_v6 }
 0x9c2   :  { %v4287_v32 = vmul.f32 -1.442695, %v2839_v18 }
 0x9c3   :  { %v4288_v16 = vmul.f32 -1.442695, %v2840_v48  ;;  %v4289_v10 = vmul.f32 -1.442695, %v2842_v39 }
 0x9c4   :  { %5605 = vpow2.f32 %v4287_v32 }
 0x9c5   :  { %5607 = vpow2.f32 %v4288_v16 }
 0x9c6   :  { %5609 = vpow2.f32 %v4289_v10 }
 0x9c7   :  { %5611 = vtanh.f32 %v2841_v44 }
 0x9ce   :  { %v5606_v34 = vpop.eup %5605 }
 0x9cf   :  { %v5608_v45 = vpop.eup %5607  ;;  %v2846_v33 = vadd.f32 1.0, %v5606_v34 }
 0x9d0   :  { %v2852_v3 = vadd.f32 1.0, %v5608_v45  ;;  %v5610_v49 = vpop.eup %5609 }
 0x9d1   :  { %5613 = vrcp.f32 %v2846_v33  ;;  %v5612_v57 = vpop.eup %5611  ;;  %v2859_v32 = vadd.f32 1.0, %v5610_v49 }
 0x9d2   :  { %5615 = vrcp.f32 %v2852_v3 }
 0x9d3   :  { %5617 = vrcp.f32 %v2859_v32 }
 0x9db   :  { %v5614_v60 = vpop.eup %5613 }
 0x9dc   :  { %v5616_v18 = vpop.eup %5615  ;;  %v2863_v48 = vmul.f32 %v5614_v60, %v5612_v57 }
 0x9dd   :  { %v2862_v16 = vmul.f32 0.0, %v5616_v18  ;;  %v5618_v4 = vpop.eup %5617 }
 0x9df   :  { %v6751_v1 = vadd.f32 %v2863_v48, %v2862_v16 }
 0x9e1   :  { %5619 = vtanh.f32 %v6751_v1 }
 0x9eb   :  { %v5620_v12 = vpop.eup %5619 }
 0x9ec   :  { %v6754_v39 = vmul.f32 %v5620_v12, %v5618_v4 }
 0x9ee   :  { %7073 = vst [vmem:[#allocation18_spill] sm:$0xff] %v6754_v39  ;;  %2944 = vmatmul.mubr.f32.vlgmr.msra.gmra.mrb[34].mxu0 %v6754_v39  ;;  %3015 = vmatmul.mubr.f32.vlgmr.msra.gmra.mrb[34].mxu1 %v6754_v39 }
 0x9ef   :  { %5085 = vmatpush1.bf16.msra.mxu0 %v6566_v8  ;;  %5117 = vmatpush1.bf16.msra.mxu1 %v6568_v42 }
 0x9f0   :  { %5087 = vmatprep.subr.bf16.mxu0 %v6572_v27  ;;  %5119 = vmatprep.subr.bf16.mxu1 %v6574_v28 }
 0x9f1   :  { %3131 = vmatprep.mubr.f32.mxu0 %v7057_v9  ;;  %3202 = vmatprep.mubr.f32.mxu1 %v7057_v9 }
 0x9f3   :  { %5089 = vmatpush1.bf16.msra.mxu0 %v6580_v14  ;;  %5121 = vmatpush1.bf16.msra.mxu1 %v6582_v40 }
 0x9f4   :  { %5091 = vmatprep.subr.bf16.mxu0 %v6586_v53  ;;  %5123 = vmatprep.subr.bf16.mxu1 %v6588_v56 }
 0x9f7   :  { %5093 = vmatpush1.bf16.msra.mxu0 %v6596_v22  ;;  %5125 = vmatpush1.bf16.msra.mxu1 %v6598_v23 }
 0x9f8   :  { %5095 = vmatprep.subr.bf16.mxu0 %v6602_v35  ;;  %5127 = vmatprep.subr.bf16.mxu1 %v6604_v47 }
 0x9fb   :  { %5097 = vmatpush1.bf16.msra.mxu0 %v6610_v17  ;;  %5129 = vmatpush1.bf16.msra.mxu1 %v6612_v21 }
 0x9fc   :  { %5099 = vmatprep.subr.bf16.mxu0 %v6616_v52  ;;  %5131 = vmatprep.subr.bf16.mxu1 %v6618_v37 }
 0x9ff   :  { %5101 = vmatpush1.bf16.msra.mxu0 %v6622_v5  ;;  %5133 = vmatpush1.bf16.msra.mxu1 %v6624_v25 }
 0xa00   :  { %5103 = vmatprep.subr.bf16.mxu0 %v6628_v36  ;;  %5135 = vmatprep.subr.bf16.mxu1 %v6630_v54 }
 0xa03   :  { %5105 = vmatpush1.bf16.msra.mxu0 %v6634_v7  ;;  %5137 = vmatpush1.bf16.msra.mxu1 %v6636_v15 }
 0xa04   :  { %5107 = vmatprep.subr.bf16.mxu0 %v6640_v19  ;;  %5139 = vmatprep.subr.bf16.mxu1 %v6642_v20 }
 0xa07   :  { %5109 = vmatpush1.bf16.msra.mxu0 %v6646_v2  ;;  %5141 = vmatpush1.bf16.msra.mxu1 %v6648_v61 }
 0xa08   :  { %5111 = vmatprep.subr.bf16.mxu0 %v6652_v13  ;;  %5143 = vmatprep.subr.bf16.mxu1 %v6654_v59 }
 0xa0b   :  { %5113 = vmatpush1.bf16.msra.mxu0 %v6658_v11  ;;  %5145 = vmatpush1.bf16.msra.mxu1 %v6660_v24 }
 0xa0c   :  { %5147 = vmatprep.subr.bf16.mxu0 %v6562_v55  ;;  %5179 = vmatprep.subr.bf16.mxu1 %v6564_v58 }
 0xac1   :  { %v2945_v10 = vpop.f32.mrb[34].mxu0  ;;  %v3016_v44 = vpop.f32.mrb[34].mxu1 }
 0xac2   :  { %v3025_v34 = vrot.slane %v2945_v10, 6  ;;  %v2947_v45 = vpop.f32.mrb[35].mxu0  ;;  %v3018_v33 = vpop.f32.mrb[35].mxu1  ;;  %v3027_v16 = vrot.slane %v3016_v44, 6 }
 0xac3   :  { %v3026_v3 = vrot.slane %v2947_v45, 6  ;;  %v3028_v48 = vrot.slane %v3018_v33, 6  ;;  %v3057_v33 = vrot.slane %v6751_v1, 6 }
 0xac4   :  { %v3033_v49 = vadd.f32 %v3025_v34, %v6731_v0  ;;  %v3035_v12 = vadd.f32 %v3027_v16, %v6733_v38 }
 0xac5   :  { %v3034_v57 = vadd.f32 %v3026_v3, %v6739_v31  ;;  %v3036_v32 = vadd.f32 %v3028_v48, %v6741_v41 }
 0xac6   :  { %v4290_v60 = vmul.f32 -1.442695, %v3033_v49 }
 0xac7   :  { %v4291_v18 = vmul.f32 -1.442695, %v3034_v57  ;;  %v4292_v4 = vmul.f32 -1.442695, %v3036_v32 }
 0xac8   :  { %5621 = vpow2.f32 %v4290_v60 }
 0xac9   :  { %5623 = vpow2.f32 %v4291_v18 }
 0xaca   :  { %5625 = vpow2.f32 %v4292_v4 }
 0xacb   :  { %5627 = vtanh.f32 %v3035_v12 }
 0xad2   :  { %v5622_v39 = vpop.eup %5621 }
 0xad3   :  { %v5624_v10 = vpop.eup %5623  ;;  %v3040_v43 = vadd.f32 1.0, %v5622_v39 }
 0xad4   :  { %v3046_v45 = vadd.f32 1.0, %v5624_v10  ;;  %v5626_v34 = vpop.eup %5625 }
 0xad5   :  { %5629 = vrcp.f32 %v3040_v43  ;;  %v5628_v3 = vpop.eup %5627  ;;  %v3053_v18 = vadd.f32 1.0, %v5626_v34 }
 0xad6   :  { %5631 = vrcp.f32 %v3046_v45 }
 0xad7   :  { %5633 = vrcp.f32 %v3053_v18 }
 0xadf   :  { %v5630_v49 = vpop.eup %5629 }
 0xae0   :  { %v5632_v57 = vpop.eup %5631  ;;  %v3060_v60 = vmul.f32 %v5630_v49, %v5628_v3 }
 0xae1   :  { %v3059_v44 = vmul.f32 %v5632_v57, %v3057_v33  ;;  %v5634_v39 = vpop.eup %5633 }
 0xae3   :  { %v6797_v48 = vadd.f32 %v3060_v60, %v3059_v44 }
 0xae5   :  { %5635 = vtanh.f32 %v6797_v48 }
 0xaef   :  { %v5636_v32 = vpop.eup %5635 }
 0xaf0   :  { %v3063_v16 = vmul.f32 %v5636_v32, %v5634_v39 }
 0xaf2   :  { %v3065_v4 = vrot.slane %v3063_v16, 2 }
 0xaf4   :  { %3132 = vmatmul.mubr.f32.vlgmr.msra.gmra.mrb[36].mxu0 %v3065_v4  ;;  %3203 = vmatmul.mubr.f32.vlgmr.msra.gmra.mrb[36].mxu1 %v3065_v4 }
 0xaf5   :  { %5149 = vmatpush1.bf16.msra.mxu0 %v6566_v8  ;;  %5181 = vmatpush1.bf16.msra.mxu1 %v6568_v42 }
 0xaf6   :  { %5151 = vmatprep.subr.bf16.mxu0 %v6572_v27  ;;  %5183 = vmatprep.subr.bf16.mxu1 %v6574_v28 }
 0xaf7   :  { %3319 = vmatprep.mubr.f32.mxu0 %v7057_v9  ;;  %3390 = vmatprep.mubr.f32.mxu1 %v7057_v9 }
 0xaf9   :  { %5153 = vmatpush1.bf16.msra.mxu0 %v6580_v14  ;;  %5185 = vmatpush1.bf16.msra.mxu1 %v6582_v40 }
 0xafa   :  { %5155 = vmatprep.subr.bf16.mxu0 %v6586_v53  ;;  %5187 = vmatprep.subr.bf16.mxu1 %v6588_v56 }
 0xafd   :  { %5157 = vmatpush1.bf16.msra.mxu0 %v6596_v22  ;;  %5189 = vmatpush1.bf16.msra.mxu1 %v6598_v23 }
 0xafe   :  { %5159 = vmatprep.subr.bf16.mxu0 %v6602_v35  ;;  %5191 = vmatprep.subr.bf16.mxu1 %v6604_v47 }
 0xb01   :  { %5161 = vmatpush1.bf16.msra.mxu0 %v6610_v17  ;;  %5193 = vmatpush1.bf16.msra.mxu1 %v6612_v21 }
 0xb02   :  { %5163 = vmatprep.subr.bf16.mxu0 %v6616_v52  ;;  %5195 = vmatprep.subr.bf16.mxu1 %v6618_v37 }
 0xb05   :  { %5165 = vmatpush1.bf16.msra.mxu0 %v6622_v5  ;;  %5197 = vmatpush1.bf16.msra.mxu1 %v6624_v25 }
 0xb06   :  { %5167 = vmatprep.subr.bf16.mxu0 %v6628_v36  ;;  %5199 = vmatprep.subr.bf16.mxu1 %v6630_v54 }
 0xb09   :  { %5169 = vmatpush1.bf16.msra.mxu0 %v6634_v7  ;;  %5201 = vmatpush1.bf16.msra.mxu1 %v6636_v15 }
 0xb0a   :  { %5171 = vmatprep.subr.bf16.mxu0 %v6640_v19  ;;  %5203 = vmatprep.subr.bf16.mxu1 %v6642_v20 }
 0xb0d   :  { %5173 = vmatpush1.bf16.msra.mxu0 %v6646_v2  ;;  %5205 = vmatpush1.bf16.msra.mxu1 %v6648_v61 }
 0xb0e   :  { %5175 = vmatprep.subr.bf16.mxu0 %v6652_v13  ;;  %5207 = vmatprep.subr.bf16.mxu1 %v6654_v59 }
 0xb11   :  { %5177 = vmatpush1.bf16.msra.mxu0 %v6658_v11  ;;  %5209 = vmatpush1.bf16.msra.mxu1 %v6660_v24 }
 0xb12   :  { %5211 = vmatprep.subr.bf16.mxu0 %v6562_v55  ;;  %5243 = vmatprep.subr.bf16.mxu1 %v6564_v58 }
 0xbc7   :  { %v3133_v43 = vpop.f32.mrb[36].mxu0  ;;  %v3204_v1 = vpop.f32.mrb[36].mxu1 }
 0xbc8   :  { %v3213_v12 = vrot.slane %v3133_v43, 4  ;;  %v3135_v10 = vpop.f32.mrb[37].mxu0  ;;  %v3206_v45 = vpop.f32.mrb[37].mxu1  ;;  %v3215_v44 = vrot.slane %v3204_v1, 4 }
 0xbc9   :  { %v3214_v34 = vrot.slane %v3135_v10, 4  ;;  %v3216_v60 = vrot.slane %v3206_v45, 4  ;;  %v3245_v45 = vrot.slane %v6797_v48, 6 }
 0xbca   :  { %v3221_v3 = vadd.f32 %v3213_v12, %v6735_v62  ;;  %v3223_v32 = vadd.f32 %v3215_v44, %v6737_v46 }
 0xbcb   :  { %v3222_v49 = vadd.f32 %v3214_v34, %v6743_v29  ;;  %v3224_v18 = vadd.f32 %v3216_v60, %v6745_v6 }
 0xbcc   :  { %v4293_v33 = vmul.f32 -1.442695, %v3221_v3 }
 0xbcd   :  { %v4294_v57 = vmul.f32 -1.442695, %v3222_v49  ;;  %v4295_v39 = vmul.f32 -1.442695, %v3224_v18 }
 0xbce   :  { %5637 = vpow2.f32 %v4293_v33 }
 0xbcf   :  { %5639 = vpow2.f32 %v4294_v57 }
 0xbd0   :  { %5641 = vpow2.f32 %v4295_v39 }
 0xbd1   :  { %5643 = vtanh.f32 %v3223_v32 }
 0xbd8   :  { %v5638_v16 = vpop.eup %5637 }
 0xbd9   :  { %v5640_v4 = vpop.eup %5639  ;;  %v3228_v43 = vadd.f32 1.0, %v5638_v16 }
 0xbda   :  { %v3234_v10 = vadd.f32 1.0, %v5640_v4  ;;  %v5642_v62 = vpop.eup %5641 }
 0xbdb   :  { %5645 = vrcp.f32 %v3228_v43  ;;  %v5644_v29 = vpop.eup %5643  ;;  %v3241_v6 = vadd.f32 1.0, %v5642_v62 }
 0xbdc   :  { %5647 = vrcp.f32 %v3234_v10 }
 0xbdd   :  { %5649 = vrcp.f32 %v3241_v6 }
 0xbe5   :  { %v5646_v12 = vpop.eup %5645 }
 0xbe6   :  { %v5648_v34 = vpop.eup %5647  ;;  %v3248_v3 = vmul.f32 %v5646_v12, %v5644_v29 }
 0xbe7   :  { %v3247_v1 = vmul.f32 %v5648_v34, %v3245_v45  ;;  %v5650_v46 = vpop.eup %5649 }
 0xbe9   :  { %v6839_v49 = vadd.f32 %v3248_v3, %v3247_v1 }
 0xbeb   :  { %5651 = vtanh.f32 %v6839_v49 }
 0xbf5   :  { %v5652_v33 = vpop.eup %5651 }
 0xbf6   :  { %v3251_v57 = vmul.f32 %v5652_v33, %v5650_v46 }
 0xbf8   :  { %v3253_v60 = vrot.slane %v3251_v57, 4 }
 0xbfa   :  { %3320 = vmatmul.mubr.f32.vlgmr.msra.gmra.mrb[38].mxu0 %v3253_v60  ;;  %3391 = vmatmul.mubr.f32.vlgmr.msra.gmra.mrb[38].mxu1 %v3253_v60  ;;  %v3433_v60 = vrot.slane %v6839_v49, 6 }
 0xbfb   :  { %5213 = vmatpush1.bf16.msra.mxu0 %v6566_v8  ;;  %5245 = vmatpush1.bf16.msra.mxu1 %v6568_v42 }
 0xbfc   :  { %5215 = vmatprep.subr.bf16.mxu0 %v6572_v27  ;;  %5247 = vmatprep.subr.bf16.mxu1 %v6574_v28 }
 0xbfd   :  { %3523 = vmatprep.mubr.f32.mxu0 %v7057_v9  ;;  %3594 = vmatprep.mubr.f32.mxu1 %v7057_v9 }
 0xbff   :  { %5217 = vmatpush1.bf16.msra.mxu0 %v6580_v14  ;;  %5249 = vmatpush1.bf16.msra.mxu1 %v6582_v40 }
 0xc00   :  { %5219 = vmatprep.subr.bf16.mxu0 %v6586_v53  ;;  %5251 = vmatprep.subr.bf16.mxu1 %v6588_v56 }
 0xc03   :  { %5221 = vmatpush1.bf16.msra.mxu0 %v6596_v22  ;;  %5253 = vmatpush1.bf16.msra.mxu1 %v6598_v23 }
 0xc04   :  { %5223 = vmatprep.subr.bf16.mxu0 %v6602_v35  ;;  %5255 = vmatprep.subr.bf16.mxu1 %v6604_v47 }
 0xc07   :  { %5225 = vmatpush1.bf16.msra.mxu0 %v6610_v17  ;;  %5257 = vmatpush1.bf16.msra.mxu1 %v6612_v21 }
 0xc08   :  { %5227 = vmatprep.subr.bf16.mxu0 %v6616_v52  ;;  %5259 = vmatprep.subr.bf16.mxu1 %v6618_v37 }
 0xc0b   :  { %5229 = vmatpush1.bf16.msra.mxu0 %v6622_v5  ;;  %5261 = vmatpush1.bf16.msra.mxu1 %v6624_v25 }
 0xc0c   :  { %5231 = vmatprep.subr.bf16.mxu0 %v6628_v36  ;;  %5263 = vmatprep.subr.bf16.mxu1 %v6630_v54 }
 0xc0f   :  { %5233 = vmatpush1.bf16.msra.mxu0 %v6634_v7  ;;  %5265 = vmatpush1.bf16.msra.mxu1 %v6636_v15 }
 0xc10   :  { %5235 = vmatprep.subr.bf16.mxu0 %v6640_v19  ;;  %5267 = vmatprep.subr.bf16.mxu1 %v6642_v20 }
 0xc13   :  { %5237 = vmatpush1.bf16.msra.mxu0 %v6646_v2  ;;  %5269 = vmatpush1.bf16.msra.mxu1 %v6648_v61 }
 0xc14   :  { %5239 = vmatprep.subr.bf16.mxu0 %v6652_v13  ;;  %5271 = vmatprep.subr.bf16.mxu1 %v6654_v59 }
 0xc17   :  { %5241 = vmatpush1.bf16.msra.mxu0 %v6658_v11  ;;  %5273 = vmatpush1.bf16.msra.mxu1 %v6660_v24 }
 0xc18   :  { %5275 = vmatprep.subr.bf16.mxu0 %v6562_v55  ;;  %5307 = vmatprep.subr.bf16.mxu1 %v6564_v58 }
 0xccd   :  { %v3321_v48 = vpop.f32.mrb[38].mxu0  ;;  %v3392_v18 = vpop.f32.mrb[38].mxu1 }
 0xcce   :  { %v3401_v44 = vrot.slane %v3321_v48, 2  ;;  %v3323_v39 = vpop.f32.mrb[39].mxu0  ;;  %v3394_v32 = vpop.f32.mrb[39].mxu1  ;;  %v3403_v45 = vrot.slane %v3392_v18, 2 }
 0xccf   :  { %v3402_v16 = vrot.slane %v3323_v39, 2  ;;  %v3404_v29 = vrot.slane %v3394_v32, 2 }
 0xcd0   :  { %v3409_v4 = vadd.f32 %v3401_v44, %v6731_v0  ;;  %v3411_v3 = vadd.f32 %v3403_v45, %v6733_v38 }
 0xcd1   :  { %v3410_v43 = vadd.f32 %v3402_v16, %v6739_v31  ;;  %v3412_v12 = vadd.f32 %v3404_v29, %v6741_v41 }
 0xcd2   :  { %v4296_v10 = vmul.f32 -1.442695, %v3409_v4 }
 0xcd3   :  { %v4297_v62 = vmul.f32 -1.442695, %v3410_v43  ;;  %v4298_v34 = vmul.f32 -1.442695, %v3412_v12 }
 0xcd4   :  { %5653 = vpow2.f32 %v4296_v10 }
 0xcd5   :  { %5655 = vpow2.f32 %v4297_v62 }
 0xcd6   :  { %5657 = vpow2.f32 %v4298_v34 }
 0xcd7   :  { %5659 = vtanh.f32 %v3411_v3 }
 0xcde   :  { %v5654_v6 = vpop.eup %5653 }
 0xcdf   :  { %v5656_v1 = vpop.eup %5655  ;;  %v3416_v46 = vadd.f32 1.0, %v5654_v6 }
 0xce0   :  { %v3422_v33 = vadd.f32 1.0, %v5656_v1  ;;  %v5658_v0 = vpop.eup %5657 }
 0xce1   :  { %5661 = vrcp.f32 %v3416_v46  ;;  %v5660_v31 = vpop.eup %5659  ;;  %v3429_v41 = vadd.f32 1.0, %v5658_v0 }
 0xce2   :  { %5663 = vrcp.f32 %v3422_v33 }
 0xce3   :  { %5665 = vrcp.f32 %v3429_v41 }
 0xceb   :  { %v5662_v57 = vpop.eup %5661 }
 0xcec   :  { %v5664_v48 = vpop.eup %5663  ;;  %v3436_v44 = vmul.f32 %v5662_v57, %v5660_v31 }
 0xced   :  { %v3435_v18 = vmul.f32 %v5664_v48, %v3433_v60  ;;  %v5666_v38 = vpop.eup %5665 }
 0xcef   :  { %v6881_v39 = vadd.f32 %v3436_v44, %v3435_v18 }
 0xcf1   :  { %5667 = vtanh.f32 %v6881_v39  ;;  %v3625_v44 = vrot.slane %v6881_v39, 6 }
 0xcfb   :  { %v5668_v32 = vpop.eup %5667 }
 0xcfc   :  { %v3439_v16 = vmul.f32 %v5668_v32, %v5666_v38 }
 0xcfe   :  { %v3457_v4 = vrot.slane %v3439_v16, 6 }
 0xd00   :  { %3524 = vmatmul.mubr.f32.vlgmr.msra.gmra.mrb[40].mxu0 %v3457_v4  ;;  %3595 = vmatmul.mubr.f32.vlgmr.msra.gmra.mrb[40].mxu1 %v3457_v4 }
 0xd01   :  { %5277 = vmatpush1.bf16.msra.mxu0 %v6566_v8  ;;  %5309 = vmatpush1.bf16.msra.mxu1 %v6568_v42 }
 0xd02   :  { %5279 = vmatprep.subr.bf16.mxu0 %v6572_v27  ;;  %5311 = vmatprep.subr.bf16.mxu1 %v6574_v28 }
 0xd03   :  { %3708 = vmatprep.mubr.f32.mxu0 %v7057_v9  ;;  %3779 = vmatprep.mubr.f32.mxu1 %v7057_v9 }
 0xd05   :  { %5281 = vmatpush1.bf16.msra.mxu0 %v6580_v14  ;;  %5313 = vmatpush1.bf16.msra.mxu1 %v6582_v40 }
 0xd06   :  { %5283 = vmatprep.subr.bf16.mxu0 %v6586_v53  ;;  %5315 = vmatprep.subr.bf16.mxu1 %v6588_v56 }
 0xd09   :  { %5285 = vmatpush1.bf16.msra.mxu0 %v6596_v22  ;;  %5317 = vmatpush1.bf16.msra.mxu1 %v6598_v23 }
 0xd0a   :  { %5287 = vmatprep.subr.bf16.mxu0 %v6602_v35  ;;  %5319 = vmatprep.subr.bf16.mxu1 %v6604_v47 }
 0xd0d   :  { %5289 = vmatpush1.bf16.msra.mxu0 %v6610_v17  ;;  %5321 = vmatpush1.bf16.msra.mxu1 %v6612_v21 }
 0xd0e   :  { %5291 = vmatprep.subr.bf16.mxu0 %v6616_v52  ;;  %5323 = vmatprep.subr.bf16.mxu1 %v6618_v37 }
 0xd11   :  { %5293 = vmatpush1.bf16.msra.mxu0 %v6622_v5  ;;  %5325 = vmatpush1.bf16.msra.mxu1 %v6624_v25 }
 0xd12   :  { %5295 = vmatprep.subr.bf16.mxu0 %v6628_v36  ;;  %5327 = vmatprep.subr.bf16.mxu1 %v6630_v54 }
 0xd15   :  { %5297 = vmatpush1.bf16.msra.mxu0 %v6634_v7  ;;  %5329 = vmatpush1.bf16.msra.mxu1 %v6636_v15 }
 0xd16   :  { %5299 = vmatprep.subr.bf16.mxu0 %v6640_v19  ;;  %5331 = vmatprep.subr.bf16.mxu1 %v6642_v20 }
 0xd19   :  { %5301 = vmatpush1.bf16.msra.mxu0 %v6646_v2  ;;  %5333 = vmatpush1.bf16.msra.mxu1 %v6648_v61 }
 0xd1a   :  { %5303 = vmatprep.subr.bf16.mxu0 %v6652_v13  ;;  %5335 = vmatprep.subr.bf16.mxu1 %v6654_v59 }
 0xd1d   :  { %5305 = vmatpush1.bf16.msra.mxu0 %v6658_v11  ;;  %5337 = vmatpush1.bf16.msra.mxu1 %v6660_v24 }
 0xd1e   :  { %5339 = vmatprep.subr.bf16.mxu0 %v6562_v55  ;;  %5371 = vmatprep.subr.bf16.mxu1 %v6564_v58 }
 0xdd3   :  { %v3525_v49 = vpop.f32.mrb[40].mxu0  ;;  %v3596_v43 = vpop.f32.mrb[40].mxu1 }
 0xdd4   :  { %v3601_v10 = vadd.f32 %v3525_v49, %v6719_v51  ;;  %v3527_v62 = vpop.f32.mrb[41].mxu0  ;;  %v3598_v29 = vpop.f32.mrb[41].mxu1  ;;  %v3603_v1 = vadd.f32 %v3596_v43, %v6721_v30 }
 0xdd5   :  { %v3602_v12 = vadd.f32 %v3527_v62, %v6727_v63  ;;  %v3604_v3 = vadd.f32 %v3598_v29, %v6729_v26 }
 0xdd6   :  { %v4299_v45 = vmul.f32 -1.442695, %v3601_v10 }
 0xdd7   :  { %v4300_v34 = vmul.f32 -1.442695, %v3602_v12  ;;  %v4301_v6 = vmul.f32 -1.442695, %v3604_v3  ;;  %v7074_v3 = vld [vmem:[#allocation16_spill] sm:$0xff] }
 0xdd8   :  { %5669 = vpow2.f32 %v4299_v45 }
 0xdd9   :  { %5671 = vpow2.f32 %v4300_v34 }
 0xdda   :  { %5673 = vpow2.f32 %v4301_v6 }
 0xddb   :  { %5675 = vtanh.f32 %v3603_v1 }
 0xde2   :  { %v5670_v46 = vpop.eup %5669 }
 0xde3   :  { %v5672_v33 = vpop.eup %5671  ;;  %v3608_v0 = vadd.f32 1.0, %v5670_v46 }
 0xde4   :  { %v3614_v31 = vadd.f32 1.0, %v5672_v33  ;;  %v5674_v57 = vpop.eup %5673 }
 0xde5   :  { %5677 = vrcp.f32 %v3608_v0  ;;  %v5676_v60 = vpop.eup %5675  ;;  %v3621_v38 = vadd.f32 1.0, %v5674_v57  ;;  %v7075_v0 = vld [vmem:[#allocation14_spill] sm:$0xff] }
 0xde6   :  { %5679 = vrcp.f32 %v3614_v31 }
 0xde7   :  { %5681 = vrcp.f32 %v3621_v38 }
 0xdef   :  { %v5678_v48 = vpop.eup %5677 }
 0xdf0   :  { %v5680_v41 = vpop.eup %5679  ;;  %v3628_v18 = vmul.f32 %v5678_v48, %v5676_v60 }
 0xdf1   :  { %v3627_v32 = vmul.f32 %v5680_v41, %v3625_v44  ;;  %v5682_v4 = vpop.eup %5681 }
 0xdf3   :  { %v6923_v16 = vadd.f32 %v3628_v18, %v3627_v32 }
 0xdf5   :  { %5683 = vtanh.f32 %v6923_v16 }
 0xdff   :  { %v5684_v49 = vpop.eup %5683 }
 0xe00   :  { %v3631_v43 = vmul.f32 %v5684_v49, %v5682_v4  ;;  %v3822_v49 = vrot.slane %v6923_v16, 6 }
 0xe02   :  { %3709 = vmatmul.mubr.f32.vlgmr.msra.gmra.mrb[42].mxu0 %v3631_v43  ;;  %3780 = vmatmul.mubr.f32.vlgmr.msra.gmra.mrb[42].mxu1 %v3631_v43 }
 0xe03   :  { %5341 = vmatpush1.bf16.msra.mxu0 %v6566_v8  ;;  %5373 = vmatpush1.bf16.msra.mxu1 %v6568_v42 }
 0xe04   :  { %5343 = vmatprep.subr.bf16.mxu0 %v6572_v27  ;;  %5375 = vmatprep.subr.bf16.mxu1 %v6574_v28 }
 0xe05   :  { %3896 = vmatprep.mubr.f32.mxu0 %v7057_v9  ;;  %3967 = vmatprep.mubr.f32.mxu1 %v7057_v9 }
 0xe07   :  { %5345 = vmatpush1.bf16.msra.mxu0 %v6580_v14  ;;  %5377 = vmatpush1.bf16.msra.mxu1 %v6582_v40 }
 0xe08   :  { %5347 = vmatprep.subr.bf16.mxu0 %v6586_v53  ;;  %5379 = vmatprep.subr.bf16.mxu1 %v6588_v56 }
 0xe0b   :  { %5349 = vmatpush1.bf16.msra.mxu0 %v6596_v22  ;;  %5381 = vmatpush1.bf16.msra.mxu1 %v6598_v23 }
 0xe0c   :  { %5351 = vmatprep.subr.bf16.mxu0 %v6602_v35  ;;  %5383 = vmatprep.subr.bf16.mxu1 %v6604_v47 }
 0xe0f   :  { %5353 = vmatpush1.bf16.msra.mxu0 %v6610_v17  ;;  %5385 = vmatpush1.bf16.msra.mxu1 %v6612_v21 }
 0xe10   :  { %5355 = vmatprep.subr.bf16.mxu0 %v6616_v52  ;;  %5387 = vmatprep.subr.bf16.mxu1 %v6618_v37 }
 0xe13   :  { %5357 = vmatpush1.bf16.msra.mxu0 %v6622_v5  ;;  %5389 = vmatpush1.bf16.msra.mxu1 %v6624_v25 }
 0xe14   :  { %5359 = vmatprep.subr.bf16.mxu0 %v6628_v36  ;;  %5391 = vmatprep.subr.bf16.mxu1 %v6630_v54 }
 0xe17   :  { %5361 = vmatpush1.bf16.msra.mxu0 %v6634_v7  ;;  %5393 = vmatpush1.bf16.msra.mxu1 %v6636_v15 }
 0xe18   :  { %5363 = vmatprep.subr.bf16.mxu0 %v6640_v19  ;;  %5395 = vmatprep.subr.bf16.mxu1 %v6642_v20 }
 0xe1b   :  { %5365 = vmatpush1.bf16.msra.mxu0 %v6646_v2  ;;  %5397 = vmatpush1.bf16.msra.mxu1 %v6648_v61 }
 0xe1c   :  { %5367 = vmatprep.subr.bf16.mxu0 %v6652_v13  ;;  %5399 = vmatprep.subr.bf16.mxu1 %v6654_v59 }
 0xe1f   :  { %5369 = vmatpush1.bf16.msra.mxu0 %v6658_v11  ;;  %5401 = vmatpush1.bf16.msra.mxu1 %v6660_v24 }
 0xe20   :  { %5403 = vmatprep.subr.bf16.mxu0 %v6562_v55  ;;  %5435 = vmatprep.subr.bf16.mxu1 %v6564_v58  ;;  %v7076_v58 = vld [vmem:[#allocation15_spill] sm:$0xff] }
 0xed5   :  { %v3710_v39 = vpop.f32.mrb[42].mxu0  ;;  %v3781_v10 = vpop.f32.mrb[42].mxu1 }
 0xed6   :  { %v3790_v62 = vrot.slane %v3710_v39, 6  ;;  %v3712_v29 = vpop.f32.mrb[43].mxu0  ;;  %v3783_v12 = vpop.f32.mrb[43].mxu1  ;;  %v3792_v55 = vrot.slane %v3781_v10, 6 }
 0xed7   :  { %v3791_v45 = vrot.slane %v3712_v29, 6  ;;  %v3793_v33 = vrot.slane %v3783_v12, 6 }
 0xed8   :  { %v3798_v34 = vadd.f32 %v3790_v62, %v6715_v50  ;;  %v3800_v60 = vadd.f32 %v3792_v55, %v7076_v58 }
 0xed9   :  { %v3799_v6 = vadd.f32 %v3791_v45, %v7074_v3  ;;  %v3801_v31 = vadd.f32 %v3793_v33, %v7075_v0 }
 0xeda   :  { %v4302_v1 = vmul.f32 -1.442695, %v3798_v34 }
 0xedb   :  { %v4303_v46 = vmul.f32 -1.442695, %v3799_v6  ;;  %v4304_v57 = vmul.f32 -1.442695, %v3801_v31 }
 0xedc   :  { %5685 = vpow2.f32 %v4302_v1 }
 0xedd   :  { %5687 = vpow2.f32 %v4303_v46 }
 0xede   :  { %5689 = vpow2.f32 %v4304_v57 }
 0xedf   :  { %5691 = vtanh.f32 %v3800_v60 }
 0xee6   :  { %v5686_v48 = vpop.eup %5685 }
 0xee7   :  { %v5688_v44 = vpop.eup %5687  ;;  %v3805_v41 = vadd.f32 1.0, %v5686_v48 }
 0xee8   :  { %v3811_v18 = vadd.f32 1.0, %v5688_v44  ;;  %v5690_v38 = vpop.eup %5689 }
 0xee9   :  { %5693 = vrcp.f32 %v3805_v41  ;;  %v5692_v32 = vpop.eup %5691  ;;  %v3818_v62 = vadd.f32 1.0, %v5690_v38 }
 0xeea   :  { %5695 = vrcp.f32 %v3811_v18 }
 0xeeb   :  { %5697 = vrcp.f32 %v3818_v62 }
 0xef3   :  { %v5694_v4 = vpop.eup %5693 }
 0xef4   :  { %v5696_v43 = vpop.eup %5695  ;;  %v3825_v39 = vmul.f32 %v5694_v4, %v5692_v32 }
 0xef5   :  { %v3824_v10 = vmul.f32 %v5696_v43, %v3822_v49  ;;  %v5698_v12 = vpop.eup %5697 }
 0xef7   :  { %v6965_v29 = vadd.f32 %v3825_v39, %v3824_v10 }
 0xef9   :  { %5699 = vtanh.f32 %v6965_v29 }
 0xf03   :  { %v5700_v45 = vpop.eup %5699 }
 0xf04   :  { %v3828_v34 = vmul.f32 %v5700_v45, %v5698_v12 }
 0xf06   :  { %v3830_v6 = vrot.slane %v3828_v34, 2  ;;  %v7077_v34 = vld [vmem:[#allocation18_spill] sm:$0xff] }
 0xf08   :  { %3897 = vmatmul.mubr.f32.vlgmr.msra.gmra.mrb[44].mxu0 %v3830_v6  ;;  %3968 = vmatmul.mubr.f32.vlgmr.msra.gmra.mrb[44].mxu1 %v3830_v6 }
 0xf09   :  { %5405 = vmatpush1.bf16.msra.mxu0 %v6566_v8  ;;  %5437 = vmatpush1.bf16.msra.mxu1 %v6568_v42 }
 0xf0a   :  { %5407 = vmatprep.subr.bf16.mxu0 %v6572_v27  ;;  %5439 = vmatprep.subr.bf16.mxu1 %v6574_v28 }
 0xf0b   :  { %4084 = vmatprep.mubr.f32.mxu0 %v7057_v9  ;;  %4155 = vmatprep.mubr.f32.mxu1 %v7057_v9 }
 0xf0d   :  { %5409 = vmatpush1.bf16.msra.mxu0 %v6580_v14  ;;  %5441 = vmatpush1.bf16.msra.mxu1 %v6582_v40 }
 0xf0e   :  { %5411 = vmatprep.subr.bf16.mxu0 %v6586_v53  ;;  %5443 = vmatprep.subr.bf16.mxu1 %v6588_v56 }
 0xf11   :  { %5413 = vmatpush1.bf16.msra.mxu0 %v6596_v22  ;;  %5445 = vmatpush1.bf16.msra.mxu1 %v6598_v23 }
 0xf12   :  { %5415 = vmatprep.subr.bf16.mxu0 %v6602_v35  ;;  %5447 = vmatprep.subr.bf16.mxu1 %v6604_v47 }
 0xf15   :  { %5417 = vmatpush1.bf16.msra.mxu0 %v6610_v17  ;;  %5449 = vmatpush1.bf16.msra.mxu1 %v6612_v21 }
 0xf16   :  { %5419 = vmatprep.subr.bf16.mxu0 %v6616_v52  ;;  %5451 = vmatprep.subr.bf16.mxu1 %v6618_v37 }
 0xf19   :  { %5421 = vmatpush1.bf16.msra.mxu0 %v6622_v5  ;;  %5453 = vmatpush1.bf16.msra.mxu1 %v6624_v25 }
 0xf1a   :  { %5423 = vmatprep.subr.bf16.mxu0 %v6628_v36  ;;  %5455 = vmatprep.subr.bf16.mxu1 %v6630_v54 }
 0xf1d   :  { %5425 = vmatpush1.bf16.msra.mxu0 %v6634_v7  ;;  %5457 = vmatpush1.bf16.msra.mxu1 %v6636_v15  ;;  %v4010_v15 = vrot.slane %v6965_v29, 6 }
 0xf1e   :  { %5427 = vmatprep.subr.bf16.mxu0 %v6640_v19  ;;  %5459 = vmatprep.subr.bf16.mxu1 %v6642_v20 }
 0xf21   :  { %5429 = vmatpush1.bf16.msra.mxu0 %v6646_v2  ;;  %5461 = vmatpush1.bf16.msra.mxu1 %v6648_v61 }
 0xf22   :  { %5431 = vmatprep.subr.bf16.mxu0 %v6652_v13  ;;  %5463 = vmatprep.subr.bf16.mxu1 %v6654_v59 }
 0xf25   :  { %5433 = vmatpush1.bf16.msra.mxu0 %v6658_v11  ;;  %5465 = vmatpush1.bf16.msra.mxu1 %v6660_v24 }
 0xfdb   :  { %v3898_v9 = vpop.f32.mrb[44].mxu0  ;;  %v3969_v8 = vpop.f32.mrb[44].mxu1 }
 0xfdc   :  { %v3978_v42 = vrot.slane %v3898_v9, 4  ;;  %v3900_v27 = vpop.f32.mrb[45].mxu0  ;;  %v3971_v28 = vpop.f32.mrb[45].mxu1  ;;  %v3980_v47 = vrot.slane %v3969_v8, 4  ;;  %v4311_v8 = vld [vmem:[%s7028_s9] ss:$0 sm:$0xff] }
 0xfdd   :  { %v3979_v14 = vrot.slane %v3900_v27, 4  ;;  %v3981_v23 = vrot.slane %v3971_v28, 4 }
 0xfde   :  { %v3986_v40 = vadd.f32 %v3978_v42, %v6719_v51  ;;  %v3988_v21 = vadd.f32 %v3980_v47, %v6721_v30 }
 0xfdf   :  { %v3987_v53 = vadd.f32 %v3979_v14, %v6727_v63  ;;  %v3989_v35 = vadd.f32 %v3981_v23, %v6729_v26 }
 0xfe0   :  { %v4305_v56 = vmul.f32 -1.442695, %v3986_v40 }
 0xfe1   :  { %v4306_v22 = vmul.f32 -1.442695, %v3987_v53  ;;  %v4307_v17 = vmul.f32 -1.442695, %v3989_v35  ;;  %v4313_v53 = vld [vmem:[#allocation2] ss:$0 sm:$0xff] }
 0xfe2   :  { %5701 = vpow2.f32 %v4305_v56 }
 0xfe3   :  { %5703 = vpow2.f32 %v4306_v22 }
 0xfe4   :  { %5705 = vpow2.f32 %v4307_v17 }
 0xfe5   :  { %5707 = vtanh.f32 %v3988_v21 }
 0xfec   :  { %v5702_v52 = vpop.eup %5701 }
 0xfed   :  { %v5704_v37 = vpop.eup %5703  ;;  %v3993_v5 = vadd.f32 1.0, %v5702_v52 }
 0xfee   :  { %v3999_v25 = vadd.f32 1.0, %v5704_v37  ;;  %v5706_v36 = vpop.eup %5705 }
 0xfef   :  { %5709 = vrcp.f32 %v3993_v5  ;;  %v5708_v54 = vpop.eup %5707  ;;  %v4006_v2 = vadd.f32 1.0, %v5706_v36 }
 0xff0   :  { %5711 = vrcp.f32 %v3999_v25 }
 0xff1   :  { %5713 = vrcp.f32 %v4006_v2 }
 0xff9   :  { %v5710_v7 = vpop.eup %5709 }
 0xffa   :  { %v5712_v19 = vpop.eup %5711  ;;  %v4013_v20 = vmul.f32 %v5710_v7, %v5708_v54 }
 0xffb   :  { %v4012_v61 = vmul.f32 %v5712_v19, %v4010_v15  ;;  %v5714_v59 = vpop.eup %5713 }
 0xffd   :  { %v4014_v13 = vadd.f32 %v4013_v20, %v4012_v61 }
 0xfff   :  { %5715 = vtanh.f32 %v4014_v13  ;;  %v4198_v39 = vrot.slane %v4014_v13, 6 }
0x1009   :  { %v5716_v11 = vpop.eup %5715 }
0x100a   :  { %v4016_v24 = vmul.f32 %v5716_v11, %v5714_v59 }
0x100c   :  { %v4018_v51 = vrot.slane %v4016_v24, 4 }
0x100e   :  { %4085 = vmatmul.mubr.f32.vlgmr.msra.gmra.mrb[46].mxu0 %v4018_v51  ;;  %4156 = vmatmul.mubr.f32.vlgmr.msra.gmra.mrb[46].mxu1 %v4018_v51 }
0x10e1   :  { %v4086_v30 = vpop.f32.mrb[46].mxu0  ;;  %v4157_v63 = vpop.f32.mrb[46].mxu1 }
0x10e2   :  { %v4166_v26 = vrot.slane %v4086_v30, 2  ;;  %v4088_v16 = vpop.f32.mrb[47].mxu0  ;;  %v4159_v1 = vpop.f32.mrb[47].mxu1  ;;  %v4168_v44 = vrot.slane %v4157_v63, 2 }
0x10e3   :  { %v4167_v46 = vrot.slane %v4088_v16, 2  ;;  %v4169_v60 = vrot.slane %v4159_v1, 2 }
0x10e4   :  { %v4174_v33 = vadd.f32 %v4166_v26, %v6715_v50  ;;  %v4176_v18 = vadd.f32 %v4168_v44, %v7076_v58  ;;  %v4312_v58 = vld [vmem:[%s7029_s10] ss:$0 sm:$0xff] }
0x10e5   :  { %v4175_v31 = vadd.f32 %v4167_v46, %v7074_v3  ;;  %v4177_v48 = vadd.f32 %v4169_v60, %v7075_v0  ;;  %v4220_v6 = vmul.f32 %v4312_v58, %v7077_v34 }
0x10e6   :  { %v4308_v55 = vmul.f32 -1.442695, %v4174_v33 }
0x10e7   :  { %v4309_v57 = vmul.f32 -1.442695, %v4175_v31  ;;  %v4310_v41 = vmul.f32 -1.442695, %v4177_v48  ;;  %v4222_v28 = vrot.slane %v4220_v6, 2 }
0x10e8   :  { %5717 = vpow2.f32 %v4308_v55 }
0x10e9   :  { %5719 = vpow2.f32 %v4309_v57 }
0x10ea   :  { %5721 = vpow2.f32 %v4310_v41 }
0x10eb   :  { %5723 = vtanh.f32 %v4176_v18 }
0x10f2   :  { %v5718_v38 = vpop.eup %5717 }
0x10f3   :  { %v5720_v32 = vpop.eup %5719  ;;  %v4181_v4 = vadd.f32 1.0, %v5718_v38 }
0x10f4   :  { %v4187_v49 = vadd.f32 1.0, %v5720_v32  ;;  %v5722_v50 = vpop.eup %5721 }
0x10f5   :  { %5725 = vrcp.f32 %v4181_v4  ;;  %v5724_v3 = vpop.eup %5723  ;;  %v4194_v29 = vadd.f32 1.0, %v5722_v50 }
0x10f6   :  { %5727 = vrcp.f32 %v4187_v49 }
0x10f7   :  { %5729 = vrcp.f32 %v4194_v29 }
0x10ff   :  { %v5726_v43 = vpop.eup %5725 }
0x1100   :  { %v5728_v62 = vpop.eup %5727  ;;  %v4201_v10 = vmul.f32 %v5726_v43, %v5724_v3 }
0x1101   :  { %v4200_v0 = vmul.f32 %v5728_v62, %v4198_v39  ;;  %v5730_v45 = vpop.eup %5729 }
0x1103   :  { %v4202_v12 = vadd.f32 %v4201_v10, %v4200_v0 }
0x1105   :  { %5731 = vtanh.f32 %v4202_v12 }
0x110f   :  { %v5732_v9 = vpop.eup %5731 }
0x1110   :  { %v4204_v42 = vmul.f32 %v5732_v9, %v5730_v45 }
0x1112   :  { %v4212_v27 = vmul.f32 %v4311_v8, %v4204_v42 }
0x1114   :  { %v4224_v14 = vadd.f32 %v4222_v28, %v4212_v27 }
0x1116   :  { %v4226_v40 = vsel %vm4225_vm10, %v4224_v14, 0.0 }
0x1117   :  { %4227 = vadd.xlane.f32.xlu0 %v4226_v40 }
0x11a4   :  { %v4228_v56 = vpop.xlane.xlu0 %4227 }
0x11a5   :  { %v4236_v22 = vadd.f32 %v4313_v53, %v4228_v56 }
0x11a7   :  { %4238 = vst.msk [vmem:[%s7031_s12 - $0x6] sm:$0xc0] %vm4237_vm11, %v4236_v22 }
0x11a8   :  { %4243 = vsyncpa [#allocation4], 1 }
0x11a9   :  { %4244 = vsyncpa [#allocation6], 1 }
0x11aa   :  { %4245 = vsyncpa [#allocation9], 1 }

</bundles_post_ra>
